<compile_context>
chip_gen: v7x
topology: tpu7x:2x2x1
jax: 0.10.0
libtpu: 0.0.40
codegen_flags: <defaults>
</compile_context>

<pallas_src>
import math

import jax
import jax.numpy as jnp
from jax import lax
from jax.experimental import pallas as pl
from jax.experimental.pallas import tpu as pltpu


def _round_up(x, m):
    return ((x + m - 1) // m) * m


# ------------------------------ Pallas kernel -------------------------------

def _make_convmod_kernel(*, N, H, W, KH, KW, Ci_p, Co_p, SL, BASE, OFF,
                         Lw, Wp, Q, residual):
    taps = [kh * Wp + kw for kh in range(KH) for kw in range(KW)]
    T = KH * KW

    def elu(v):
        # F.elu with alpha=1; exp() only ever sees non-positive arguments.
        return jnp.where(v > 0, v, jnp.exp(jnp.minimum(v, 0.0)) - 1.0)

    def kernel(x_ref, w1_ref, w2_ref, w3_ref, b1_ref, b2_ref, b3_ref, m_ref,
               o_ref, slab_ref, rhs_ref):
        mask = m_ref[...]                                   # (1, Lw)

        def build_rhs(src_ref, c):
            # Stack the T shifted whole-slab lane slices on the sublane axis.
            # Destination row blocks [t*c, (t+1)*c) are sublane-tile aligned
            # (c is a multiple of 8) and full lane width -> unmasked stores.
            for t, d in enumerate(taps):
                rhs_ref[t * c:(t + 1) * c, :] = src_ref[:, d:d + Q]

        def conv(w_ref, b_ref, rows):
            # One deep MXU matmul per layer; bias fused in the epilogue.
            return jnp.dot(w_ref[...], rhs_ref[:rows, :],
                           preferred_element_type=jnp.float32) + b_ref[...]

        def repad(a):
            # Masked interior write of the wide activation back into the slab.
            # Destination start n*SL + BASE + OFF is a multiple of 128 lanes.
            for n in range(N):
                s = n * SL
                slab_ref[:, s + BASE + OFF: s + BASE + OFF + Lw] = (
                    a[:, s + BASE: s + BASE + Lw] * mask)

        # One-time zero fill: pad borders / inter-image gaps / tail stay zero
        # for the whole kernel; masked interior writes refresh the rest.
        slab_ref[...] = jnp.zeros_like(slab_ref)

        # conv1 + ELU (this is also the skip connection).
        build_rhs(x_ref, Ci_p)
        a1 = elu(conv(w1_ref, b1_ref, T * Ci_p))

        # conv2 + ELU (slab reused; a1 stays live in registers for the skip).
        repad(a1)
        build_rhs(slab_ref, Co_p)
        a2 = elu(conv(w2_ref, b2_ref, T * Co_p))

        # conv3 + residual + final ELU.
        repad(a2)
        build_rhs(slab_ref, Co_p)
        y = conv(w3_ref, b3_ref, T * Co_p)
        if residual:
            y = y + a1
        y = elu(y).astype(o_ref.dtype)

        # Crop the valid pixels straight into the lane-dense (N, Co_p, H*W)
        # output -> no post-kernel XLA crop pass.
        for n in range(N):
            base = n * SL + BASE
            for h in range(H):
                o_ref[n, :, h * W:(h + 1) * W] = (
                    y[:, base + h * Wp: base + h * Wp + W])

    return kernel


# ------------------------------ forward wrapper ------------------------------

def convmod_forward(x, params, residual=True):
    """ConvMod forward:  elu(conv3(elu(conv2(elu(conv1(x))))) [+ elu(conv1(x))]).

    x:      (N, Cin, H, W) float32, NCHW (PyTorch layout)
    params: ((w1, b1), (w2, b2), (w3, b3)), w: (Cout, C_in, K, K), b: (Cout,)
    """
    (w1, b1), (w2, b2), (w3, b3) = params
    N, Cin, H, W = x.shape
    Cout, _, KH, KW = w1.shape
    assert KH == KW and KH % 2 == 1, "'same' padding requires an odd kernel"
    p = KH // 2
    Hp, Wp = H + 2 * p, W + 2 * p
    Lw = H * Wp                    # wide (row-stride Wp) flat output length
    OFF = p * Wp + p               # flat offset of pixel (0,0) in the padded image
    T = KH * KW
    d_max = (KH - 1) * Wp + (KW - 1)

    # Channel padding so every tap row-block of the RHS stack is a full
    # sublane tile.
    Ci_p = _round_up(Cin, 8)
    Co_p = _round_up(Cout, 8)

    # Per-image slab layout along the lane axis:
    #   [BASE front pad | padded Hp x Wp image | tail pad],  stride SL.
    # BASE puts the interior (pixel (0,0), offset OFF) on a 128-lane boundary;
    # SL is a multiple of 128 so every image in the batch stays aligned.
    BASE = (-OFF) % 128
    SL = _round_up(BASE + Lw + d_max, 128)
    Q = N * SL                                   # matmul lane width
    SLAB_W = Q + _round_up(d_max, 128)           # slack for the tap shifts
    # NOTE: at production H*W this whole-image-in-VMEM design needs the
    # row-tiled-with-halo variant (especially on v7x's 64 MiB VMEM); here the
    # footprint is well under 1 MiB.

    # Flattened, zero-padded input slab: channels on sublanes, batch folded
    # into the lane axis with the aligned per-image layout above.
    xp = jnp.pad(x.astype(jnp.float32),
                 ((0, 0), (0, Ci_p - Cin), (p, p), (p, p)))      # (N,Ci_p,Hp,Wp)
    xp = xp.reshape(N, Ci_p, Hp * Wp)
    xp = jnp.pad(xp, ((0, 0), (0, 0), (BASE, SL - BASE - Hp * Wp)))
    xflat = jnp.transpose(xp, (1, 0, 2)).reshape(Ci_p, Q)
    xflat = jnp.pad(xflat, ((0, 0), (0, SLAB_W - Q)))            # (Ci_p, SLAB_W)

    def prep_w(w, c_in, c_in_p):
        # (Cout, c_in, KH, KW) -> (Co_p, T*c_in_p); column order (kh, kw, cin)
        # matches the RHS stacking order in the kernel.
        wt = jnp.transpose(w, (0, 2, 3, 1)).astype(jnp.float32)
        wt = jnp.pad(wt, ((0, Co_p - Cout), (0, 0), (0, 0), (0, c_in_p - c_in)))
        return wt.reshape(Co_p, T * c_in_p)

    w1f = prep_w(w1, Cin, Ci_p)
    w2f = prep_w(w2, Cout, Co_p)
    w3f = prep_w(w3, Cout, Co_p)

    def prep_b(b):
        return jnp.pad(b.astype(jnp.float32), (0, Co_p - Cout)).reshape(Co_p, 1)

    b1c, b2c, b3c = prep_b(b1), prep_b(b2), prep_b(b3)

    # Valid-column mask for the wide (H, Wp) interior.
    col = jnp.arange(Lw, dtype=jnp.int32) % Wp
    mask = (col < W).astype(jnp.float32).reshape(1, Lw)

    rows_max = T * max(Ci_p, Co_p)
    kernel = _make_convmod_kernel(N=N, H=H, W=W, KH=KH, KW=KW, Ci_p=Ci_p,
                                  Co_p=Co_p, SL=SL, BASE=BASE, OFF=OFF,
                                  Lw=Lw, Wp=Wp, Q=Q, residual=residual)

    flops = 2 * Q * T * (Ci_p * Co_p + 2 * Co_p * Co_p)
    bytes_accessed = 4 * (Ci_p * SLAB_W + Co_p * T * (Ci_p + 2 * Co_p)
                          + 3 * Co_p + Lw + N * Co_p * H * W)

    out = pl.pallas_call(
        kernel,
        out_shape=jax.ShapeDtypeStruct((N, Co_p, H * W), jnp.float32),
        grid=(1,),
        in_specs=[
            pl.BlockSpec((Ci_p, SLAB_W), lambda i: (0, 0)),
            pl.BlockSpec((Co_p, T * Ci_p), lambda i: (0, 0)),
            pl.BlockSpec((Co_p, T * Co_p), lambda i: (0, 0)),
            pl.BlockSpec((Co_p, T * Co_p), lambda i: (0, 0)),
            pl.BlockSpec((Co_p, 1), lambda i: (0, 0)),
            pl.BlockSpec((Co_p, 1), lambda i: (0, 0)),
            pl.BlockSpec((Co_p, 1), lambda i: (0, 0)),
            pl.BlockSpec((1, Lw), lambda i: (0, 0)),
        ],
        out_specs=pl.BlockSpec((N, Co_p, H * W), lambda i: (0, 0, 0)),
        scratch_shapes=[
            pltpu.VMEM((Co_p, SLAB_W), jnp.float32),   # reused padded act. slab
            pltpu.VMEM((rows_max, Q), jnp.float32),    # stacked (im2col) RHS
        ],
        compiler_params=pltpu.CompilerParams(
            dimension_semantics=("arbitrary",),
            vmem_limit_bytes=32 * 1024 * 1024),
        cost_estimate=pl.CostEstimate(
            flops=flops, transcendentals=3 * Co_p * Q,
            bytes_accessed=bytes_accessed),
    )(xflat, w1f, w2f, w3f, b1c, b2c, b3c, mask)

    # Layout-preserving reshape (no HBM copy); channel crop only triggers if
    # Cout had to be padded to a multiple of 8.
    out = out.reshape(N, Co_p, H, W)
    return out if Co_p == Cout else out[:, :Cout]


# --------------------------------- reference ---------------------------------

def _reference(x, params, residual=True):
    def conv(xx, w, b):
        pp = w.shape[2] // 2
        y = lax.conv_general_dilated(
            xx, w, window_strides=(1, 1), padding=[(pp, pp), (pp, pp)],
            dimension_numbers=("NCHW", "OIHW", "NCHW"))
        return y + b[None, :, None, None]

    (w1, b1), (w2, b2), (w3, b3) = params
    a1 = jax.nn.elu(conv(x, w1, b1))
    a2 = jax.nn.elu(conv(a1, w2, b2))
    a3 = conv(a2, w3, b3)
    return jax.nn.elu(a3 + a1 if residual else a3)


# ------------------------------------ main ------------------------------------

if __name__ == "__main__":
    N, Cin, Cout, H, W, K = 2, 4, 8, 16, 16, 3

    key = jax.random.PRNGKey(0)
    kx, k1, k2, k3 = jax.random.split(key, 4)
    x = jax.random.normal(kx, (N, Cin, H, W), jnp.float32)

    # Deterministic MSRA (kaiming_normal_) init: std = sqrt(2 / (C_in*K*K)),
    # biases constant 0 (nn.init.constant_).
    def msra(k, shape):
        fan_in = shape[1] * shape[2] * shape[3]
        return jax.random.normal(k, shape, jnp.float32) * math.sqrt(2.0 / fan_in)

    params = (
        (msra(k1, (Cout, Cin, K, K)), jnp.zeros((Cout,), jnp.float32)),
        (msra(k2, (Cout, Cout, K, K)), jnp.zeros((Cout,), jnp.float32)),
        (msra(k3, (Cout, Cout, K, K)), jnp.zeros((Cout,), jnp.float32)),
    )

    out = convmod_forward(x, params, residual=True)
    out = jax.block_until_ready(out)

    ref = _reference(x, params, residual=True)
    assert out.shape == (N, Cout, H, W), out.shape
    assert jnp.allclose(out, ref, atol=1e-4, rtol=1e-4), "mismatch vs reference"

    print("KERNEL_OK")
</pallas_src>

<mosaic_0001>
module attributes {stable_mosaic.version = 11 : i64} {
  func.func @kernel(%arg0: i32, %arg1: memref<8x1152xf32, #tpu.memory_space<vmem>>, %arg2: memref<8x72xf32, #tpu.memory_space<vmem>>, %arg3: memref<8x72xf32, #tpu.memory_space<vmem>>, %arg4: memref<8x72xf32, #tpu.memory_space<vmem>>, %arg5: memref<8x1xf32, #tpu.memory_space<vmem>>, %arg6: memref<8x1xf32, #tpu.memory_space<vmem>>, %arg7: memref<8x1xf32, #tpu.memory_space<vmem>>, %arg8: memref<1x288xf32, #tpu.memory_space<vmem>>, %arg9: memref<2x8x256xf32, #tpu.memory_space<vmem>>, %arg10: memref<8x1152xf32, #tpu.memory_space<vmem>>, %arg11: memref<72x1024xf32, #tpu.memory_space<vmem>>) attributes {dimension_semantics = [#tpu.dimension_semantics<arbitrary>], iteration_bounds = array<i64: 1>, scalar_prefetch = 0 : i64, scratch_operands = 2 : i64, tpu.core_type = #tpu.core_type<tc>, window_params = [{pipeline_mode = #tpu.pipeline_mode<synchronous>, transform_indices = @transform_0, window_bounds = array<i64: 8, 1152>}, {pipeline_mode = #tpu.pipeline_mode<synchronous>, transform_indices = @transform_1, window_bounds = array<i64: 8, 72>}, {pipeline_mode = #tpu.pipeline_mode<synchronous>, transform_indices = @transform_2, window_bounds = array<i64: 8, 72>}, {pipeline_mode = #tpu.pipeline_mode<synchronous>, transform_indices = @transform_3, window_bounds = array<i64: 8, 72>}, {pipeline_mode = #tpu.pipeline_mode<synchronous>, transform_indices = @transform_4, window_bounds = array<i64: 8, 1>}, {pipeline_mode = #tpu.pipeline_mode<synchronous>, transform_indices = @transform_5, window_bounds = array<i64: 8, 1>}, {pipeline_mode = #tpu.pipeline_mode<synchronous>, transform_indices = @transform_6, window_bounds = array<i64: 8, 1>}, {pipeline_mode = #tpu.pipeline_mode<synchronous>, transform_indices = @transform_7, window_bounds = array<i64: 1, 288>}, {pipeline_mode = #tpu.pipeline_mode<synchronous>, transform_indices = @transform_8, window_bounds = array<i64: 2, 8, 256>}]} {
    %c0 = arith.constant 0 : index
    %c0_0 = arith.constant 0 : index
    %0 = vector.load %arg8[%c0, %c0_0] : memref<1x288xf32, #tpu.memory_space<vmem>>, vector<1x288xf32>
    %cst = arith.constant 0.000000e+00 : f32
    %1 = vector.broadcast %cst : f32 to vector<8x1152xf32>
    %c0_1 = arith.constant 0 : index
    %c0_2 = arith.constant 0 : index
    %2 = vector.load %arg10[%c0_1, %c0_2] : memref<8x1152xf32, #tpu.memory_space<vmem>>, vector<8x1152xf32>
    tpu.vector_store %arg10[%c0_1, %c0_2], %1 {strides = array<i32>} : memref<8x1152xf32, #tpu.memory_space<vmem>>, vector<8x1152xf32>,
    %c0_3 = arith.constant 0 : index
    %c0_4 = arith.constant 0 : index
    %3 = vector.load %arg1[%c0_3, %c0_4] : memref<8x1152xf32, #tpu.memory_space<vmem>>, vector<8x1024xf32>
    %c0_5 = arith.constant 0 : index
    %c0_6 = arith.constant 0 : index
    %4 = vector.load %arg11[%c0_5, %c0_6] : memref<72x1024xf32, #tpu.memory_space<vmem>>, vector<8x1024xf32>
    tpu.vector_store %arg11[%c0_5, %c0_6], %3 {strides = array<i32>} : memref<72x1024xf32, #tpu.memory_space<vmem>>, vector<8x1024xf32>,
    %c0_7 = arith.constant 0 : index
    %c1 = arith.constant 1 : index
    %5 = vector.load %arg1[%c0_7, %c1] : memref<8x1152xf32, #tpu.memory_space<vmem>>, vector<8x1024xf32>
    %c8 = arith.constant 8 : index
    %c0_8 = arith.constant 0 : index
    %6 = vector.load %arg11[%c8, %c0_8] : memref<72x1024xf32, #tpu.memory_space<vmem>>, vector<8x1024xf32>
    tpu.vector_store %arg11[%c8, %c0_8], %5 {strides = array<i32>} : memref<72x1024xf32, #tpu.memory_space<vmem>>, vector<8x1024xf32>,
    %c0_9 = arith.constant 0 : index
    %c2 = arith.constant 2 : index
    %7 = vector.load %arg1[%c0_9, %c2] : memref<8x1152xf32, #tpu.memory_space<vmem>>, vector<8x1024xf32>
    %c16 = arith.constant 16 : index
    %c0_10 = arith.constant 0 : index
    %8 = vector.load %arg11[%c16, %c0_10] : memref<72x1024xf32, #tpu.memory_space<vmem>>, vector<8x1024xf32>
    tpu.vector_store %arg11[%c16, %c0_10], %7 {strides = array<i32>} : memref<72x1024xf32, #tpu.memory_space<vmem>>, vector<8x1024xf32>,
    %c0_11 = arith.constant 0 : index
    %c18 = arith.constant 18 : index
    %9 = vector.load %arg1[%c0_11, %c18] : memref<8x1152xf32, #tpu.memory_space<vmem>>, vector<8x1024xf32>
    %c24 = arith.constant 24 : index
    %c0_12 = arith.constant 0 : index
    %10 = vector.load %arg11[%c24, %c0_12] : memref<72x1024xf32, #tpu.memory_space<vmem>>, vector<8x1024xf32>
    tpu.vector_store %arg11[%c24, %c0_12], %9 {strides = array<i32>} : memref<72x1024xf32, #tpu.memory_space<vmem>>, vector<8x1024xf32>,
    %c0_13 = arith.constant 0 : index
    %c19 = arith.constant 19 : index
    %11 = vector.load %arg1[%c0_13, %c19] : memref<8x1152xf32, #tpu.memory_space<vmem>>, vector<8x1024xf32>
    %c32 = arith.constant 32 : index
    %c0_14 = arith.constant 0 : index
    %12 = vector.load %arg11[%c32, %c0_14] : memref<72x1024xf32, #tpu.memory_space<vmem>>, vector<8x1024xf32>
    tpu.vector_store %arg11[%c32, %c0_14], %11 {strides = array<i32>} : memref<72x1024xf32, #tpu.memory_space<vmem>>, vector<8x1024xf32>,
    %c0_15 = arith.constant 0 : index
    %c20 = arith.constant 20 : index
    %13 = vector.load %arg1[%c0_15, %c20] : memref<8x1152xf32, #tpu.memory_space<vmem>>, vector<8x1024xf32>
    %c40 = arith.constant 40 : index
    %c0_16 = arith.constant 0 : index
    %14 = vector.load %arg11[%c40, %c0_16] : memref<72x1024xf32, #tpu.memory_space<vmem>>, vector<8x1024xf32>
    tpu.vector_store %arg11[%c40, %c0_16], %13 {strides = array<i32>} : memref<72x1024xf32, #tpu.memory_space<vmem>>, vector<8x1024xf32>,
    %c0_17 = arith.constant 0 : index
    %c36 = arith.constant 36 : index
    %15 = vector.load %arg1[%c0_17, %c36] : memref<8x1152xf32, #tpu.memory_space<vmem>>, vector<8x1024xf32>
    %c48 = arith.constant 48 : index
    %c0_18 = arith.constant 0 : index
    %16 = vector.load %arg11[%c48, %c0_18] : memref<72x1024xf32, #tpu.memory_space<vmem>>, vector<8x1024xf32>
    tpu.vector_store %arg11[%c48, %c0_18], %15 {strides = array<i32>} : memref<72x1024xf32, #tpu.memory_space<vmem>>, vector<8x1024xf32>,
    %c0_19 = arith.constant 0 : index
    %c37 = arith.constant 37 : index
    %17 = vector.load %arg1[%c0_19, %c37] : memref<8x1152xf32, #tpu.memory_space<vmem>>, vector<8x1024xf32>
    %c56 = arith.constant 56 : index
    %c0_20 = arith.constant 0 : index
    %18 = vector.load %arg11[%c56, %c0_20] : memref<72x1024xf32, #tpu.memory_space<vmem>>, vector<8x1024xf32>
    tpu.vector_store %arg11[%c56, %c0_20], %17 {strides = array<i32>} : memref<72x1024xf32, #tpu.memory_space<vmem>>, vector<8x1024xf32>,
    %c0_21 = arith.constant 0 : index
    %c38 = arith.constant 38 : index
    %19 = vector.load %arg1[%c0_21, %c38] : memref<8x1152xf32, #tpu.memory_space<vmem>>, vector<8x1024xf32>
    %c64 = arith.constant 64 : index
    %c0_22 = arith.constant 0 : index
    %20 = vector.load %arg11[%c64, %c0_22] : memref<72x1024xf32, #tpu.memory_space<vmem>>, vector<8x1024xf32>
    tpu.vector_store %arg11[%c64, %c0_22], %19 {strides = array<i32>} : memref<72x1024xf32, #tpu.memory_space<vmem>>, vector<8x1024xf32>,
    %c0_23 = arith.constant 0 : index
    %c0_24 = arith.constant 0 : index
    %21 = vector.load %arg2[%c0_23, %c0_24] : memref<8x72xf32, #tpu.memory_space<vmem>>, vector<8x72xf32>
    %c0_25 = arith.constant 0 : index
    %c0_26 = arith.constant 0 : index
    %22 = vector.load %arg11[%c0_25, %c0_26] : memref<72x1024xf32, #tpu.memory_space<vmem>>, vector<72x1024xf32>
    %cst_27 = arith.constant dense<0.000000e+00> : vector<8x1024xf32>
    %23 = tpu.matmul %21, %22, %cst_27 {dimension_numbers = #tpu.dot_dimension_numbers<[1], [0], [0], [1], [0, 0, 1, 1], [], []>} : vector<8x72xf32>, vector<72x1024xf32>, vector<8x1024xf32> -> vector<8x1024xf32>
    %c0_28 = arith.constant 0 : index
    %c0_29 = arith.constant 0 : index
    %24 = vector.load %arg5[%c0_28, %c0_29] : memref<8x1xf32, #tpu.memory_space<vmem>>, vector<8x1xf32>
    %25 = vector.broadcast %24 : vector<8x1xf32> to vector<8x1024xf32>
    %26 = arith.addf %23, %25 : vector<8x1024xf32>
    %cst_30 = arith.constant 0.000000e+00 : f32
    %27 = vector.broadcast %cst_30 : f32 to vector<8x1024xf32>
    %28 = arith.cmpf ogt, %26, %27 : vector<8x1024xf32>
    %cst_31 = arith.constant 0.000000e+00 : f32
    %29 = vector.broadcast %cst_31 : f32 to vector<8x1024xf32>
    %30 = arith.minimumf %26, %29 : vector<8x1024xf32>
    %31 = math.exp %30 : vector<8x1024xf32>
    %cst_32 = arith.constant 1.000000e+00 : f32
    %32 = vector.broadcast %cst_32 : f32 to vector<8x1024xf32>
    %33 = arith.subf %31, %32 : vector<8x1024xf32>
    %34 = arith.select %28, %26, %33 : vector<8x1024xi1>, vector<8x1024xf32>
    %35 = vector.extract_strided_slice %34 {offsets = [0, 109], sizes = [8, 288], strides = [1, 1]} : vector<8x1024xf32> to vector<8x288xf32>
    %36 = vector.broadcast %0 : vector<1x288xf32> to vector<8x288xf32>
    %37 = arith.mulf %35, %36 : vector<8x288xf32>
    %c0_33 = arith.constant 0 : index
    %c128 = arith.constant 128 : index
    %38 = vector.load %arg10[%c0_33, %c128] : memref<8x1152xf32, #tpu.memory_space<vmem>>, vector<8x288xf32>
    tpu.vector_store %arg10[%c0_33, %c128], %37 {strides = array<i32>} : memref<8x1152xf32, #tpu.memory_space<vmem>>, vector<8x288xf32>,
    %39 = vector.extract_strided_slice %34 {offsets = [0, 621], sizes = [8, 288], strides = [1, 1]} : vector<8x1024xf32> to vector<8x288xf32>
    %40 = vector.broadcast %0 : vector<1x288xf32> to vector<8x288xf32>
    %41 = arith.mulf %39, %40 : vector<8x288xf32>
    %c0_34 = arith.constant 0 : index
    %c640 = arith.constant 640 : index
    %42 = vector.load %arg10[%c0_34, %c640] : memref<8x1152xf32, #tpu.memory_space<vmem>>, vector<8x288xf32>
    tpu.vector_store %arg10[%c0_34, %c640], %41 {strides = array<i32>} : memref<8x1152xf32, #tpu.memory_space<vmem>>, vector<8x288xf32>,
    %c0_35 = arith.constant 0 : index
    %c0_36 = arith.constant 0 : index
    %43 = vector.load %arg10[%c0_35, %c0_36] : memref<8x1152xf32, #tpu.memory_space<vmem>>, vector<8x1024xf32>
    %c0_37 = arith.constant 0 : index
    %c0_38 = arith.constant 0 : index
    %44 = vector.load %arg11[%c0_37, %c0_38] : memref<72x1024xf32, #tpu.memory_space<vmem>>, vector<8x1024xf32>
    tpu.vector_store %arg11[%c0_37, %c0_38], %43 {strides = array<i32>} : memref<72x1024xf32, #tpu.memory_space<vmem>>, vector<8x1024xf32>,
    %c0_39 = arith.constant 0 : index
    %c1_40 = arith.constant 1 : index
    %45 = vector.load %arg10[%c0_39, %c1_40] : memref<8x1152xf32, #tpu.memory_space<vmem>>, vector<8x1024xf32>
    %c8_41 = arith.constant 8 : index
    %c0_42 = arith.constant 0 : index
    %46 = vector.load %arg11[%c8_41, %c0_42] : memref<72x1024xf32, #tpu.memory_space<vmem>>, vector<8x1024xf32>
    tpu.vector_store %arg11[%c8_41, %c0_42], %45 {strides = array<i32>} : memref<72x1024xf32, #tpu.memory_space<vmem>>, vector<8x1024xf32>,
    %c0_43 = arith.constant 0 : index
    %c2_44 = arith.constant 2 : index
    %47 = vector.load %arg10[%c0_43, %c2_44] : memref<8x1152xf32, #tpu.memory_space<vmem>>, vector<8x1024xf32>
    %c16_45 = arith.constant 16 : index
    %c0_46 = arith.constant 0 : index
    %48 = vector.load %arg11[%c16_45, %c0_46] : memref<72x1024xf32, #tpu.memory_space<vmem>>, vector<8x1024xf32>
    tpu.vector_store %arg11[%c16_45, %c0_46], %47 {strides = array<i32>} : memref<72x1024xf32, #tpu.memory_space<vmem>>, vector<8x1024xf32>,
    %c0_47 = arith.constant 0 : index
    %c18_48 = arith.constant 18 : index
    %49 = vector.load %arg10[%c0_47, %c18_48] : memref<8x1152xf32, #tpu.memory_space<vmem>>, vector<8x1024xf32>
    %c24_49 = arith.constant 24 : index
    %c0_50 = arith.constant 0 : index
    %50 = vector.load %arg11[%c24_49, %c0_50] : memref<72x1024xf32, #tpu.memory_space<vmem>>, vector<8x1024xf32>
    tpu.vector_store %arg11[%c24_49, %c0_50], %49 {strides = array<i32>} : memref<72x1024xf32, #tpu.memory_space<vmem>>, vector<8x1024xf32>,
    %c0_51 = arith.constant 0 : index
    %c19_52 = arith.constant 19 : index
    %51 = vector.load %arg10[%c0_51, %c19_52] : memref<8x1152xf32, #tpu.memory_space<vmem>>, vector<8x1024xf32>
    %c32_53 = arith.constant 32 : index
    %c0_54 = arith.constant 0 : index
    %52 = vector.load %arg11[%c32_53, %c0_54] : memref<72x1024xf32, #tpu.memory_space<vmem>>, vector<8x1024xf32>
    tpu.vector_store %arg11[%c32_53, %c0_54], %51 {strides = array<i32>} : memref<72x1024xf32, #tpu.memory_space<vmem>>, vector<8x1024xf32>,
    %c0_55 = arith.constant 0 : index
    %c20_56 = arith.constant 20 : index
    %53 = vector.load %arg10[%c0_55, %c20_56] : memref<8x1152xf32, #tpu.memory_space<vmem>>, vector<8x1024xf32>
    %c40_57 = arith.constant 40 : index
    %c0_58 = arith.constant 0 : index
    %54 = vector.load %arg11[%c40_57, %c0_58] : memref<72x1024xf32, #tpu.memory_space<vmem>>, vector<8x1024xf32>
    tpu.vector_store %arg11[%c40_57, %c0_58], %53 {strides = array<i32>} : memref<72x1024xf32, #tpu.memory_space<vmem>>, vector<8x1024xf32>,
    %c0_59 = arith.constant 0 : index
    %c36_60 = arith.constant 36 : index
    %55 = vector.load %arg10[%c0_59, %c36_60] : memref<8x1152xf32, #tpu.memory_space<vmem>>, vector<8x1024xf32>
    %c48_61 = arith.constant 48 : index
    %c0_62 = arith.constant 0 : index
    %56 = vector.load %arg11[%c48_61, %c0_62] : memref<72x1024xf32, #tpu.memory_space<vmem>>, vector<8x1024xf32>
    tpu.vector_store %arg11[%c48_61, %c0_62], %55 {strides = array<i32>} : memref<72x1024xf32, #tpu.memory_space<vmem>>, vector<8x1024xf32>,
    %c0_63 = arith.constant 0 : index
    %c37_64 = arith.constant 37 : index
    %57 = vector.load %arg10[%c0_63, %c37_64] : memref<8x1152xf32, #tpu.memory_space<vmem>>, vector<8x1024xf32>
    %c56_65 = arith.constant 56 : index
    %c0_66 = arith.constant 0 : index
    %58 = vector.load %arg11[%c56_65, %c0_66] : memref<72x1024xf32, #tpu.memory_space<vmem>>, vector<8x1024xf32>
    tpu.vector_store %arg11[%c56_65, %c0_66], %57 {strides = array<i32>} : memref<72x1024xf32, #tpu.memory_space<vmem>>, vector<8x1024xf32>,
    %c0_67 = arith.constant 0 : index
    %c38_68 = arith.constant 38 : index
    %59 = vector.load %arg10[%c0_67, %c38_68] : memref<8x1152xf32, #tpu.memory_space<vmem>>, vector<8x1024xf32>
    %c64_69 = arith.constant 64 : index
    %c0_70 = arith.constant 0 : index
    %60 = vector.load %arg11[%c64_69, %c0_70] : memref<72x1024xf32, #tpu.memory_space<vmem>>, vector<8x1024xf32>
    tpu.vector_store %arg11[%c64_69, %c0_70], %59 {strides = array<i32>} : memref<72x1024xf32, #tpu.memory_space<vmem>>, vector<8x1024xf32>,
    %c0_71 = arith.constant 0 : index
    %c0_72 = arith.constant 0 : index
    %61 = vector.load %arg3[%c0_71, %c0_72] : memref<8x72xf32, #tpu.memory_space<vmem>>, vector<8x72xf32>
    %c0_73 = arith.constant 0 : index
    %c0_74 = arith.constant 0 : index
    %62 = vector.load %arg11[%c0_73, %c0_74] : memref<72x1024xf32, #tpu.memory_space<vmem>>, vector<72x1024xf32>
    %cst_75 = arith.constant dense<0.000000e+00> : vector<8x1024xf32>
    %63 = tpu.matmul %61, %62, %cst_75 {dimension_numbers = #tpu.dot_dimension_numbers<[1], [0], [0], [1], [0, 0, 1, 1], [], []>} : vector<8x72xf32>, vector<72x1024xf32>, vector<8x1024xf32> -> vector<8x1024xf32>
    %c0_76 = arith.constant 0 : index
    %c0_77 = arith.constant 0 : index
    %64 = vector.load %arg6[%c0_76, %c0_77] : memref<8x1xf32, #tpu.memory_space<vmem>>, vector<8x1xf32>
    %65 = vector.broadcast %64 : vector<8x1xf32> to vector<8x1024xf32>
    %66 = arith.addf %63, %65 : vector<8x1024xf32>
    %cst_78 = arith.constant 0.000000e+00 : f32
    %67 = vector.broadcast %cst_78 : f32 to vector<8x1024xf32>
    %68 = arith.cmpf ogt, %66, %67 : vector<8x1024xf32>
    %cst_79 = arith.constant 0.000000e+00 : f32
    %69 = vector.broadcast %cst_79 : f32 to vector<8x1024xf32>
    %70 = arith.minimumf %66, %69 : vector<8x1024xf32>
    %71 = math.exp %70 : vector<8x1024xf32>
    %cst_80 = arith.constant 1.000000e+00 : f32
    %72 = vector.broadcast %cst_80 : f32 to vector<8x1024xf32>
    %73 = arith.subf %71, %72 : vector<8x1024xf32>
    %74 = arith.select %68, %66, %73 : vector<8x1024xi1>, vector<8x1024xf32>
    %75 = vector.extract_strided_slice %74 {offsets = [0, 109], sizes = [8, 288], strides = [1, 1]} : vector<8x1024xf32> to vector<8x288xf32>
    %76 = vector.broadcast %0 : vector<1x288xf32> to vector<8x288xf32>
    %77 = arith.mulf %75, %76 : vector<8x288xf32>
    %c0_81 = arith.constant 0 : index
    %c128_82 = arith.constant 128 : index
    %78 = vector.load %arg10[%c0_81, %c128_82] : memref<8x1152xf32, #tpu.memory_space<vmem>>, vector<8x288xf32>
    tpu.vector_store %arg10[%c0_81, %c128_82], %77 {strides = array<i32>} : memref<8x1152xf32, #tpu.memory_space<vmem>>, vector<8x288xf32>,
    %79 = vector.extract_strided_slice %74 {offsets = [0, 621], sizes = [8, 288], strides = [1, 1]} : vector<8x1024xf32> to vector<8x288xf32>
    %80 = vector.broadcast %0 : vector<1x288xf32> to vector<8x288xf32>
    %81 = arith.mulf %79, %80 : vector<8x288xf32>
    %c0_83 = arith.constant 0 : index
    %c640_84 = arith.constant 640 : index
    %82 = vector.load %arg10[%c0_83, %c640_84] : memref<8x1152xf32, #tpu.memory_space<vmem>>, vector<8x288xf32>
    tpu.vector_store %arg10[%c0_83, %c640_84], %81 {strides = array<i32>} : memref<8x1152xf32, #tpu.memory_space<vmem>>, vector<8x288xf32>,
    %c0_85 = arith.constant 0 : index
    %c0_86 = arith.constant 0 : index
    %83 = vector.load %arg10[%c0_85, %c0_86] : memref<8x1152xf32, #tpu.memory_space<vmem>>, vector<8x1024xf32>
    %c0_87 = arith.constant 0 : index
    %c0_88 = arith.constant 0 : index
    %84 = vector.load %arg11[%c0_87, %c0_88] : memref<72x1024xf32, #tpu.memory_space<vmem>>, vector<8x1024xf32>
    tpu.vector_store %arg11[%c0_87, %c0_88], %83 {strides = array<i32>} : memref<72x1024xf32, #tpu.memory_space<vmem>>, vector<8x1024xf32>,
    %c0_89 = arith.constant 0 : index
    %c1_90 = arith.constant 1 : index
    %85 = vector.load %arg10[%c0_89, %c1_90] : memref<8x1152xf32, #tpu.memory_space<vmem>>, vector<8x1024xf32>
    %c8_91 = arith.constant 8 : index
    %c0_92 = arith.constant 0 : index
    %86 = vector.load %arg11[%c8_91, %c0_92] : memref<72x1024xf32, #tpu.memory_space<vmem>>, vector<8x1024xf32>
    tpu.vector_store %arg11[%c8_91, %c0_92], %85 {strides = array<i32>} : memref<72x1024xf32, #tpu.memory_space<vmem>>, vector<8x1024xf32>,
    %c0_93 = arith.constant 0 : index
    %c2_94 = arith.constant 2 : index
    %87 = vector.load %arg10[%c0_93, %c2_94] : memref<8x1152xf32, #tpu.memory_space<vmem>>, vector<8x1024xf32>
    %c16_95 = arith.constant 16 : index
    %c0_96 = arith.constant 0 : index
    %88 = vector.load %arg11[%c16_95, %c0_96] : memref<72x1024xf32, #tpu.memory_space<vmem>>, vector<8x1024xf32>
    tpu.vector_store %arg11[%c16_95, %c0_96], %87 {strides = array<i32>} : memref<72x1024xf32, #tpu.memory_space<vmem>>, vector<8x1024xf32>,
    %c0_97 = arith.constant 0 : index
    %c18_98 = arith.constant 18 : index
    %89 = vector.load %arg10[%c0_97, %c18_98] : memref<8x1152xf32, #tpu.memory_space<vmem>>, vector<8x1024xf32>
    %c24_99 = arith.constant 24 : index
    %c0_100 = arith.constant 0 : index
    %90 = vector.load %arg11[%c24_99, %c0_100] : memref<72x1024xf32, #tpu.memory_space<vmem>>, vector<8x1024xf32>
    tpu.vector_store %arg11[%c24_99, %c0_100], %89 {strides = array<i32>} : memref<72x1024xf32, #tpu.memory_space<vmem>>, vector<8x1024xf32>,
    %c0_101 = arith.constant 0 : index
    %c19_102 = arith.constant 19 : index
    %91 = vector.load %arg10[%c0_101, %c19_102] : memref<8x1152xf32, #tpu.memory_space<vmem>>, vector<8x1024xf32>
    %c32_103 = arith.constant 32 : index
    %c0_104 = arith.constant 0 : index
    %92 = vector.load %arg11[%c32_103, %c0_104] : memref<72x1024xf32, #tpu.memory_space<vmem>>, vector<8x1024xf32>
    tpu.vector_store %arg11[%c32_103, %c0_104], %91 {strides = array<i32>} : memref<72x1024xf32, #tpu.memory_space<vmem>>, vector<8x1024xf32>,
    %c0_105 = arith.constant 0 : index
    %c20_106 = arith.constant 20 : index
    %93 = vector.load %arg10[%c0_105, %c20_106] : memref<8x1152xf32, #tpu.memory_space<vmem>>, vector<8x1024xf32>
    %c40_107 = arith.constant 40 : index
    %c0_108 = arith.constant 0 : index
    %94 = vector.load %arg11[%c40_107, %c0_108] : memref<72x1024xf32, #tpu.memory_space<vmem>>, vector<8x1024xf32>
    tpu.vector_store %arg11[%c40_107, %c0_108], %93 {strides = array<i32>} : memref<72x1024xf32, #tpu.memory_space<vmem>>, vector<8x1024xf32>,
    %c0_109 = arith.constant 0 : index
    %c36_110 = arith.constant 36 : index
    %95 = vector.load %arg10[%c0_109, %c36_110] : memref<8x1152xf32, #tpu.memory_space<vmem>>, vector<8x1024xf32>
    %c48_111 = arith.constant 48 : index
    %c0_112 = arith.constant 0 : index
    %96 = vector.load %arg11[%c48_111, %c0_112] : memref<72x1024xf32, #tpu.memory_space<vmem>>, vector<8x1024xf32>
    tpu.vector_store %arg11[%c48_111, %c0_112], %95 {strides = array<i32>} : memref<72x1024xf32, #tpu.memory_space<vmem>>, vector<8x1024xf32>,
    %c0_113 = arith.constant 0 : index
    %c37_114 = arith.constant 37 : index
    %97 = vector.load %arg10[%c0_113, %c37_114] : memref<8x1152xf32, #tpu.memory_space<vmem>>, vector<8x1024xf32>
    %c56_115 = arith.constant 56 : index
    %c0_116 = arith.constant 0 : index
    %98 = vector.load %arg11[%c56_115, %c0_116] : memref<72x1024xf32, #tpu.memory_space<vmem>>, vector<8x1024xf32>
    tpu.vector_store %arg11[%c56_115, %c0_116], %97 {strides = array<i32>} : memref<72x1024xf32, #tpu.memory_space<vmem>>, vector<8x1024xf32>,
    %c0_117 = arith.constant 0 : index
    %c38_118 = arith.constant 38 : index
    %99 = vector.load %arg10[%c0_117, %c38_118] : memref<8x1152xf32, #tpu.memory_space<vmem>>, vector<8x1024xf32>
    %c64_119 = arith.constant 64 : index
    %c0_120 = arith.constant 0 : index
    %100 = vector.load %arg11[%c64_119, %c0_120] : memref<72x1024xf32, #tpu.memory_space<vmem>>, vector<8x1024xf32>
    tpu.vector_store %arg11[%c64_119, %c0_120], %99 {strides = array<i32>} : memref<72x1024xf32, #tpu.memory_space<vmem>>, vector<8x1024xf32>,
    %c0_121 = arith.constant 0 : index
    %c0_122 = arith.constant 0 : index
    %101 = vector.load %arg4[%c0_121, %c0_122] : memref<8x72xf32, #tpu.memory_space<vmem>>, vector<8x72xf32>
    %c0_123 = arith.constant 0 : index
    %c0_124 = arith.constant 0 : index
    %102 = vector.load %arg11[%c0_123, %c0_124] : memref<72x1024xf32, #tpu.memory_space<vmem>>, vector<72x1024xf32>
    %cst_125 = arith.constant dense<0.000000e+00> : vector<8x1024xf32>
    %103 = tpu.matmul %101, %102, %cst_125 {dimension_numbers = #tpu.dot_dimension_numbers<[1], [0], [0], [1], [0, 0, 1, 1], [], []>} : vector<8x72xf32>, vector<72x1024xf32>, vector<8x1024xf32> -> vector<8x1024xf32>
    %c0_126 = arith.constant 0 : index
    %c0_127 = arith.constant 0 : index
    %104 = vector.load %arg7[%c0_126, %c0_127] : memref<8x1xf32, #tpu.memory_space<vmem>>, vector<8x1xf32>
    %105 = vector.broadcast %104 : vector<8x1xf32> to vector<8x1024xf32>
    %106 = arith.addf %103, %105 : vector<8x1024xf32>
    %107 = arith.addf %106, %34 : vector<8x1024xf32>
    %cst_128 = arith.constant 0.000000e+00 : f32
    %108 = vector.broadcast %cst_128 : f32 to vector<8x1024xf32>
    %109 = arith.cmpf ogt, %107, %108 : vector<8x1024xf32>
    %cst_129 = arith.constant 0.000000e+00 : f32
    %110 = vector.broadcast %cst_129 : f32 to vector<8x1024xf32>
    %111 = arith.minimumf %107, %110 : vector<8x1024xf32>
    %112 = math.exp %111 : vector<8x1024xf32>
    %cst_130 = arith.constant 1.000000e+00 : f32
    %113 = vector.broadcast %cst_130 : f32 to vector<8x1024xf32>
    %114 = arith.subf %112, %113 : vector<8x1024xf32>
    %115 = arith.select %109, %107, %114 : vector<8x1024xi1>, vector<8x1024xf32>
    %116 = vector.extract_strided_slice %115 {offsets = [0, 109], sizes = [8, 16], strides = [1, 1]} : vector<8x1024xf32> to vector<8x16xf32>
    %c0_131 = arith.constant 0 : index
    %c0_132 = arith.constant 0 : index
    %c0_133 = arith.constant 0 : index
    %117 = vector.load %arg9[%c0_131, %c0_132, %c0_133] : memref<2x8x256xf32, #tpu.memory_space<vmem>>, vector<1x8x16xf32>
    %118 = vector.shape_cast %117 : vector<1x8x16xf32> to vector<8x16xf32>
    %119 = vector.shape_cast %116 : vector<8x16xf32> to vector<1x8x16xf32>
    tpu.vector_store %arg9[%c0_131, %c0_132, %c0_133], %119 {strides = array<i32>} : memref<2x8x256xf32, #tpu.memory_space<vmem>>, vector<1x8x16xf32>,
    %120 = vector.extract_strided_slice %115 {offsets = [0, 127], sizes = [8, 16], strides = [1, 1]} : vector<8x1024xf32> to vector<8x16xf32>
    %c0_134 = arith.constant 0 : index
    %c0_135 = arith.constant 0 : index
    %c16_136 = arith.constant 16 : index
    %121 = vector.load %arg9[%c0_134, %c0_135, %c16_136] : memref<2x8x256xf32, #tpu.memory_space<vmem>>, vector<1x8x16xf32>
    %122 = vector.shape_cast %121 : vector<1x8x16xf32> to vector<8x16xf32>
    %123 = vector.shape_cast %120 : vector<8x16xf32> to vector<1x8x16xf32>
    tpu.vector_store %arg9[%c0_134, %c0_135, %c16_136], %123 {strides = array<i32>} : memref<2x8x256xf32, #tpu.memory_space<vmem>>, vector<1x8x16xf32>,
    %124 = vector.extract_strided_slice %115 {offsets = [0, 145], sizes = [8, 16], strides = [1, 1]} : vector<8x1024xf32> to vector<8x16xf32>
    %c0_137 = arith.constant 0 : index
    %c0_138 = arith.constant 0 : index
    %c32_139 = arith.constant 32 : index
    %125 = vector.load %arg9[%c0_137, %c0_138, %c32_139] : memref<2x8x256xf32, #tpu.memory_space<vmem>>, vector<1x8x16xf32>
    %126 = vector.shape_cast %125 : vector<1x8x16xf32> to vector<8x16xf32>
    %127 = vector.shape_cast %124 : vector<8x16xf32> to vector<1x8x16xf32>
    tpu.vector_store %arg9[%c0_137, %c0_138, %c32_139], %127 {strides = array<i32>} : memref<2x8x256xf32, #tpu.memory_space<vmem>>, vector<1x8x16xf32>,
    %128 = vector.extract_strided_slice %115 {offsets = [0, 163], sizes = [8, 16], strides = [1, 1]} : vector<8x1024xf32> to vector<8x16xf32>
    %c0_140 = arith.constant 0 : index
    %c0_141 = arith.constant 0 : index
    %c48_142 = arith.constant 48 : index
    %129 = vector.load %arg9[%c0_140, %c0_141, %c48_142] : memref<2x8x256xf32, #tpu.memory_space<vmem>>, vector<1x8x16xf32>
    %130 = vector.shape_cast %129 : vector<1x8x16xf32> to vector<8x16xf32>
    %131 = vector.shape_cast %128 : vector<8x16xf32> to vector<1x8x16xf32>
    tpu.vector_store %arg9[%c0_140, %c0_141, %c48_142], %131 {strides = array<i32>} : memref<2x8x256xf32, #tpu.memory_space<vmem>>, vector<1x8x16xf32>,
    %132 = vector.extract_strided_slice %115 {offsets = [0, 181], sizes = [8, 16], strides = [1, 1]} : vector<8x1024xf32> to vector<8x16xf32>
    %c0_143 = arith.constant 0 : index
    %c0_144 = arith.constant 0 : index
    %c64_145 = arith.constant 64 : index
    %133 = vector.load %arg9[%c0_143, %c0_144, %c64_145] : memref<2x8x256xf32, #tpu.memory_space<vmem>>, vector<1x8x16xf32>
    %134 = vector.shape_cast %133 : vector<1x8x16xf32> to vector<8x16xf32>
    %135 = vector.shape_cast %132 : vector<8x16xf32> to vector<1x8x16xf32>
    tpu.vector_store %arg9[%c0_143, %c0_144, %c64_145], %135 {strides = array<i32>} : memref<2x8x256xf32, #tpu.memory_space<vmem>>, vector<1x8x16xf32>,
    %136 = vector.extract_strided_slice %115 {offsets = [0, 199], sizes = [8, 16], strides = [1, 1]} : vector<8x1024xf32> to vector<8x16xf32>
    %c0_146 = arith.constant 0 : index
    %c0_147 = arith.constant 0 : index
    %c80 = arith.constant 80 : index
    %137 = vector.load %arg9[%c0_146, %c0_147, %c80] : memref<2x8x256xf32, #tpu.memory_space<vmem>>, vector<1x8x16xf32>
    %138 = vector.shape_cast %137 : vector<1x8x16xf32> to vector<8x16xf32>
    %139 = vector.shape_cast %136 : vector<8x16xf32> to vector<1x8x16xf32>
    tpu.vector_store %arg9[%c0_146, %c0_147, %c80], %139 {strides = array<i32>} : memref<2x8x256xf32, #tpu.memory_space<vmem>>, vector<1x8x16xf32>,
    %140 = vector.extract_strided_slice %115 {offsets = [0, 217], sizes = [8, 16], strides = [1, 1]} : vector<8x1024xf32> to vector<8x16xf32>
    %c0_148 = arith.constant 0 : index
    %c0_149 = arith.constant 0 : index
    %c96 = arith.constant 96 : index
    %141 = vector.load %arg9[%c0_148, %c0_149, %c96] : memref<2x8x256xf32, #tpu.memory_space<vmem>>, vector<1x8x16xf32>
    %142 = vector.shape_cast %141 : vector<1x8x16xf32> to vector<8x16xf32>
    %143 = vector.shape_cast %140 : vector<8x16xf32> to vector<1x8x16xf32>
    tpu.vector_store %arg9[%c0_148, %c0_149, %c96], %143 {strides = array<i32>} : memref<2x8x256xf32, #tpu.memory_space<vmem>>, vector<1x8x16xf32>,
    %144 = vector.extract_strided_slice %115 {offsets = [0, 235], sizes = [8, 16], strides = [1, 1]} : vector<8x1024xf32> to vector<8x16xf32>
    %c0_150 = arith.constant 0 : index
    %c0_151 = arith.constant 0 : index
    %c112 = arith.constant 112 : index
    %145 = vector.load %arg9[%c0_150, %c0_151, %c112] : memref<2x8x256xf32, #tpu.memory_space<vmem>>, vector<1x8x16xf32>
    %146 = vector.shape_cast %145 : vector<1x8x16xf32> to vector<8x16xf32>
    %147 = vector.shape_cast %144 : vector<8x16xf32> to vector<1x8x16xf32>
    tpu.vector_store %arg9[%c0_150, %c0_151, %c112], %147 {strides = array<i32>} : memref<2x8x256xf32, #tpu.memory_space<vmem>>, vector<1x8x16xf32>,
    %148 = vector.extract_strided_slice %115 {offsets = [0, 253], sizes = [8, 16], strides = [1, 1]} : vector<8x1024xf32> to vector<8x16xf32>
    %c0_152 = arith.constant 0 : index
    %c0_153 = arith.constant 0 : index
    %c128_154 = arith.constant 128 : index
    %149 = vector.load %arg9[%c0_152, %c0_153, %c128_154] : memref<2x8x256xf32, #tpu.memory_space<vmem>>, vector<1x8x16xf32>
    %150 = vector.shape_cast %149 : vector<1x8x16xf32> to vector<8x16xf32>
    %151 = vector.shape_cast %148 : vector<8x16xf32> to vector<1x8x16xf32>
    tpu.vector_store %arg9[%c0_152, %c0_153, %c128_154], %151 {strides = array<i32>} : memref<2x8x256xf32, #tpu.memory_space<vmem>>, vector<1x8x16xf32>,
    %152 = vector.extract_strided_slice %115 {offsets = [0, 271], sizes = [8, 16], strides = [1, 1]} : vector<8x1024xf32> to vector<8x16xf32>
    %c0_155 = arith.constant 0 : index
    %c0_156 = arith.constant 0 : index
    %c144 = arith.constant 144 : index
    %153 = vector.load %arg9[%c0_155, %c0_156, %c144] : memref<2x8x256xf32, #tpu.memory_space<vmem>>, vector<1x8x16xf32>
    %154 = vector.shape_cast %153 : vector<1x8x16xf32> to vector<8x16xf32>
    %155 = vector.shape_cast %152 : vector<8x16xf32> to vector<1x8x16xf32>
    tpu.vector_store %arg9[%c0_155, %c0_156, %c144], %155 {strides = array<i32>} : memref<2x8x256xf32, #tpu.memory_space<vmem>>, vector<1x8x16xf32>,
    %156 = vector.extract_strided_slice %115 {offsets = [0, 289], sizes = [8, 16], strides = [1, 1]} : vector<8x1024xf32> to vector<8x16xf32>
    %c0_157 = arith.constant 0 : index
    %c0_158 = arith.constant 0 : index
    %c160 = arith.constant 160 : index
    %157 = vector.load %arg9[%c0_157, %c0_158, %c160] : memref<2x8x256xf32, #tpu.memory_space<vmem>>, vector<1x8x16xf32>
    %158 = vector.shape_cast %157 : vector<1x8x16xf32> to vector<8x16xf32>
    %159 = vector.shape_cast %156 : vector<8x16xf32> to vector<1x8x16xf32>
    tpu.vector_store %arg9[%c0_157, %c0_158, %c160], %159 {strides = array<i32>} : memref<2x8x256xf32, #tpu.memory_space<vmem>>, vector<1x8x16xf32>,
    %160 = vector.extract_strided_slice %115 {offsets = [0, 307], sizes = [8, 16], strides = [1, 1]} : vector<8x1024xf32> to vector<8x16xf32>
    %c0_159 = arith.constant 0 : index
    %c0_160 = arith.constant 0 : index
    %c176 = arith.constant 176 : index
    %161 = vector.load %arg9[%c0_159, %c0_160, %c176] : memref<2x8x256xf32, #tpu.memory_space<vmem>>, vector<1x8x16xf32>
    %162 = vector.shape_cast %161 : vector<1x8x16xf32> to vector<8x16xf32>
    %163 = vector.shape_cast %160 : vector<8x16xf32> to vector<1x8x16xf32>
    tpu.vector_store %arg9[%c0_159, %c0_160, %c176], %163 {strides = array<i32>} : memref<2x8x256xf32, #tpu.memory_space<vmem>>, vector<1x8x16xf32>,
    %164 = vector.extract_strided_slice %115 {offsets = [0, 325], sizes = [8, 16], strides = [1, 1]} : vector<8x1024xf32> to vector<8x16xf32>
    %c0_161 = arith.constant 0 : index
    %c0_162 = arith.constant 0 : index
    %c192 = arith.constant 192 : index
    %165 = vector.load %arg9[%c0_161, %c0_162, %c192] : memref<2x8x256xf32, #tpu.memory_space<vmem>>, vector<1x8x16xf32>
    %166 = vector.shape_cast %165 : vector<1x8x16xf32> to vector<8x16xf32>
    %167 = vector.shape_cast %164 : vector<8x16xf32> to vector<1x8x16xf32>
    tpu.vector_store %arg9[%c0_161, %c0_162, %c192], %167 {strides = array<i32>} : memref<2x8x256xf32, #tpu.memory_space<vmem>>, vector<1x8x16xf32>,
    %168 = vector.extract_strided_slice %115 {offsets = [0, 343], sizes = [8, 16], strides = [1, 1]} : vector<8x1024xf32> to vector<8x16xf32>
    %c0_163 = arith.constant 0 : index
    %c0_164 = arith.constant 0 : index
    %c208 = arith.constant 208 : index
    %169 = vector.load %arg9[%c0_163, %c0_164, %c208] : memref<2x8x256xf32, #tpu.memory_space<vmem>>, vector<1x8x16xf32>
    %170 = vector.shape_cast %169 : vector<1x8x16xf32> to vector<8x16xf32>
    %171 = vector.shape_cast %168 : vector<8x16xf32> to vector<1x8x16xf32>
    tpu.vector_store %arg9[%c0_163, %c0_164, %c208], %171 {strides = array<i32>} : memref<2x8x256xf32, #tpu.memory_space<vmem>>, vector<1x8x16xf32>,
    %172 = vector.extract_strided_slice %115 {offsets = [0, 361], sizes = [8, 16], strides = [1, 1]} : vector<8x1024xf32> to vector<8x16xf32>
    %c0_165 = arith.constant 0 : index
    %c0_166 = arith.constant 0 : index
    %c224 = arith.constant 224 : index
    %173 = vector.load %arg9[%c0_165, %c0_166, %c224] : memref<2x8x256xf32, #tpu.memory_space<vmem>>, vector<1x8x16xf32>
    %174 = vector.shape_cast %173 : vector<1x8x16xf32> to vector<8x16xf32>
    %175 = vector.shape_cast %172 : vector<8x16xf32> to vector<1x8x16xf32>
    tpu.vector_store %arg9[%c0_165, %c0_166, %c224], %175 {strides = array<i32>} : memref<2x8x256xf32, #tpu.memory_space<vmem>>, vector<1x8x16xf32>,
    %176 = vector.extract_strided_slice %115 {offsets = [0, 379], sizes = [8, 16], strides = [1, 1]} : vector<8x1024xf32> to vector<8x16xf32>
    %c0_167 = arith.constant 0 : index
    %c0_168 = arith.constant 0 : index
    %c240 = arith.constant 240 : index
    %177 = vector.load %arg9[%c0_167, %c0_168, %c240] : memref<2x8x256xf32, #tpu.memory_space<vmem>>, vector<1x8x16xf32>
    %178 = vector.shape_cast %177 : vector<1x8x16xf32> to vector<8x16xf32>
    %179 = vector.shape_cast %176 : vector<8x16xf32> to vector<1x8x16xf32>
    tpu.vector_store %arg9[%c0_167, %c0_168, %c240], %179 {strides = array<i32>} : memref<2x8x256xf32, #tpu.memory_space<vmem>>, vector<1x8x16xf32>,
    %180 = vector.extract_strided_slice %115 {offsets = [0, 621], sizes = [8, 16], strides = [1, 1]} : vector<8x1024xf32> to vector<8x16xf32>
    %c1_169 = arith.constant 1 : index
    %c0_170 = arith.constant 0 : index
    %c0_171 = arith.constant 0 : index
    %181 = vector.load %arg9[%c1_169, %c0_170, %c0_171] : memref<2x8x256xf32, #tpu.memory_space<vmem>>, vector<1x8x16xf32>
    %182 = vector.shape_cast %181 : vector<1x8x16xf32> to vector<8x16xf32>
    %183 = vector.shape_cast %180 : vector<8x16xf32> to vector<1x8x16xf32>
    tpu.vector_store %arg9[%c1_169, %c0_170, %c0_171], %183 {strides = array<i32>} : memref<2x8x256xf32, #tpu.memory_space<vmem>>, vector<1x8x16xf32>,
    %184 = vector.extract_strided_slice %115 {offsets = [0, 639], sizes = [8, 16], strides = [1, 1]} : vector<8x1024xf32> to vector<8x16xf32>
    %c1_172 = arith.constant 1 : index
    %c0_173 = arith.constant 0 : index
    %c16_174 = arith.constant 16 : index
    %185 = vector.load %arg9[%c1_172, %c0_173, %c16_174] : memref<2x8x256xf32, #tpu.memory_space<vmem>>, vector<1x8x16xf32>
    %186 = vector.shape_cast %185 : vector<1x8x16xf32> to vector<8x16xf32>
    %187 = vector.shape_cast %184 : vector<8x16xf32> to vector<1x8x16xf32>
    tpu.vector_store %arg9[%c1_172, %c0_173, %c16_174], %187 {strides = array<i32>} : memref<2x8x256xf32, #tpu.memory_space<vmem>>, vector<1x8x16xf32>,
    %188 = vector.extract_strided_slice %115 {offsets = [0, 657], sizes = [8, 16], strides = [1, 1]} : vector<8x1024xf32> to vector<8x16xf32>
    %c1_175 = arith.constant 1 : index
    %c0_176 = arith.constant 0 : index
    %c32_177 = arith.constant 32 : index
    %189 = vector.load %arg9[%c1_175, %c0_176, %c32_177] : memref<2x8x256xf32, #tpu.memory_space<vmem>>, vector<1x8x16xf32>
    %190 = vector.shape_cast %189 : vector<1x8x16xf32> to vector<8x16xf32>
    %191 = vector.shape_cast %188 : vector<8x16xf32> to vector<1x8x16xf32>
    tpu.vector_store %arg9[%c1_175, %c0_176, %c32_177], %191 {strides = array<i32>} : memref<2x8x256xf32, #tpu.memory_space<vmem>>, vector<1x8x16xf32>,
    %192 = vector.extract_strided_slice %115 {offsets = [0, 675], sizes = [8, 16], strides = [1, 1]} : vector<8x1024xf32> to vector<8x16xf32>
    %c1_178 = arith.constant 1 : index
    %c0_179 = arith.constant 0 : index
    %c48_180 = arith.constant 48 : index
    %193 = vector.load %arg9[%c1_178, %c0_179, %c48_180] : memref<2x8x256xf32, #tpu.memory_space<vmem>>, vector<1x8x16xf32>
    %194 = vector.shape_cast %193 : vector<1x8x16xf32> to vector<8x16xf32>
    %195 = vector.shape_cast %192 : vector<8x16xf32> to vector<1x8x16xf32>
    tpu.vector_store %arg9[%c1_178, %c0_179, %c48_180], %195 {strides = array<i32>} : memref<2x8x256xf32, #tpu.memory_space<vmem>>, vector<1x8x16xf32>,
    %196 = vector.extract_strided_slice %115 {offsets = [0, 693], sizes = [8, 16], strides = [1, 1]} : vector<8x1024xf32> to vector<8x16xf32>
    %c1_181 = arith.constant 1 : index
    %c0_182 = arith.constant 0 : index
    %c64_183 = arith.constant 64 : index
    %197 = vector.load %arg9[%c1_181, %c0_182, %c64_183] : memref<2x8x256xf32, #tpu.memory_space<vmem>>, vector<1x8x16xf32>
    %198 = vector.shape_cast %197 : vector<1x8x16xf32> to vector<8x16xf32>
    %199 = vector.shape_cast %196 : vector<8x16xf32> to vector<1x8x16xf32>
    tpu.vector_store %arg9[%c1_181, %c0_182, %c64_183], %199 {strides = array<i32>} : memref<2x8x256xf32, #tpu.memory_space<vmem>>, vector<1x8x16xf32>,
    %200 = vector.extract_strided_slice %115 {offsets = [0, 711], sizes = [8, 16], strides = [1, 1]} : vector<8x1024xf32> to vector<8x16xf32>
    %c1_184 = arith.constant 1 : index
    %c0_185 = arith.constant 0 : index
    %c80_186 = arith.constant 80 : index
    %201 = vector.load %arg9[%c1_184, %c0_185, %c80_186] : memref<2x8x256xf32, #tpu.memory_space<vmem>>, vector<1x8x16xf32>
    %202 = vector.shape_cast %201 : vector<1x8x16xf32> to vector<8x16xf32>
    %203 = vector.shape_cast %200 : vector<8x16xf32> to vector<1x8x16xf32>
    tpu.vector_store %arg9[%c1_184, %c0_185, %c80_186], %203 {strides = array<i32>} : memref<2x8x256xf32, #tpu.memory_space<vmem>>, vector<1x8x16xf32>,
    %204 = vector.extract_strided_slice %115 {offsets = [0, 729], sizes = [8, 16], strides = [1, 1]} : vector<8x1024xf32> to vector<8x16xf32>
    %c1_187 = arith.constant 1 : index
    %c0_188 = arith.constant 0 : index
    %c96_189 = arith.constant 96 : index
    %205 = vector.load %arg9[%c1_187, %c0_188, %c96_189] : memref<2x8x256xf32, #tpu.memory_space<vmem>>, vector<1x8x16xf32>
    %206 = vector.shape_cast %205 : vector<1x8x16xf32> to vector<8x16xf32>
    %207 = vector.shape_cast %204 : vector<8x16xf32> to vector<1x8x16xf32>
    tpu.vector_store %arg9[%c1_187, %c0_188, %c96_189], %207 {strides = array<i32>} : memref<2x8x256xf32, #tpu.memory_space<vmem>>, vector<1x8x16xf32>,
    %208 = vector.extract_strided_slice %115 {offsets = [0, 747], sizes = [8, 16], strides = [1, 1]} : vector<8x1024xf32> to vector<8x16xf32>
    %c1_190 = arith.constant 1 : index
    %c0_191 = arith.constant 0 : index
    %c112_192 = arith.constant 112 : index
    %209 = vector.load %arg9[%c1_190, %c0_191, %c112_192] : memref<2x8x256xf32, #tpu.memory_space<vmem>>, vector<1x8x16xf32>
    %210 = vector.shape_cast %209 : vector<1x8x16xf32> to vector<8x16xf32>
    %211 = vector.shape_cast %208 : vector<8x16xf32> to vector<1x8x16xf32>
    tpu.vector_store %arg9[%c1_190, %c0_191, %c112_192], %211 {strides = array<i32>} : memref<2x8x256xf32, #tpu.memory_space<vmem>>, vector<1x8x16xf32>,
    %212 = vector.extract_strided_slice %115 {offsets = [0, 765], sizes = [8, 16], strides = [1, 1]} : vector<8x1024xf32> to vector<8x16xf32>
    %c1_193 = arith.constant 1 : index
    %c0_194 = arith.constant 0 : index
    %c128_195 = arith.constant 128 : index
    %213 = vector.load %arg9[%c1_193, %c0_194, %c128_195] : memref<2x8x256xf32, #tpu.memory_space<vmem>>, vector<1x8x16xf32>
    %214 = vector.shape_cast %213 : vector<1x8x16xf32> to vector<8x16xf32>
    %215 = vector.shape_cast %212 : vector<8x16xf32> to vector<1x8x16xf32>
    tpu.vector_store %arg9[%c1_193, %c0_194, %c128_195], %215 {strides = array<i32>} : memref<2x8x256xf32, #tpu.memory_space<vmem>>, vector<1x8x16xf32>,
    %216 = vector.extract_strided_slice %115 {offsets = [0, 783], sizes = [8, 16], strides = [1, 1]} : vector<8x1024xf32> to vector<8x16xf32>
    %c1_196 = arith.constant 1 : index
    %c0_197 = arith.constant 0 : index
    %c144_198 = arith.constant 144 : index
    %217 = vector.load %arg9[%c1_196, %c0_197, %c144_198] : memref<2x8x256xf32, #tpu.memory_space<vmem>>, vector<1x8x16xf32>
    %218 = vector.shape_cast %217 : vector<1x8x16xf32> to vector<8x16xf32>
    %219 = vector.shape_cast %216 : vector<8x16xf32> to vector<1x8x16xf32>
    tpu.vector_store %arg9[%c1_196, %c0_197, %c144_198], %219 {strides = array<i32>} : memref<2x8x256xf32, #tpu.memory_space<vmem>>, vector<1x8x16xf32>,
    %220 = vector.extract_strided_slice %115 {offsets = [0, 801], sizes = [8, 16], strides = [1, 1]} : vector<8x1024xf32> to vector<8x16xf32>
    %c1_199 = arith.constant 1 : index
    %c0_200 = arith.constant 0 : index
    %c160_201 = arith.constant 160 : index
    %221 = vector.load %arg9[%c1_199, %c0_200, %c160_201] : memref<2x8x256xf32, #tpu.memory_space<vmem>>, vector<1x8x16xf32>
    %222 = vector.shape_cast %221 : vector<1x8x16xf32> to vector<8x16xf32>
    %223 = vector.shape_cast %220 : vector<8x16xf32> to vector<1x8x16xf32>
    tpu.vector_store %arg9[%c1_199, %c0_200, %c160_201], %223 {strides = array<i32>} : memref<2x8x256xf32, #tpu.memory_space<vmem>>, vector<1x8x16xf32>,
    %224 = vector.extract_strided_slice %115 {offsets = [0, 819], sizes = [8, 16], strides = [1, 1]} : vector<8x1024xf32> to vector<8x16xf32>
    %c1_202 = arith.constant 1 : index
    %c0_203 = arith.constant 0 : index
    %c176_204 = arith.constant 176 : index
    %225 = vector.load %arg9[%c1_202, %c0_203, %c176_204] : memref<2x8x256xf32, #tpu.memory_space<vmem>>, vector<1x8x16xf32>
    %226 = vector.shape_cast %225 : vector<1x8x16xf32> to vector<8x16xf32>
    %227 = vector.shape_cast %224 : vector<8x16xf32> to vector<1x8x16xf32>
    tpu.vector_store %arg9[%c1_202, %c0_203, %c176_204], %227 {strides = array<i32>} : memref<2x8x256xf32, #tpu.memory_space<vmem>>, vector<1x8x16xf32>,
    %228 = vector.extract_strided_slice %115 {offsets = [0, 837], sizes = [8, 16], strides = [1, 1]} : vector<8x1024xf32> to vector<8x16xf32>
    %c1_205 = arith.constant 1 : index
    %c0_206 = arith.constant 0 : index
    %c192_207 = arith.constant 192 : index
    %229 = vector.load %arg9[%c1_205, %c0_206, %c192_207] : memref<2x8x256xf32, #tpu.memory_space<vmem>>, vector<1x8x16xf32>
    %230 = vector.shape_cast %229 : vector<1x8x16xf32> to vector<8x16xf32>
    %231 = vector.shape_cast %228 : vector<8x16xf32> to vector<1x8x16xf32>
    tpu.vector_store %arg9[%c1_205, %c0_206, %c192_207], %231 {strides = array<i32>} : memref<2x8x256xf32, #tpu.memory_space<vmem>>, vector<1x8x16xf32>,
    %232 = vector.extract_strided_slice %115 {offsets = [0, 855], sizes = [8, 16], strides = [1, 1]} : vector<8x1024xf32> to vector<8x16xf32>
    %c1_208 = arith.constant 1 : index
    %c0_209 = arith.constant 0 : index
    %c208_210 = arith.constant 208 : index
    %233 = vector.load %arg9[%c1_208, %c0_209, %c208_210] : memref<2x8x256xf32, #tpu.memory_space<vmem>>, vector<1x8x16xf32>
    %234 = vector.shape_cast %233 : vector<1x8x16xf32> to vector<8x16xf32>
    %235 = vector.shape_cast %232 : vector<8x16xf32> to vector<1x8x16xf32>
    tpu.vector_store %arg9[%c1_208, %c0_209, %c208_210], %235 {strides = array<i32>} : memref<2x8x256xf32, #tpu.memory_space<vmem>>, vector<1x8x16xf32>,
    %236 = vector.extract_strided_slice %115 {offsets = [0, 873], sizes = [8, 16], strides = [1, 1]} : vector<8x1024xf32> to vector<8x16xf32>
    %c1_211 = arith.constant 1 : index
    %c0_212 = arith.constant 0 : index
    %c224_213 = arith.constant 224 : index
    %237 = vector.load %arg9[%c1_211, %c0_212, %c224_213] : memref<2x8x256xf32, #tpu.memory_space<vmem>>, vector<1x8x16xf32>
    %238 = vector.shape_cast %237 : vector<1x8x16xf32> to vector<8x16xf32>
    %239 = vector.shape_cast %236 : vector<8x16xf32> to vector<1x8x16xf32>
    tpu.vector_store %arg9[%c1_211, %c0_212, %c224_213], %239 {strides = array<i32>} : memref<2x8x256xf32, #tpu.memory_space<vmem>>, vector<1x8x16xf32>,
    %240 = vector.extract_strided_slice %115 {offsets = [0, 891], sizes = [8, 16], strides = [1, 1]} : vector<8x1024xf32> to vector<8x16xf32>
    %c1_214 = arith.constant 1 : index
    %c0_215 = arith.constant 0 : index
    %c240_216 = arith.constant 240 : index
    %241 = vector.load %arg9[%c1_214, %c0_215, %c240_216] : memref<2x8x256xf32, #tpu.memory_space<vmem>>, vector<1x8x16xf32>
    %242 = vector.shape_cast %241 : vector<1x8x16xf32> to vector<8x16xf32>
    %243 = vector.shape_cast %240 : vector<8x16xf32> to vector<1x8x16xf32>
    tpu.vector_store %arg9[%c1_214, %c0_215, %c240_216], %243 {strides = array<i32>} : memref<2x8x256xf32, #tpu.memory_space<vmem>>, vector<1x8x16xf32>,
    return
  }
  func.func @transform_0(%arg0: i32) -> (i32, i32) {
    %c0_i32 = arith.constant 0 : i32
    %c0_i32_0 = arith.constant 0 : i32
    %c0_i32_1 = arith.constant 0 : i32
    return %c0_i32, %c0_i32_0 : i32, i32
  }
  func.func @transform_1(%arg0: i32) -> (i32, i32) {
    %c0_i32 = arith.constant 0 : i32
    %c0_i32_0 = arith.constant 0 : i32
    %c0_i32_1 = arith.constant 0 : i32
    return %c0_i32, %c0_i32_0 : i32, i32
  }
  func.func @transform_2(%arg0: i32) -> (i32, i32) {
    %c0_i32 = arith.constant 0 : i32
    %c0_i32_0 = arith.constant 0 : i32
    %c0_i32_1 = arith.constant 0 : i32
    return %c0_i32, %c0_i32_0 : i32, i32
  }
  func.func @transform_3(%arg0: i32) -> (i32, i32) {
    %c0_i32 = arith.constant 0 : i32
    %c0_i32_0 = arith.constant 0 : i32
    %c0_i32_1 = arith.constant 0 : i32
    return %c0_i32, %c0_i32_0 : i32, i32
  }
  func.func @transform_4(%arg0: i32) -> (i32, i32) {
    %c0_i32 = arith.constant 0 : i32
    %c0_i32_0 = arith.constant 0 : i32
    %c0_i32_1 = arith.constant 0 : i32
    return %c0_i32, %c0_i32_0 : i32, i32
  }
  func.func @transform_5(%arg0: i32) -> (i32, i32) {
    %c0_i32 = arith.constant 0 : i32
    %c0_i32_0 = arith.constant 0 : i32
    %c0_i32_1 = arith.constant 0 : i32
    return %c0_i32, %c0_i32_0 : i32, i32
  }
  func.func @transform_6(%arg0: i32) -> (i32, i32) {
    %c0_i32 = arith.constant 0 : i32
    %c0_i32_0 = arith.constant 0 : i32
    %c0_i32_1 = arith.constant 0 : i32
    return %c0_i32, %c0_i32_0 : i32, i32
  }
  func.func @transform_7(%arg0: i32) -> (i32, i32) {
    %c0_i32 = arith.constant 0 : i32
    %c0_i32_0 = arith.constant 0 : i32
    %c0_i32_1 = arith.constant 0 : i32
    return %c0_i32, %c0_i32_0 : i32, i32
  }
  func.func @transform_8(%arg0: i32) -> (i32, i32, i32) {
    %c0_i32 = arith.constant 0 : i32
    %c0_i32_0 = arith.constant 0 : i32
    %c0_i32_1 = arith.constant 0 : i32
    %c0_i32_2 = arith.constant 0 : i32
    return %c0_i32, %c0_i32_0, %c0_i32_1 : i32, i32, i32
  }
}

</mosaic_0001>

<bundles_post_ra>
// kernel: tpu_custom_call.1
= control target key start
LH: loop header
LB: loop body
LE: loop exit
PB: predicated region body
PF: predicated region fallthrough
CT: control target
= control target key end

     0   :  { %13 = vsyncpa [#allocation5], 0  ;;  %s4949_s0 = inlined_call_operand.hbm [shape: f32[8,1152], index: 0, kind: input, shape index: {}]   ;;  %s4950_s1 = inlined_call_operand.vmem [shape: f32[8,72], index: 1, kind: input, shape index: {}]   ;;  %s4951_s2 = inlined_call_operand.vmem [shape: f32[8,72], index: 2, kind: input, shape index: {}]   ;;  %s4952_s3 = inlined_call_operand.vmem [shape: f32[8,72], index: 3, kind: input, shape index: {}]   ;;  %s4953_s4 = inlined_call_operand.vmem [shape: f32[8,1], index: 4, kind: input, shape index: {}]   ;;  %s4954_s5 = inlined_call_operand.vmem [shape: f32[8,1], index: 5, kind: input, shape index: {}]   ;;  %s4955_s6 = inlined_call_operand.vmem [shape: f32[8,1], index: 6, kind: input, shape index: {}]   ;;  %s4956_s7 = inlined_call_operand.vmem [shape: f32[1,288], index: 7, kind: input, shape index: {}]   ;;  %s4957_s8 = inlined_call_operand.hbm [shape: f32[2,8,256], index: 8, kind: output, shape index: {}]  }
   0x1   :  { %14 = vsyncpa [#allocation6], 0  ;;  %s3885_s27 = smov [#allocation4]   ;;  %s3837_s9 = scalar_lea.hbm %s4949_s0, 1152 }
   0x2   :  { %s21_s28 = sshll.u32 %s3885_s27, 4  ;;  %p3838_p0 = scmp.ne.s32.totalorder %s4949_s0, %s3837_s9  ;;  %s22_s28 = int_to_ptr.vmem [resolvable:$true] %s21_s28 }
   0x3   :  { %p3841_p1 = scmp.lt.u32.totalorder %s3837_s9, %s4949_s0 }
   0x5   :  { %p3843_p2 = pnand %p3841_p1, %p3838_p0 }
   0x7   :  { %3846 = shalt.err (!%p3843_p2)
}
   0x8   :  { %s3847_s14 = scalar_lea.vmem %s22_s28, 1152  ;;  %p3852_p4 = scmp.lt.s32.totalorder %s22_s28, %s22_s28 }
   0x9   :  { %p3848_p3 = scmp.ne.s32.totalorder %s22_s28, %s3847_s14  ;;  %p3853_p5 = scmp.lt.s32.totalorder %s3847_s14, %s3847_s14 }
   0xb   :  { %p3854_p6 = por %p3853_p5, %p3852_p4 }
   0xd   :  { %p3855_p7 = pnand %p3854_p6, %p3848_p3 }
   0xf   :  { %3858 = shalt.err (!%p3855_p7)
}
  0x10   :  { %24 = dma.hbm_to_vmem [thread:$0]  %s4949_s0, 1152, %s22_s28, [#allocation5]  }
  0x11   :  { %3881 = dma.done.wait [#allocation5], 1152  }
  0x12   :  { %3882 = vsyncadd [#allocation5], 4294966144  ;;  %v3971_v0 = vld [vmem:[#allocation4 + $0x20] sm:$0xff]  ;;  %v3973_v1 = vld [vmem:[#allocation4 + $0x28] sm:$0xff]  ;;  %s3886_s0 = smov 127   ;;  %s3887_s17 = smov 126   ;;  %v972_v16 = vlaneseq }
  0x13   :  { %v3975_v2 = vld [vmem:[#allocation4 + $0x8] sm:$0xff]  ;;  %v3376_v3 = vpack.i.bf16 %v3973_v1, %v3971_v0  ;;  %v3979_v4 = vld [vmem:[#allocation4 + $0x10] sm:$0xff]  ;;  %v3981_v5 = vld [vmem:[#allocation4] sm:$0xff]  ;;  %s3888_s18 = smov 110   ;;  %s3889_s19 = smov 109   ;;  %v3893_v12 = vmov 0.0  }
  0x14   :  { %v3983_v6 = vld [vmem:[#allocation4 + $0x18] sm:$0xff]  ;;  %v3366_v7 = vpack.i.bf16 %v3979_v4, %v3975_v2  ;;  %s3890_s20 = smov 108   ;;  %s3891_s21 = smov 92   ;;  %v4007_v9 = vld [vmem:[#allocation4 + $0x30] sm:$0xff]  ;;  %703 = vmatprep.mubr.f32.mxu0 %v3893_v12  ;;  %43 = vst [vmem:[#allocation2] sm:$0xff] %v3893_v12  ;;  %46 = vst [vmem:[#allocation2 + $0x18] sm:$0xff] %v3893_v12  ;;  %774 = vmatprep.mubr.f32.mxu1 %v3893_v12 }
  0x15   :  { %3377 = vrot.lane.b32.xlu1 %v3376_v3, %s3886_s0  ;;  %v3371_v8 = vpack.i.bf16 %v3983_v6, %v3981_v5  ;;  %s3892_s22 = smov 91   ;;  %v4009_v10 = vld [vmem:[#allocation4 + $0x38] sm:$0xff]  ;;  %50 = vst [vmem:[#allocation2 + $0x38] sm:$0xff] %v3893_v12  ;;  %s3894_s23 = smov 90   ;;  %v76_v13 = vld [vmem:[#allocation4 + $0x40] sm:$0xff]  ;;  %v3491_v14 = vpack.i.bf16 %v4007_v9, %v3973_v1  ;;  %v3895_v17 = vmov 0  }
  0x16   :  { %3367 = vrot.lane.b32.xlu0 %v3366_v7, %s3886_s0  ;;  %v3461_v11 = vpack.i.bf16 %v4009_v10, %v4007_v9  ;;  %v3501_v15 = vpack.i.bf16 %v76_v13, %v4009_v10  ;;  %v973_v18 = vshrl.u32 %v972_v16, 7  ;;  %3647 = vset.pattern.permute.xlu1 %v3895_v17  ;;  %v42_v20 = vld [vmem:[%s4956_s7] sm:$0x7]  ;;  %vm104_vm0 = vcmask 1039360   ;;  %s3898_s11 = smov 125   ;;  %s3899_s12 = smov 3  }
  0x17   :  { %3506 = vset.pattern.permute.xlu0 %v3895_v17  ;;  %v629_v24 = vld [vmem:[%s4953_s4] sm:$0xff]  ;;  %vm165_vm1 = vcmask 1031168   ;;  %vm226_vm2 = vcmask 900096   ;;  %vm287_vm3 = vcmask 891904   ;;  %vm348_vm4 = vcmask 883712   ;;  %s3900_s13 = smov 123  }
  0x18   :  { %v974_v19 = vsub.s32 0, %v973_v18  ;;  %v978_v22 = vsub.s32 1, %v973_v18  ;;  %v982_v23 = vsub.s32 2, %v973_v18  ;;  %vm409_vm5 = vcmask 752640   ;;  %s3901_s14 = smov 1   ;;  %s3902_s15 = smov 121  }
  0x19   :  { %3382 = vrot.lane.b32.xlu1 %v3366_v7, %s3887_s17  ;;  %vm470_vm6 = vcmask 744448   ;;  %vm531_vm7 = vcmask 736256   ;;  %vm635_vm8 = vcmask 588800   ;;  %s3903_s16 = smov 119  }
  0x1a   :  { %3372 = vrot.lane.b32.xlu0 %v3371_v8, %s3886_s0  ;;  %v975_v21 = vrot.slane %v42_v20, %v974_v19  ;;  %v979_v25 = vrot.slane %v42_v20, %v978_v22  ;;  %v983_v26 = vrot.slane %v42_v20, %v982_v23 }
  0x1d   :  { %3392 = vrot.lane.b32.xlu1 %v3371_v8, %s3887_s17 }
  0x1e   :  { %3387 = vrot.lane.b32.xlu0 %v3366_v7, %s3888_s18 }
  0x21   :  { %3402 = vrot.lane.b32.xlu1 %v3371_v8, %s3888_s18 }
  0x22   :  { %3397 = vrot.lane.b32.xlu0 %v3376_v3, %s3887_s17 }
  0x25   :  { %3412 = vrot.lane.b32.xlu1 %v3366_v7, %s3889_s19 }
  0x26   :  { %3407 = vrot.lane.b32.xlu0 %v3376_v3, %s3888_s18 }
  0x29   :  { %3422 = vrot.lane.b32.xlu1 %v3371_v8, %s3889_s19 }
  0x2a   :  { %3417 = vrot.lane.b32.xlu0 %v3366_v7, %s3890_s20 }
  0x2d   :  { %3432 = vrot.lane.b32.xlu1 %v3371_v8, %s3890_s20 }
  0x2e   :  { %3427 = vrot.lane.b32.xlu0 %v3376_v3, %s3889_s19 }
  0x31   :  { %3442 = vrot.lane.b32.xlu1 %v3366_v7, %s3891_s21 }
  0x32   :  { %3437 = vrot.lane.b32.xlu0 %v3376_v3, %s3890_s20 }
  0x35   :  { %3452 = vrot.lane.b32.xlu1 %v3371_v8, %s3891_s21 }
  0x36   :  { %3447 = vrot.lane.b32.xlu0 %v3366_v7, %s3892_s22 }
  0x39   :  { %3457 = vrot.lane.b32.xlu1 %v3371_v8, %s3892_s22 }
  0x3a   :  { %399 = vrot.lane.b32.xlu0 %v3971_v0, %s3891_s21 }
  0x3d   :  { %3462 = vrot.lane.b32.xlu1 %v3461_v11, %s3886_s0 }
  0x3e   :  { %460 = vrot.lane.b32.xlu0 %v3971_v0, %s3892_s22 }
  0x41   :  { %517 = vrot.lane.b32.xlu1 %v3979_v4, %s3894_s23 }
  0x42   :  { %515 = vrot.lane.b32.xlu0 %v3975_v2, %s3894_s23 }
  0x45   :  { %513 = vrot.lane.b32.xlu1 %v3981_v5, %s3894_s23 }
  0x46   :  { %102 = vrot.lane.b32.xlu0 %v76_v13, %s3886_s0 }
  0x49   :  { %521 = vrot.lane.b32.xlu1 %v3971_v0, %s3894_s23 }
  0x4a   :  { %519 = vrot.lane.b32.xlu0 %v3983_v6, %s3894_s23 }
  0x4d   :  { %3472 = vrot.lane.b32.xlu1 %v3461_v11, %s3888_s18 }
  0x4e   :  { %3467 = vrot.lane.b32.xlu0 %v3461_v11, %s3887_s17 }
  0x51   :  { %224 = vrot.lane.b32.xlu1 %v76_v13, %s3888_s18 }
  0x52   :  { %163 = vrot.lane.b32.xlu0 %v76_v13, %s3887_s17 }
  0x55   :  { %3482 = vrot.lane.b32.xlu1 %v3461_v11, %s3890_s20 }
  0x56   :  { %3477 = vrot.lane.b32.xlu0 %v3461_v11, %s3889_s19 }
  0x59   :  { %346 = vrot.lane.b32.xlu1 %v76_v13, %s3890_s20 }
  0x5a   :  { %285 = vrot.lane.b32.xlu0 %v76_v13, %s3889_s19 }
  0x5d   :  { %3492 = vrot.lane.b32.xlu1 %v3491_v14, %s3892_s22 }
  0x5e   :  { %3487 = vrot.lane.b32.xlu0 %v3491_v14, %s3891_s21 }
  0x61   :  { %3502 = vrot.lane.b32.xlu1 %v3501_v15, %s3892_s22 }
  0x62   :  { %3497 = vrot.lane.b32.xlu0 %v3501_v15, %s3891_s21 }
  0x65   :  { %525 = vrot.lane.b32.xlu1 %v4007_v9, %s3894_s23 }
  0x66   :  { %523 = vrot.lane.b32.xlu0 %v3973_v1, %s3894_s23 }
  0x69   :  { %529 = vrot.lane.b32.xlu1 %v76_v13, %s3894_s23 }
  0x6a   :  { %527 = vrot.lane.b32.xlu0 %v4009_v10, %s3894_s23 }
  0x6d   :  { %984 = vrot.lane.b32.xlu1 %v975_v21, %s3889_s19 }
  0x6e   :  { %632 = vperm.xlu0 %3506, %v629_v24  }
  0x71   :  { %986 = vrot.lane.b32.xlu1 %v979_v25, %s3889_s19 }
  0x72   :  { %988 = vrot.lane.b32.xlu0 %v983_v26, %s3889_s19 }
  0x87   :  { %v4066_v27 = vpop.permute.xlu1 %3377 }
  0x88   :  { %v3368_v28 = vpop.permute.xlu0 %3367  ;;  %v3379_v35 = vunpack.i.l.bf16 %v4066_v27 }
  0x89   :  { %v3370_v29 = vunpack.i.h.bf16 %v3368_v28  ;;  %v3369_v30 = vunpack.i.l.bf16 %v3368_v28 }
  0x8b   :  { %v3383_v31 = vpop.permute.xlu1 %3382  ;;  %v106_v32 = vsel %vm104_vm0, %v3369_v30, %v3370_v29 }
  0x8c   :  { %v3373_v33 = vpop.permute.xlu0 %3372  ;;  %v3145_v34 = vpack.c.bf16 %v106_v32, %v3975_v2  ;;  %v3385_v38 = vunpack.i.h.bf16 %v3383_v31  ;;  %v3384_v39 = vunpack.i.l.bf16 %v3383_v31 }
  0x8d   :  { %v3375_v36 = vunpack.i.h.bf16 %v3373_v33  ;;  %v3374_v37 = vunpack.i.l.bf16 %v3373_v33 }
  0x8e   :  { %3146 = vmatprep.subr.bf16.mxu0 %v3145_v34  ;;  %v167_v52 = vsel %vm165_vm1, %v3384_v39, %v3385_v38 }
  0x8f   :  { %v3393_v40 = vpop.permute.xlu1 %3392  ;;  %v105_v41 = vsel %vm104_vm0, %v3374_v37, %v3369_v30  ;;  %v108_v42 = vsel %vm104_vm0, %v3375_v36, %v3379_v35  ;;  %v107_v43 = vsel %vm104_vm0, %v3370_v29, %v3375_v36 }
  0x90   :  { %v3388_v44 = vpop.permute.xlu0 %3387  ;;  %v3147_v45 = vpack.c.bf16 %v105_v41, %v3981_v5  ;;  %v3161_v46 = vpack.c.bf16 %v108_v42, %v3983_v6  ;;  %v3163_v49 = vpack.c.bf16 %v107_v43, %v3979_v4  ;;  %v3394_v50 = vunpack.i.l.bf16 %v3393_v40 }
  0x91   :  { %v3390_v47 = vunpack.i.h.bf16 %v3388_v44  ;;  %v3389_v48 = vunpack.i.l.bf16 %v3388_v44  ;;  %v3395_v63 = vunpack.i.h.bf16 %v3393_v40 }
  0x92   :  { %3148 = vmatpush1.bf16.msra.mxu0 %v3147_v45  ;;  %3162 = vmatprep.subr.bf16.mxu1 %v3161_v46  ;;  %v166_v58 = vsel %vm165_vm1, %v3394_v50, %v3384_v39 }
  0x93   :  { %3164 = vmatpush1.bf16.msra.mxu1 %v3163_v49  ;;  %v3403_v51 = vpop.permute.xlu1 %3402  ;;  %v228_v53 = vsel %vm226_vm2, %v3389_v48, %v3390_v47  ;;  %v168_v15 = vsel %vm165_vm1, %v3385_v38, %v3395_v63 }
  0x94   :  { %v3404_v54 = vunpack.i.l.bf16 %v3403_v51  ;;  %v4081_v55 = vpop.permute.xlu0 %3397  ;;  %v3149_v56 = vpack.c.bf16 %v228_v53, %v167_v52  ;;  %v3405_v57 = vunpack.i.h.bf16 %v3403_v51 }
  0x95   :  { %v3399_v60 = vunpack.i.l.bf16 %v4081_v55 }
  0x96   :  { %3150 = vmatprep.subr.bf16.mxu0 %v3149_v56  ;;  %v227_v59 = vsel %vm226_vm2, %v3404_v54, %v3389_v48  ;;  %v229_v4 = vsel %vm226_vm2, %v3390_v47, %v3405_v57 }
  0x97   :  { %v3413_v61 = vpop.permute.xlu1 %3412  ;;  %v3151_v62 = vpack.c.bf16 %v227_v59, %v166_v58  ;;  %v169_v8 = vsel %vm165_vm1, %v3395_v63, %v3399_v60  ;;  %v3167_v18 = vpack.c.bf16 %v229_v4, %v168_v15 }
  0x98   :  { %v4086_v2 = vpop.permute.xlu0 %3407  ;;  %v3415_v5 = vunpack.i.h.bf16 %v3413_v61  ;;  %v3414_v6 = vunpack.i.l.bf16 %v3413_v61 }
  0x99   :  { %v3409_v3 = vunpack.i.l.bf16 %v4086_v2  ;;  %3152 = vmatpush1.bf16.msra.mxu0 %v3151_v62 }
  0x9a   :  { %v289_v21 = vsel %vm287_vm3, %v3414_v6, %v3415_v5 }
  0x9b   :  { %v3423_v7 = vpop.permute.xlu1 %3422  ;;  %v230_v11 = vsel %vm226_vm2, %v3405_v57, %v3409_v3 }
  0x9c   :  { %v3418_v13 = vpop.permute.xlu0 %3417  ;;  %v3165_v14 = vpack.c.bf16 %v230_v11, %v169_v8  ;;  %v3424_v19 = vunpack.i.l.bf16 %v3423_v7  ;;  %v3425_v33 = vunpack.i.h.bf16 %v3423_v7  ;;  %v3380_v11 = vunpack.i.h.bf16 %v4066_v27 }
  0x9d   :  { %v3420_v16 = vunpack.i.h.bf16 %v3418_v13  ;;  %v3419_v17 = vunpack.i.l.bf16 %v3418_v13 }
  0x9e   :  { %3166 = vmatprep.subr.bf16.mxu1 %v3165_v14  ;;  %v288_v28 = vsel %vm287_vm3, %v3424_v19, %v3414_v6  ;;  %v290_v45 = vsel %vm287_vm3, %v3415_v5, %v3425_v33 }
  0x9f   :  { %3168 = vmatpush1.bf16.msra.mxu1 %v3167_v18  ;;  %v3433_v20 = vpop.permute.xlu1 %3432  ;;  %v350_v22 = vsel %vm348_vm4, %v3419_v17, %v3420_v16 }
  0xa0   :  { %v3434_v23 = vunpack.i.l.bf16 %v3433_v20  ;;  %v4099_v24 = vpop.permute.xlu0 %3427  ;;  %v3153_v25 = vpack.c.bf16 %v350_v22, %v289_v21  ;;  %v3435_v26 = vunpack.i.h.bf16 %v3433_v20  ;;  %v109_v20 = vsel %vm104_vm0, %v3379_v35, %v3380_v11  ;;  %v4138_v22 = vld [vmem:[%s4950_s1] sm:$0xff]  ;;  %s3896_s1 = smov 19  }
  0xa1   :  { %v3429_v30 = vunpack.i.l.bf16 %v4099_v24 }
  0xa2   :  { %3154 = vmatprep.subr.bf16.mxu0 %v3153_v25  ;;  %v349_v29 = vsel %vm348_vm4, %v3434_v23, %v3419_v17  ;;  %v351_v37 = vsel %vm348_vm4, %v3420_v16, %v3435_v26 }
  0xa3   :  { %v3443_v31 = vpop.permute.xlu1 %3442  ;;  %v3155_v32 = vpack.c.bf16 %v349_v29, %v288_v28  ;;  %v291_v41 = vsel %vm287_vm3, %v3425_v33, %v3429_v30  ;;  %v3171_v48 = vpack.c.bf16 %v351_v37, %v290_v45  ;;  %v3179_v29 = vpack.c.bf16 %v109_v20, %v3971_v0 }
  0xa4   :  { %v4104_v34 = vpop.permute.xlu0 %3437  ;;  %v3445_v38 = vunpack.i.h.bf16 %v3443_v31  ;;  %v3444_v39 = vunpack.i.l.bf16 %v3443_v31  ;;  %v3410_v0 = vunpack.i.h.bf16 %v4086_v2 }
  0xa5   :  { %v3439_v36 = vunpack.i.l.bf16 %v4104_v34  ;;  %3156 = vmatpush1.bf16.msra.mxu0 %v3155_v32 }
  0xa6   :  { %v411_v51 = vsel %vm409_vm5, %v3444_v39, %v3445_v38 }
  0xa7   :  { %v3453_v40 = vpop.permute.xlu1 %3452  ;;  %v352_v42 = vsel %vm348_vm4, %v3435_v26, %v3439_v36 }
  0xa8   :  { %v3448_v43 = vpop.permute.xlu0 %3447  ;;  %v3169_v44 = vpack.c.bf16 %v352_v42, %v291_v41  ;;  %v3454_v49 = vunpack.i.l.bf16 %v3453_v40  ;;  %v3455_v58 = vunpack.i.h.bf16 %v3453_v40 }
  0xa9   :  { %v3450_v46 = vunpack.i.h.bf16 %v3448_v43  ;;  %v3449_v47 = vunpack.i.l.bf16 %v3448_v43 }
  0xaa   :  { %3170 = vmatprep.subr.bf16.mxu1 %v3169_v44  ;;  %v410_v59 = vsel %vm409_vm5, %v3454_v49, %v3444_v39  ;;  %v412_v14 = vsel %vm409_vm5, %v3445_v38, %v3455_v58  ;;  %v3400_v38 = vunpack.i.h.bf16 %v4081_v55  ;;  %v3430_v55 = vunpack.i.h.bf16 %v4099_v24 }
  0xab   :  { %3172 = vmatpush1.bf16.msra.mxu1 %v3171_v48  ;;  %v3458_v50 = vpop.permute.xlu1 %3457  ;;  %v472_v52 = vsel %vm470_vm6, %v3449_v47, %v3450_v46 }
  0xac   :  { %v3460_v53 = vunpack.i.h.bf16 %v3458_v50  ;;  %v3459_v54 = vunpack.i.l.bf16 %v3458_v50  ;;  %v4117_v56 = vpop.permute.xlu0 %399  ;;  %v3157_v57 = vpack.c.bf16 %v472_v52, %v411_v51 }
  0xad   :  { %v413_v6 = vsel %vm409_vm5, %v3455_v58, %v4117_v56 }
  0xae   :  { %3158 = vmatprep.subr.bf16.mxu0 %v3157_v57  ;;  %v471_v61 = vsel %vm470_vm6, %v3459_v54, %v3449_v47  ;;  %v473_v5 = vsel %vm470_vm6, %v3450_v46, %v3460_v53  ;;  %v3440_v54 = vunpack.i.h.bf16 %v4104_v34 }
  0xaf   :  { %v3463_v62 = vpop.permute.xlu1 %3462  ;;  %v3159_v63 = vpack.c.bf16 %v471_v61, %v410_v59  ;;  %v3175_v16 = vpack.c.bf16 %v473_v5, %v412_v14 }
  0xb0   :  { %v4121_v4 = vpop.permute.xlu0 %460  ;;  %v3464_v7 = vunpack.i.l.bf16 %v3463_v62  ;;  %v3465_v23 = vunpack.i.h.bf16 %v3463_v62 }
  0xb1   :  { %v474_v8 = vsel %vm470_vm6, %v3460_v53, %v4121_v4  ;;  %3160 = vmatpush1.bf16.msra.mxu0 %v3159_v63 }
  0xb2   :  { %v3173_v13 = vpack.c.bf16 %v474_v8, %v413_v6  ;;  %v110_v19 = vsel %vm104_vm0, %v3380_v11, %v3464_v7  ;;  %v111_v31 = vsel %vm104_vm0, %v3464_v7, %v3465_v23  ;;  %v353_v6 = vsel %vm348_vm4, %v3439_v36, %v3440_v54 }
  0xb3   :  { %v518_v15 = vpop.permute.xlu1 %517  ;;  %v3177_v28 = vpack.c.bf16 %v110_v19, %v3973_v1  ;;  %v3195_v40 = vpack.c.bf16 %v111_v31, %v4007_v9  ;;  %v170_v9 = vsel %vm165_vm1, %v3399_v60, %v3400_v38  ;;  %v292_v8 = vsel %vm287_vm3, %v3429_v30, %v3430_v55 }
  0xb4   :  { %v516_v17 = vpop.permute.xlu0 %515  ;;  %3174 = vmatprep.subr.bf16.mxu1 %v3173_v13  ;;  %v3187_v36 = vpack.c.bf16 %v353_v6, %v292_v8 }
  0xb5   :  { %3176 = vmatpush1.bf16.msra.mxu1 %v3175_v16  ;;  %v533_v18 = vsel %vm531_vm7, %v516_v17, %v518_v15 }
  0xb6   :  { %655 = vmatprep.subr.mxu0 %v533_v18 }
  0xb7   :  { %v514_v21 = vpop.permute.xlu1 %513 }
  0xb8   :  { %v103_v25 = vpop.permute.xlu0 %102  ;;  %v532_v26 = vsel %vm531_vm7, %v514_v21, %v516_v17 }
  0xb9   :  { %656 = vmatpush1.msra.mxu0 %v532_v26  ;;  %v112_v27 = vsel %vm104_vm0, %v3465_v23, %v103_v25 }
  0xba   :  { %3109 = vmatmul.mubr.msk.f32.vlgmr.msra.gmra.mrb[0].mxu0 %vm635_vm8, %v4138_v22  ;;  %3178 = vmatprep.subr.bf16.mxu0 %v3177_v28  ;;  %v3193_v37 = vpack.c.bf16 %v112_v27, %v4009_v10  ;;  %v231_v10 = vsel %vm226_vm2, %v3409_v3, %v3410_v0 }
  0xbb   :  { %v4146_v35 = vpop.permute.xlu1 %521  ;;  %3180 = vmatpush1.bf16.msra.mxu0 %v3179_v29  ;;  %845 = vmatprep.mubr.f32.mxu0 %v3893_v12  ;;  %v3183_v3 = vpack.c.bf16 %v231_v10, %v170_v9 }
  0xbc   :  { %v520_v32 = vpop.permute.xlu0 %519 }
  0xbd   :  { %v535_v1 = vsel %vm531_vm7, %v520_v32, %v4146_v35  ;;  %v534_v33 = vsel %vm531_vm7, %v518_v15, %v520_v32 }
  0xbe   :  { %726 = vmatprep.subr.mxu1 %v535_v1 }
  0xbf   :  { %727 = vmatpush1.msra.mxu1 %v534_v33  ;;  %v3473_v39 = vpop.permute.xlu1 %3472 }
  0xc0   :  { %v3475_v41 = vunpack.i.h.bf16 %v3473_v39  ;;  %v3474_v42 = vunpack.i.l.bf16 %v3473_v39  ;;  %v3468_v43 = vpop.permute.xlu0 %3467  ;;  %3110 = vmatmul.mubr.msk.f32.vlgmr.msra.gmra.mrb[0].mxu1 %vm635_vm8, %v4138_v22  ;;  %3194 = vmatprep.subr.bf16.mxu1 %v3193_v37 }
  0xc1   :  { %v3470_v44 = vunpack.i.h.bf16 %v3468_v43  ;;  %v3469_v45 = vunpack.i.l.bf16 %v3468_v43  ;;  %3196 = vmatpush1.bf16.msra.mxu1 %v3195_v40  ;;  %916 = vmatprep.mubr.f32.mxu1 %v3893_v12 }
  0xc2   :  { %v232_v46 = vsel %vm226_vm2, %v3410_v0, %v3474_v42  ;;  %v233_v49 = vsel %vm226_vm2, %v3474_v42, %v3475_v41 }
  0xc3   :  { %v225_v47 = vpop.permute.xlu1 %224  ;;  %v171_v48 = vsel %vm165_vm1, %v3400_v38, %v3469_v45  ;;  %v172_v50 = vsel %vm165_vm1, %v3469_v45, %v3470_v44 }
  0xc4   :  { %v234_v51 = vsel %vm226_vm2, %v3475_v41, %v225_v47  ;;  %v164_v52 = vpop.permute.xlu0 %163  ;;  %v3181_v53 = vpack.c.bf16 %v232_v46, %v171_v48  ;;  %v3199_v58 = vpack.c.bf16 %v233_v49, %v172_v50 }
  0xc5   :  { %v173_v2 = vsel %vm165_vm1, %v3470_v44, %v164_v52 }
  0xc6   :  { %v3197_v57 = vpack.c.bf16 %v234_v51, %v173_v2  ;;  %3182 = vmatprep.subr.bf16.mxu0 %v3181_v53 }
  0xc7   :  { %3184 = vmatpush1.bf16.msra.mxu0 %v3183_v3  ;;  %v3483_v60 = vpop.permute.xlu1 %3482 }
  0xc8   :  { %v3485_v59 = vunpack.i.h.bf16 %v3483_v60  ;;  %v3484_v61 = vunpack.i.l.bf16 %v3483_v60  ;;  %v3478_v62 = vpop.permute.xlu0 %3477  ;;  %3198 = vmatprep.subr.bf16.mxu1 %v3197_v57 }
  0xc9   :  { %v3480_v63 = vunpack.i.h.bf16 %v3478_v62  ;;  %v3479_v5 = vunpack.i.l.bf16 %v3478_v62  ;;  %3200 = vmatpush1.bf16.msra.mxu1 %v3199_v58 }
  0xca   :  { %v354_v7 = vsel %vm348_vm4, %v3440_v54, %v3484_v61  ;;  %v355_v14 = vsel %vm348_vm4, %v3484_v61, %v3485_v59 }
  0xcb   :  { %v347_v11 = vpop.permute.xlu1 %346  ;;  %v293_v13 = vsel %vm287_vm3, %v3430_v55, %v3479_v5  ;;  %v294_v15 = vsel %vm287_vm3, %v3479_v5, %v3480_v63 }
  0xcc   :  { %v356_v16 = vsel %vm348_vm4, %v3485_v59, %v347_v11  ;;  %v286_v17 = vpop.permute.xlu0 %285  ;;  %v3185_v18 = vpack.c.bf16 %v354_v7, %v293_v13  ;;  %v3203_v20 = vpack.c.bf16 %v355_v14, %v294_v15 }
  0xcd   :  { %v295_v34 = vsel %vm287_vm3, %v3480_v63, %v286_v17 }
  0xce   :  { %v3201_v19 = vpack.c.bf16 %v356_v16, %v295_v34  ;;  %3186 = vmatprep.subr.bf16.mxu0 %v3185_v18 }
  0xcf   :  { %3188 = vmatpush1.bf16.msra.mxu0 %v3187_v36  ;;  %v3493_v24 = vpop.permute.xlu1 %3492 }
  0xd0   :  { %v3495_v30 = vunpack.i.h.bf16 %v3493_v24  ;;  %v3494_v21 = vunpack.i.l.bf16 %v3493_v24  ;;  %v3488_v23 = vpop.permute.xlu0 %3487  ;;  %3202 = vmatprep.subr.bf16.mxu1 %v3201_v19 }
  0xd1   :  { %v3490_v25 = vunpack.i.h.bf16 %v3488_v23  ;;  %v3489_v26 = vunpack.i.l.bf16 %v3488_v23  ;;  %3204 = vmatpush1.bf16.msra.mxu1 %v3203_v20 }
  0xd2   :  { %v475_v28 = vsel %vm470_vm6, %v4121_v4, %v3494_v21  ;;  %v476_v29 = vsel %vm470_vm6, %v3494_v21, %v3495_v30 }
  0xd3   :  { %v414_v27 = vsel %vm409_vm5, %v4117_v56, %v3489_v26  ;;  %v3503_v31 = vpop.permute.xlu1 %3502  ;;  %v415_v32 = vsel %vm409_vm5, %v3489_v26, %v3490_v25 }
  0xd4   :  { %v3505_v1 = vunpack.i.h.bf16 %v3503_v31  ;;  %v3504_v33 = vunpack.i.l.bf16 %v3503_v31  ;;  %v3498_v0 = vpop.permute.xlu0 %3497  ;;  %v3189_v37 = vpack.c.bf16 %v476_v29, %v415_v32  ;;  %v3191_v38 = vpack.c.bf16 %v475_v28, %v414_v27 }
  0xd5   :  { %v3500_v39 = vunpack.i.h.bf16 %v3498_v0  ;;  %v3499_v40 = vunpack.i.l.bf16 %v3498_v0 }
  0xd6   :  { %v477_v41 = vsel %vm470_vm6, %v3495_v30, %v3504_v33  ;;  %3190 = vmatprep.subr.bf16.mxu0 %v3189_v37  ;;  %v478_v4 = vsel %vm470_vm6, %v3504_v33, %v3505_v1 }
  0xd7   :  { %v416_v42 = vsel %vm409_vm5, %v3490_v25, %v3499_v40  ;;  %3192 = vmatpush1.bf16.msra.mxu0 %v3191_v38  ;;  %v526_v43 = vpop.permute.xlu1 %525  ;;  %v417_v56 = vsel %vm409_vm5, %v3499_v40, %v3500_v39 }
  0xd8   :  { %v524_v44 = vpop.permute.xlu0 %523  ;;  %v3205_v45 = vpack.c.bf16 %v478_v4, %v417_v56  ;;  %v3207_v10 = vpack.c.bf16 %v477_v41, %v416_v42 }
  0xd9   :  { %v537_v46 = vsel %vm531_vm7, %v524_v44, %v526_v43  ;;  %v536_v9 = vsel %vm531_vm7, %v4146_v35, %v524_v44 }
  0xda   :  { %797 = vmatprep.subr.mxu0 %v537_v46  ;;  %3206 = vmatprep.subr.bf16.mxu1 %v3205_v45 }
  0xdb   :  { %798 = vmatpush1.msra.mxu0 %v536_v9  ;;  %3208 = vmatpush1.bf16.msra.mxu1 %v3207_v10  ;;  %v530_v47 = vpop.permute.xlu1 %529 }
  0xdc   :  { %v528_v48 = vpop.permute.xlu0 %527  ;;  %3111 = vmatmul.mubr.msk.f32.vlgmr.msra.gmra.mrb[2].mxu0 %vm635_vm8, %v4138_v22 }
  0xdd   :  { %v539_v49 = vsel %vm531_vm7, %v528_v48, %v530_v47  ;;  %v538_v50 = vsel %vm531_vm7, %v526_v43, %v528_v48  ;;  %1690 = vmatprep.mubr.f32.mxu0 %v3893_v12 }
  0xde   :  { %868 = vmatprep.subr.mxu1 %v539_v49 }
  0xdf   :  { %869 = vmatpush1.msra.mxu1 %v538_v50  ;;  %v4207_v6 = vpop.permute.xlu1 %984 }
  0xe0   :  { %3112 = vmatmul.mubr.msk.f32.vlgmr.msra.gmra.mrb[2].mxu1 %vm635_vm8, %v4138_v22 }
  0xe1   :  { %1761 = vmatprep.mubr.f32.mxu1 %v3893_v12 }
  0xe3   :  { %v987_v13 = vpop.permute.xlu1 %986 }
  0xe4   :  { %v4213_v16 = vsel %vm287_vm3, %v4207_v6, %v987_v13 }
  0xed   :  { %v633_v35 = vpop.permute.xlu0 %632 }
  0xf1   :  { %v4222_v19 = vpop.permute.xlu0 %988 }
  0xf2   :  { %v4229_v23 = vsel %vm287_vm3, %v987_v13, %v4222_v19 }
 0x18d   :  { %v705_v51 = vpop.f32.mrb[0].mxu0 }
 0x18e   :  { %v706_v52 = vadd.f32 %v705_v51, %v633_v35  ;;  %v707_v53 = vpop.f32.mrb[1].mxu0 }
 0x18f   :  { %v708_v2 = vadd.f32 %v707_v53, %v633_v35 }
 0x190   :  { %v931_v3 = vmin.f32 %v706_v52, 0.0  ;;  %vm923_vm9 = vcmp.gt.f32.partialorder %v706_v52, 0.0 }
 0x191   :  { %v932_v54 = vmin.f32 %v708_v2, 0.0  ;;  %vm924_vm10 = vcmp.gt.f32.partialorder %v708_v2, 0.0 }
 0x192   :  { %v939_v57 = vmul.f32 1.442695, %v931_v3 }
 0x193   :  { %v941_v55 = vmul.f32 1.442695, %v932_v54  ;;  %v776_v60 = vpop.f32.mrb[0].mxu1 }
 0x194   :  { %3788 = vpow2.f32 %v939_v57  ;;  %v777_v58 = vadd.f32 %v776_v60, %v633_v35  ;;  %v778_v59 = vpop.f32.mrb[1].mxu1 }
 0x195   :  { %3790 = vpow2.f32 %v941_v55  ;;  %v779_v61 = vadd.f32 %v778_v59, %v633_v35 }
 0x196   :  { %v933_v62 = vmin.f32 %v777_v58, 0.0  ;;  %vm925_vm11 = vcmp.gt.f32.partialorder %v777_v58, 0.0 }
 0x197   :  { %v934_v63 = vmin.f32 %v779_v61, 0.0  ;;  %vm926_vm12 = vcmp.gt.f32.partialorder %v779_v61, 0.0 }
 0x198   :  { %v943_v22 = vmul.f32 1.442695, %v933_v62 }
 0x199   :  { %v945_v5 = vmul.f32 1.442695, %v934_v63 }
 0x19a   :  { %3792 = vpow2.f32 %v943_v22 }
 0x19b   :  { %3794 = vpow2.f32 %v945_v5 }
 0x19e   :  { %v3789_v7 = vpop.eup %3788 }
 0x19f   :  { %v3791_v8 = vpop.eup %3790  ;;  %v3113_v11 = vadd.f32 -1.0, %v3789_v7 }
 0x1a0   :  { %v3114_v14 = vadd.f32 -1.0, %v3791_v8 }
 0x1a1   :  { %v4209_v15 = vsel %vm923_vm9, %v706_v52, %v3113_v11 }
 0x1a2   :  { %v996_v17 = vmul.f32 %v4207_v6, %v4209_v15  ;;  %v4217_v18 = vsel %vm924_vm10, %v708_v2, %v3114_v14  ;;  %vm1012_vm10 = vcmask 154624  }
 0x1a3   :  { %v997_v34 = vmul.f32 %v4213_v16, %v4217_v18 }
 0x1a4   :  { %v3793_v36 = vpop.eup %3792  ;;  %1004 = vrot.lane.b32.xlu1 %v996_v17, %s3896_s1 }
 0x1a5   :  { %v3795_v24 = vpop.eup %3794  ;;  %v3115_v20 = vadd.f32 -1.0, %v3793_v36  ;;  %1006 = vrot.lane.b32.xlu0 %v997_v34, %s3896_s1 }
 0x1a6   :  { %v3116_v30 = vadd.f32 -1.0, %v3795_v24 }
 0x1a7   :  { %v4225_v21 = vsel %vm925_vm11, %v777_v58, %v3115_v20  ;;  %vm1021_vm11 = vcmask 261120  }
 0x1a8   :  { %v998_v25 = vmul.f32 %v4229_v23, %v4225_v21  ;;  %v4233_v26 = vsel %vm926_vm12, %v779_v61, %v3116_v30 }
 0x1a9   :  { %v999_v28 = vmul.f32 %v4222_v19, %v4233_v26 }
 0x1aa   :  { %1008 = vrot.lane.b32.xlu1 %v998_v25, %s3896_s1 }
 0x1ab   :  { %1010 = vrot.lane.b32.xlu0 %v999_v28, %s3896_s1  ;;  %v1617_v28 = vld [vmem:[%s4954_s5] sm:$0xff] }
 0x1af   :  { %v847_v29 = vpop.f32.mrb[2].mxu0 }
 0x1b0   :  { %v848_v27 = vadd.f32 %v847_v29, %v633_v35  ;;  %v849_v31 = vpop.f32.mrb[3].mxu0 }
 0x1b1   :  { %v850_v32 = vadd.f32 %v849_v31, %v633_v35 }
 0x1b2   :  { %v935_v1 = vmin.f32 %v848_v27, 0.0  ;;  %vm927_vm13 = vcmp.gt.f32.partialorder %v848_v27, 0.0 }
 0x1b3   :  { %v936_v33 = vmin.f32 %v850_v32, 0.0  ;;  %v918_v0 = vpop.f32.mrb[2].mxu1  ;;  %vm928_vm14 = vcmp.gt.f32.partialorder %v850_v32, 0.0 }
 0x1b4   :  { %v947_v37 = vmul.f32 1.442695, %v935_v1  ;;  %v919_v38 = vadd.f32 %v918_v0, %v633_v35  ;;  %v920_v39 = vpop.f32.mrb[3].mxu1 }
 0x1b5   :  { %v949_v40 = vmul.f32 1.442695, %v936_v33  ;;  %v921_v41 = vadd.f32 %v920_v39, %v633_v35 }
 0x1b6   :  { %3796 = vpow2.f32 %v947_v37  ;;  %v937_v4 = vmin.f32 %v919_v38, 0.0  ;;  %vm929_vm15 = vcmp.gt.f32.partialorder %v919_v38, 0.0 }
 0x1b7   :  { %3798 = vpow2.f32 %v949_v40  ;;  %v938_v42 = vmin.f32 %v921_v41, 0.0  ;;  %vm930_vm9 = vcmp.gt.f32.partialorder %v921_v41, 0.0 }
 0x1b8   :  { %v951_v43 = vmul.f32 1.442695, %v937_v4 }
 0x1b9   :  { %v953_v56 = vmul.f32 1.442695, %v938_v42 }
 0x1ba   :  { %3800 = vpow2.f32 %v951_v43 }
 0x1bb   :  { %3802 = vpow2.f32 %v953_v56 }
 0x1c0   :  { %v3797_v44 = vpop.eup %3796 }
 0x1c1   :  { %v3799_v45 = vpop.eup %3798  ;;  %v3117_v10 = vadd.f32 -1.0, %v3797_v44 }
 0x1c2   :  { %v3118_v46 = vadd.f32 -1.0, %v3799_v45 }
 0x1c3   :  { %v4239_v9 = vsel %vm927_vm13, %v848_v27, %v3117_v10 }
 0x1c4   :  { %v3801_v47 = vpop.eup %3800  ;;  %v1023_v48 = vmul.f32 %v4207_v6, %v4239_v9  ;;  %v4243_v49 = vsel %vm928_vm14, %v850_v32, %v3118_v46 }
 0x1c5   :  { %v3803_v50 = vpop.eup %3802  ;;  %v3119_v35 = vadd.f32 -1.0, %v3801_v47  ;;  %v1024_v51 = vmul.f32 %v4213_v16, %v4243_v49 }
 0x1c6   :  { %v3120_v52 = vadd.f32 -1.0, %v3803_v50  ;;  %1031 = vrot.lane.b32.xlu1 %v1023_v48, %s3896_s1 }
 0x1c7   :  { %1033 = vrot.lane.b32.xlu0 %v1024_v51, %s3896_s1  ;;  %v4249_v53 = vsel %vm929_vm15, %v919_v38, %v3119_v35 }
 0x1c8   :  { %v1025_v2 = vmul.f32 %v4229_v23, %v4249_v53  ;;  %v4253_v3 = vsel %vm930_vm9, %v921_v41, %v3120_v52 }
 0x1c9   :  { %v1026_v54 = vmul.f32 %v4222_v19, %v4253_v3 }
 0x1ca   :  { %1035 = vrot.lane.b32.xlu1 %v1025_v2, %s3896_s1 }
 0x1cb   :  { %1037 = vrot.lane.b32.xlu0 %v1026_v54, %s3896_s1 }
 0x1ce   :  { %1390 = vrot.lane.b32.xlu1 %v3893_v12, %s3891_s21 }
 0x1cf   :  { %1502 = vrot.lane.b32.xlu0 %v3893_v12, %s3894_s23 }
 0x1d2   :  { %1450 = vrot.lane.b32.xlu1 %v3893_v12, %s3892_s22 }
 0x1d3   :  { %1510 = vrot.lane.b32.xlu0 %v3893_v12, %s3894_s23 }
 0x1d6   :  { %1098 = vrot.lane.b32.xlu1 %v3893_v12, %s3886_s0 }
 0x1d7   :  { %1218 = vrot.lane.b32.xlu0 %v3893_v12, %s3888_s18 }
 0x1da   :  { %1158 = vrot.lane.b32.xlu1 %v3893_v12, %s3887_s17 }
 0x216   :  { %v1005_v57 = vpop.permute.xlu1 %1004 }
 0x217   :  { %v1007_v55 = vpop.permute.xlu0 %1006 }
 0x218   :  { %v4274_v58 = vsel %vm1012_vm10, %v1005_v57, %v1007_v55 }
 0x21c   :  { %v1009_v60 = vpop.permute.xlu1 %1008 }
 0x21d   :  { %v4277_v59 = vsel %vm1012_vm10, %v1007_v55, %v1009_v60  ;;  %v1011_v61 = vpop.permute.xlu0 %1010 }
 0x21e   :  { %v1015_v62 = vsel %vm1012_vm10, %v1009_v60, %v1011_v61  ;;  %v3507_v63 = vpack.i.bf16 %v4277_v59, %v4274_v58 }
 0x21f   :  { %1022 = vst.msk [vmem:[#allocation2 + $0x18] sm:$0xff] %vm1021_vm11, %v1015_v62 }
 0x220   :  { %3508 = vrot.lane.b32.xlu1 %v3507_v63, %s3886_s0 }
 0x224   :  { %3523 = vrot.lane.b32.xlu1 %v3507_v63, %s3888_s18 }
 0x226   :  { %v4285_v22 = vld [vmem:[#allocation2 + $0x18] sm:$0xff] }
 0x227   :  { %v3512_v5 = vpack.i.bf16 %v4285_v22, %v3893_v12 }
 0x228   :  { %3543 = vrot.lane.b32.xlu1 %v3507_v63, %s3890_s20 }
 0x229   :  { %3513 = vrot.lane.b32.xlu0 %v3512_v5, %s3886_s0 }
 0x22c   :  { %3563 = vrot.lane.b32.xlu1 %v3507_v63, %s3892_s22 }
 0x22d   :  { %3518 = vrot.lane.b32.xlu0 %v3507_v63, %s3887_s17 }
 0x230   :  { %1504 = vrot.lane.b32.xlu1 %v4274_v58, %s3894_s23 }
 0x231   :  { %3528 = vrot.lane.b32.xlu0 %v3512_v5, %s3887_s17 }
 0x234   :  { %1508 = vrot.lane.b32.xlu1 %v4285_v22, %s3894_s23 }
 0x235   :  { %3533 = vrot.lane.b32.xlu0 %v3512_v5, %s3888_s18 }
 0x238   :  { %v1032_v7 = vpop.permute.xlu1 %1031 }
 0x239   :  { %v1034_v8 = vpop.permute.xlu0 %1033  ;;  %3538 = vrot.lane.b32.xlu0 %v3507_v63, %s3889_s19 }
 0x23a   :  { %v4301_v11 = vsel %vm1012_vm10, %v1032_v7, %v1034_v8 }
 0x23b   :  { %v3577_v13 = vpack.i.bf16 %v4301_v11, %v3893_v12 }
 0x23c   :  { %v1036_v14 = vpop.permute.xlu1 %1035 }
 0x23d   :  { %v1038_v17 = vpop.permute.xlu0 %1037  ;;  %3548 = vrot.lane.b32.xlu0 %v3512_v5, %s3889_s19  ;;  %3578 = vrot.lane.b32.xlu1 %v3577_v13, %s3886_s0  ;;  %v4324_v24 = vsel %vm1012_vm10, %v1034_v8, %v1036_v14 }
 0x23e   :  { %v1041_v34 = vsel %vm1012_vm10, %v1036_v14, %v1038_v17  ;;  %v3627_v30 = vpack.i.bf16 %v4324_v24, %v4301_v11 }
 0x23f   :  { %1047 = vst.msk [vmem:[#allocation2 + $0x38] sm:$0xff] %vm1021_vm11, %v1041_v34 }
 0x240   :  { %v4354_v29 = vpop.permute.xlu1 %1390 }
 0x241   :  { %3553 = vrot.lane.b32.xlu0 %v3512_v5, %s3890_s20  ;;  %3583 = vrot.lane.b32.xlu1 %v3577_v13, %s3887_s17  ;;  %v4360_v32 = vpop.permute.xlu0 %1502 }
 0x244   :  { %v4356_v27 = vpop.permute.xlu1 %1450 }
 0x245   :  { %3558 = vrot.lane.b32.xlu0 %v3507_v63, %s3891_s21  ;;  %3588 = vrot.lane.b32.xlu1 %v3577_v13, %s3888_s18  ;;  %v4364_v33 = vpop.permute.xlu0 %1510 }
 0x246   :  { %v4317_v36 = vld [vmem:[#allocation2 + $0x38] sm:$0xff] }
 0x247   :  { %v3602_v20 = vpack.i.bf16 %v4317_v36, %v4324_v24  ;;  %v3637_v25 = vpack.i.bf16 %v3893_v12, %v4317_v36 }
 0x248   :  { %v4358_v31 = vpop.permute.xlu1 %1098 }
 0x249   :  { %3568 = vrot.lane.b32.xlu0 %v3512_v5, %s3891_s21  ;;  %3593 = vrot.lane.b32.xlu1 %v3577_v13, %s3889_s19  ;;  %v4366_v39 = vpop.permute.xlu0 %1218 }
 0x24c   :  { %v4362_v1 = vpop.permute.xlu1 %1158 }
 0x24d   :  { %3573 = vrot.lane.b32.xlu0 %v3512_v5, %s3892_s22  ;;  %3598 = vrot.lane.b32.xlu1 %v3577_v13, %s3890_s20 }
 0x251   :  { %1506 = vrot.lane.b32.xlu0 %v4277_v59, %s3894_s23  ;;  %1278 = vrot.lane.b32.xlu1 %v3893_v12, %s3889_s19 }
 0x255   :  { %1338 = vrot.lane.b32.xlu0 %v3893_v12, %s3890_s20  ;;  %3608 = vrot.lane.b32.xlu1 %v3602_v20, %s3887_s17 }
 0x259   :  { %3603 = vrot.lane.b32.xlu0 %v3602_v20, %s3886_s0  ;;  %3618 = vrot.lane.b32.xlu1 %v3602_v20, %s3889_s19 }
 0x25d   :  { %3613 = vrot.lane.b32.xlu0 %v3602_v20, %s3888_s18  ;;  %3628 = vrot.lane.b32.xlu1 %v3627_v30, %s3891_s21 }
 0x261   :  { %3623 = vrot.lane.b32.xlu0 %v3602_v20, %s3890_s20  ;;  %3638 = vrot.lane.b32.xlu1 %v3637_v25, %s3891_s21 }
 0x265   :  { %3633 = vrot.lane.b32.xlu0 %v3627_v30, %s3892_s22  ;;  %1512 = vrot.lane.b32.xlu1 %v4301_v11, %s3894_s23 }
 0x269   :  { %3643 = vrot.lane.b32.xlu0 %v3637_v25, %s3892_s22  ;;  %1516 = vrot.lane.b32.xlu1 %v4317_v36, %s3894_s23 }
 0x26d   :  { %1514 = vrot.lane.b32.xlu0 %v4324_v24, %s3894_s23  ;;  %1620 = vperm.xlu1 %3647, %v1617_v28  }
 0x271   :  { %1518 = vrot.lane.b32.xlu0 %v3893_v12, %s3894_s23 }
 0x292   :  { %v3509_v0 = vpop.permute.xlu1 %3508 }
 0x293   :  { %v3511_v37 = vunpack.i.h.bf16 %v3509_v0  ;;  %v3510_v38 = vunpack.i.l.bf16 %v3509_v0 }
 0x295   :  { %v1101_v40 = vsel %vm104_vm0, %v3510_v38, %v3511_v37 }
 0x296   :  { %v4369_v41 = vpop.permute.xlu1 %3523  ;;  %v3209_v4 = vpack.c.bf16 %v1101_v40, %v4274_v58 }
 0x297   :  { %v3526_v45 = vunpack.i.h.bf16 %v4369_v41  ;;  %v3525_v10 = vunpack.i.l.bf16 %v4369_v41 }
 0x298   :  { %3210 = vmatprep.subr.bf16.mxu0 %v3209_v4 }
 0x299   :  { %v1221_v52 = vsel %vm226_vm2, %v3525_v10, %v3526_v45 }
 0x29a   :  { %v4372_v42 = vpop.permute.xlu1 %3543 }
 0x29b   :  { %v3514_v43 = vpop.permute.xlu0 %3513  ;;  %v3545_v61 = vunpack.i.l.bf16 %v4372_v42 }
 0x29c   :  { %v3515_v56 = vunpack.i.l.bf16 %v3514_v43  ;;  %v3516_v17 = vunpack.i.h.bf16 %v3514_v43 }
 0x29e   :  { %v1100_v44 = vsel %vm104_vm0, %v3515_v56, %v3510_v38  ;;  %v4380_v48 = vpop.permute.xlu1 %3563  ;;  %v1102_v38 = vsel %vm104_vm0, %v3511_v37, %v3516_v17 }
 0x29f   :  { %v4377_v46 = vpop.permute.xlu0 %3518  ;;  %v3211_v47 = vpack.c.bf16 %v1100_v44, %v3893_v12  ;;  %v3546_v12 = vunpack.i.h.bf16 %v4372_v42  ;;  %v3565_v37 = vunpack.i.l.bf16 %v4380_v48 }
 0x2a0   :  { %v3521_v50 = vunpack.i.h.bf16 %v4377_v46  ;;  %v3520_v35 = vunpack.i.l.bf16 %v4377_v46  ;;  %v3566_v46 = vunpack.i.h.bf16 %v4380_v48 }
 0x2a1   :  { %3212 = vmatpush1.bf16.msra.mxu0 %v3211_v47  ;;  %v1341_v20 = vsel %vm348_vm4, %v3545_v61, %v3546_v12 }
 0x2a2   :  { %v1161_v51 = vsel %vm165_vm1, %v3520_v35, %v3521_v50  ;;  %v4386_v57 = vpop.permute.xlu1 %1504 }
 0x2a3   :  { %v3529_v2 = vpop.permute.xlu0 %3528  ;;  %v3213_v54 = vpack.c.bf16 %v1221_v52, %v1161_v51 }
 0x2a4   :  { %v3530_v55 = vunpack.i.l.bf16 %v3529_v2 }
 0x2a5   :  { %3214 = vmatprep.subr.bf16.mxu0 %v3213_v54  ;;  %v3531_v54 = vunpack.i.h.bf16 %v3529_v2 }
 0x2a6   :  { %v1160_v62 = vsel %vm165_vm1, %v3530_v55, %v3520_v35  ;;  %v4394_v8 = vpop.permute.xlu1 %1508 }
 0x2a7   :  { %v3534_v60 = vpop.permute.xlu0 %3533 }
 0x2a8   :  { %v3535_v58 = vunpack.i.l.bf16 %v3534_v60  ;;  %v3536_v47 = vunpack.i.h.bf16 %v3534_v60 }
 0x2aa   :  { %v1220_v63 = vsel %vm226_vm2, %v3535_v58, %v3525_v10  ;;  %v3227_v10 = vpack.c.bf16 %v1102_v38, %v4277_v59  ;;  %v1222_v60 = vsel %vm226_vm2, %v3526_v45, %v3536_v47 }
 0x2ab   :  { %v4392_v5 = vpop.permute.xlu0 %3538  ;;  %v3215_v7 = vpack.c.bf16 %v1220_v63, %v1160_v62 }
 0x2ac   :  { %v3541_v13 = vunpack.i.h.bf16 %v4392_v5  ;;  %v3540_v14 = vunpack.i.l.bf16 %v4392_v5 }
 0x2ad   :  { %3216 = vmatpush1.bf16.msra.mxu0 %v3215_v7  ;;  %v1461_v7 = vsel %vm470_vm6, %v3565_v37, %v3566_v46 }
 0x2ae   :  { %v1281_v34 = vsel %vm287_vm3, %v3540_v14, %v3541_v13 }
 0x2af   :  { %v3549_v30 = vpop.permute.xlu0 %3548  ;;  %v3217_v25 = vpack.c.bf16 %v1341_v20, %v1281_v34  ;;  %v4404_v28 = vpop.permute.xlu1 %3578 }
 0x2b0   :  { %v3580_v0 = vunpack.i.l.bf16 %v4404_v28  ;;  %v3550_v40 = vunpack.i.l.bf16 %v3549_v30 }
 0x2b1   :  { %3218 = vmatprep.subr.bf16.mxu0 %v3217_v25 }
 0x2b2   :  { %v1103_v41 = vsel %vm104_vm0, %v3516_v17, %v3580_v0  ;;  %v1280_v35 = vsel %vm287_vm3, %v3550_v40, %v3540_v14  ;;  %v1162_v14 = vsel %vm165_vm1, %v3521_v50, %v3531_v54 }
 0x2b3   :  { %v3554_v4 = vpop.permute.xlu0 %3553  ;;  %v4411_v43 = vpop.permute.xlu1 %3583  ;;  %v3225_v56 = vpack.c.bf16 %v1103_v41, %v4285_v22  ;;  %v3231_v25 = vpack.c.bf16 %v1222_v60, %v1162_v14  ;;  %v3581_v14 = vunpack.i.h.bf16 %v4404_v28 }
 0x2b4   :  { %v3555_v44 = vunpack.i.l.bf16 %v3554_v4  ;;  %v3585_v52 = vunpack.i.l.bf16 %v4411_v43  ;;  %v3556_v38 = vunpack.i.h.bf16 %v3554_v4 }
 0x2b5   :  { %3226 = vmatprep.subr.bf16.mxu1 %v3225_v56  ;;  %v3551_v56 = vunpack.i.h.bf16 %v3549_v30 }
 0x2b6   :  { %v1340_v51 = vsel %vm348_vm4, %v3555_v44, %v3545_v61  ;;  %3228 = vmatpush1.bf16.msra.mxu1 %v3227_v10  ;;  %v1163_v61 = vsel %vm165_vm1, %v3531_v54, %v3585_v52  ;;  %v1342_v54 = vsel %vm348_vm4, %v3546_v12, %v3556_v38 }
 0x2b7   :  { %v3559_v55 = vpop.permute.xlu0 %3558  ;;  %v3219_v58 = vpack.c.bf16 %v1340_v51, %v1280_v35  ;;  %v4420_v22 = vpop.permute.xlu1 %3588  ;;  %v1282_v60 = vsel %vm287_vm3, %v3541_v13, %v3551_v56 }
 0x2b8   :  { %v3561_v62 = vunpack.i.h.bf16 %v3559_v55  ;;  %v3560_v59 = vunpack.i.l.bf16 %v3559_v55  ;;  %v3590_v63 = vunpack.i.l.bf16 %v4420_v22 }
 0x2b9   :  { %3220 = vmatpush1.bf16.msra.mxu0 %v3219_v58 }
 0x2ba   :  { %v1401_v48 = vsel %vm409_vm5, %v3560_v59, %v3561_v62  ;;  %v1223_v2 = vsel %vm226_vm2, %v3536_v47, %v3590_v63 }
 0x2bb   :  { %v3569_v17 = vpop.permute.xlu0 %3568  ;;  %v3221_v34 = vpack.c.bf16 %v1461_v7, %v1401_v48  ;;  %v4433_v20 = vpop.permute.xlu1 %3593  ;;  %v3229_v45 = vpack.c.bf16 %v1223_v2, %v1163_v61  ;;  %v3235_v61 = vpack.c.bf16 %v1342_v54, %v1282_v60 }
 0x2bc   :  { %v3570_v40 = vunpack.i.l.bf16 %v3569_v17  ;;  %v3595_v41 = vunpack.i.l.bf16 %v4433_v20  ;;  %v3571_v47 = vunpack.i.h.bf16 %v3569_v17 }
 0x2bd   :  { %3222 = vmatprep.subr.bf16.mxu0 %v3221_v34  ;;  %3230 = vmatprep.subr.bf16.mxu1 %v3229_v45  ;;  %v4469_v45 = vld [vmem:[%s4951_s2] sm:$0xff] }
 0x2be   :  { %3232 = vmatpush1.bf16.msra.mxu1 %v3231_v25  ;;  %v1400_v4 = vsel %vm409_vm5, %v3570_v40, %v3560_v59  ;;  %v1283_v30 = vsel %vm287_vm3, %v3551_v56, %v3595_v41  ;;  %v1403_v2 = vsel %vm409_vm5, %v3571_v47, %v4354_v29  ;;  %v1402_v17 = vsel %vm409_vm5, %v3561_v62, %v3571_v47 }
 0x2bf   :  { %v3574_v44 = vpop.permute.xlu0 %3573  ;;  %v4436_v10 = vpop.permute.xlu1 %3598  ;;  %v1104_v40 = vsel %vm104_vm0, %v3580_v0, %v3581_v14  ;;  %v3591_v62 = vunpack.i.h.bf16 %v4420_v22  ;;  %v1523_v56 = vsel %vm531_vm7, %v4394_v8, %v4364_v33 }
 0x2c0   :  { %v3576_v35 = vunpack.i.h.bf16 %v3574_v44  ;;  %v3575_v50 = vunpack.i.l.bf16 %v3574_v44  ;;  %v3600_v51 = vunpack.i.l.bf16 %v4436_v10  ;;  %v3586_v44 = vunpack.i.h.bf16 %v4411_v43 }
 0x2c2   :  { %v1460_v55 = vsel %vm470_vm6, %v3575_v50, %v3565_v37  ;;  %v1343_v58 = vsel %vm348_vm4, %v3556_v38, %v3600_v51  ;;  %v1463_v37 = vsel %vm470_vm6, %v3576_v35, %v4356_v27  ;;  %v1462_v5 = vsel %vm470_vm6, %v3566_v46, %v3576_v35 }
 0x2c3   :  { %v1507_v48 = vpop.permute.xlu0 %1506  ;;  %v3223_v42 = vpack.c.bf16 %v1460_v55, %v1400_v4  ;;  %v4453_v7 = vpop.permute.xlu1 %1278  ;;  %v3233_v12 = vpack.c.bf16 %v1343_v58, %v1283_v30  ;;  %v3237_v13 = vpack.c.bf16 %v1463_v37, %v1403_v2  ;;  %v1520_v46 = vsel %vm531_vm7, %v4360_v32, %v4386_v57 }
 0x2c4   :  { %v1521_v59 = vsel %vm531_vm7, %v4386_v57, %v1507_v48  ;;  %v3239_v38 = vpack.c.bf16 %v1462_v5, %v1402_v17  ;;  %v4484_v57 = vld [vmem:[#allocation2] sm:$0xff]  ;;  %v3601_v50 = vunpack.i.h.bf16 %v4436_v10  ;;  %v1522_v55 = vsel %vm531_vm7, %v1507_v48, %v4394_v8 }
 0x2c5   :  { %3224 = vmatpush1.bf16.msra.mxu0 %v3223_v42  ;;  %3234 = vmatprep.subr.bf16.mxu1 %v3233_v12  ;;  %v3243_v35 = vpack.c.bf16 %v1104_v40, %v4484_v57  ;;  %v1224_v30 = vsel %vm226_vm2, %v3590_v63, %v3591_v62  ;;  %v1164_v12 = vsel %vm165_vm1, %v3585_v52, %v3586_v44 }
 0x2c6   :  { %1642 = vmatprep.subr.mxu0 %v1521_v59  ;;  %3236 = vmatpush1.bf16.msra.mxu1 %v3235_v61 }
 0x2c7   :  { %v4464_v34 = vpop.permute.xlu0 %1338  ;;  %v3609_v25 = vpop.permute.xlu1 %3608  ;;  %3238 = vmatprep.subr.bf16.mxu1 %v3237_v13 }
 0x2c8   :  { %v3611_v54 = vunpack.i.h.bf16 %v3609_v25  ;;  %v3610_v4 = vunpack.i.l.bf16 %v3609_v25 }
 0x2c9   :  { %1643 = vmatpush1.msra.mxu0 %v1520_v46 }
 0x2ca   :  { %3121 = vmatmul.mubr.msk.f32.vlgmr.msra.gmra.mrb[4].mxu0 %vm635_vm8, %v4469_v45  ;;  %3240 = vmatpush1.bf16.msra.mxu1 %v3239_v38  ;;  %v1166_v43 = vsel %vm165_vm1, %v3610_v4, %v3611_v54 }
 0x2cb   :  { %v3604_v47 = vpop.permute.xlu0 %3603  ;;  %v3619_v32 = vpop.permute.xlu1 %3618  ;;  %1713 = vmatprep.subr.mxu1 %v1523_v56  ;;  %1832 = vmatprep.mubr.f32.mxu0 %v4484_v57 }
 0x2cc   :  { %v3606_v28 = vunpack.i.h.bf16 %v3604_v47  ;;  %v3605_v0 = vunpack.i.l.bf16 %v3604_v47  ;;  %v3621_v61 = vunpack.i.h.bf16 %v3619_v32  ;;  %v3620_v2 = vunpack.i.l.bf16 %v3619_v32 }
 0x2ce   :  { %v1106_v58 = vsel %vm104_vm0, %v3605_v0, %v3606_v28  ;;  %v1105_v60 = vsel %vm104_vm0, %v3581_v14, %v3605_v0  ;;  %1714 = vmatpush1.msra.mxu1 %v1522_v55  ;;  %v1107_v42 = vsel %vm104_vm0, %v3606_v28, %v4358_v31  ;;  %v1344_v31 = vsel %vm348_vm4, %v3600_v51, %v3601_v50 }
 0x2cf   :  { %v3614_v37 = vpop.permute.xlu0 %3613  ;;  %v3241_v59 = vpack.c.bf16 %v1105_v60, %v4301_v11  ;;  %3122 = vmatmul.mubr.msk.f32.vlgmr.msra.gmra.mrb[4].mxu1 %vm635_vm8, %v4469_v45  ;;  %v3257_v8 = vpack.c.bf16 %v1107_v42, %v4317_v36  ;;  %v3259_v22 = vpack.c.bf16 %v1106_v58, %v4324_v24  ;;  %v3247_v11 = vpack.c.bf16 %v1224_v30, %v1164_v12  ;;  %v3629_v52 = vpop.permute.xlu1 %3628 }
 0x2d0   :  { %v3616_v63 = vunpack.i.h.bf16 %v3614_v37  ;;  %v3615_v48 = vunpack.i.l.bf16 %v3614_v37  ;;  %1903 = vmatprep.mubr.f32.mxu1 %v4484_v57  ;;  %v3596_v36 = vunpack.i.h.bf16 %v4433_v20  ;;  %v1165_v14 = vsel %vm165_vm1, %v3586_v44, %v3610_v4 }
 0x2d1   :  { %3242 = vmatprep.subr.bf16.mxu0 %v3241_v59  ;;  %3258 = vmatprep.subr.bf16.mxu1 %v3257_v8  ;;  %v1167_v51 = vsel %vm165_vm1, %v3611_v54, %v4362_v1  ;;  %v1286_v40 = vsel %vm287_vm3, %v3620_v2, %v3621_v61  ;;  %v3631_v47 = vunpack.i.h.bf16 %v3629_v52  ;;  %v3630_v44 = vunpack.i.l.bf16 %v3629_v52 }
 0x2d2   :  { %v1226_v24 = vsel %vm226_vm2, %v3615_v48, %v3616_v63  ;;  %3244 = vmatpush1.bf16.msra.mxu0 %v3243_v35  ;;  %v1225_v5 = vsel %vm226_vm2, %v3591_v62, %v3615_v48  ;;  %3260 = vmatpush1.bf16.msra.mxu1 %v3259_v22  ;;  %v1227_v17 = vsel %vm226_vm2, %v3616_v63, %v4366_v39 }
 0x2d3   :  { %v3624_v13 = vpop.permute.xlu0 %3623  ;;  %v3245_v10 = vpack.c.bf16 %v1225_v5, %v1165_v14  ;;  %v3263_v25 = vpack.c.bf16 %v1226_v24, %v1166_v43  ;;  %v3261_v56 = vpack.c.bf16 %v1227_v17, %v1167_v51  ;;  %v1285_v62 = vsel %vm287_vm3, %v3596_v36, %v3620_v2  ;;  %v3639_v4 = vpop.permute.xlu1 %3638 }
 0x2d4   :  { %v3626_v46 = vunpack.i.h.bf16 %v3624_v13  ;;  %v3625_v38 = vunpack.i.l.bf16 %v3624_v13  ;;  %v1287_v32 = vsel %vm287_vm3, %v3621_v61, %v4453_v7  ;;  %v1284_v0 = vsel %vm287_vm3, %v3595_v41, %v3596_v36 }
 0x2d5   :  { %3246 = vmatprep.subr.bf16.mxu0 %v3245_v10  ;;  %3262 = vmatprep.subr.bf16.mxu1 %v3261_v56  ;;  %v3251_v60 = vpack.c.bf16 %v1344_v31, %v1284_v0  ;;  %v1405_v42 = vsel %vm409_vm5, %v3630_v44, %v3631_v47  ;;  %v3641_v41 = vunpack.i.h.bf16 %v3639_v4 }
 0x2d6   :  { %v1346_v28 = vsel %vm348_vm4, %v3625_v38, %v3626_v46  ;;  %3248 = vmatpush1.bf16.msra.mxu0 %v3247_v11  ;;  %v1345_v1 = vsel %vm348_vm4, %v3601_v50, %v3625_v38  ;;  %v1347_v39 = vsel %vm348_vm4, %v3626_v46, %v4464_v34  ;;  %3264 = vmatpush1.bf16.msra.mxu1 %v3263_v25  ;;  %v3640_v34 = vunpack.i.l.bf16 %v3639_v4 }
 0x2d7   :  { %v3634_v35 = vpop.permute.xlu0 %3633  ;;  %v3249_v54 = vpack.c.bf16 %v1345_v1, %v1285_v62  ;;  %v3265_v55 = vpack.c.bf16 %v1347_v39, %v1287_v32  ;;  %v3267_v30 = vpack.c.bf16 %v1346_v28, %v1286_v40  ;;  %v1404_v50 = vsel %vm409_vm5, %v4354_v29, %v3630_v44  ;;  %v1513_v29 = vpop.permute.xlu1 %1512 }
 0x2d8   :  { %v3636_v7 = vunpack.i.h.bf16 %v3634_v35  ;;  %v3635_v58 = vunpack.i.l.bf16 %v3634_v35  ;;  %v1406_v61 = vsel %vm409_vm5, %v3631_v47, %v3640_v34  ;;  %v1524_v36 = vsel %vm531_vm7, %v4364_v33, %v1513_v29 }
 0x2d9   :  { %3250 = vmatprep.subr.bf16.mxu0 %v3249_v54  ;;  %3266 = vmatprep.subr.bf16.mxu1 %v3265_v55 }
 0x2da   :  { %v1464_v20 = vsel %vm470_vm6, %v4356_v27, %v3635_v58  ;;  %3252 = vmatpush1.bf16.msra.mxu0 %v3251_v60  ;;  %v1465_v12 = vsel %vm470_vm6, %v3635_v58, %v3636_v7  ;;  %3268 = vmatpush1.bf16.msra.mxu1 %v3267_v30  ;;  %v1407_v27 = vsel %vm409_vm5, %v3640_v34, %v3641_v41 }
 0x2db   :  { %v3644_v37 = vpop.permute.xlu0 %3643  ;;  %v3253_v59 = vpack.c.bf16 %v1465_v12, %v1405_v42  ;;  %v3255_v8 = vpack.c.bf16 %v1464_v20, %v1404_v50  ;;  %v1517_v14 = vpop.permute.xlu1 %1516 }
 0x2dc   :  { %v3646_v22 = vunpack.i.h.bf16 %v3644_v37  ;;  %v3645_v63 = vunpack.i.l.bf16 %v3644_v37 }
 0x2dd   :  { %3254 = vmatprep.subr.bf16.mxu0 %v3253_v59 }
 0x2de   :  { %v1466_v48 = vsel %vm470_vm6, %v3636_v7, %v3645_v63  ;;  %3256 = vmatpush1.bf16.msra.mxu0 %v3255_v8  ;;  %v1467_v2 = vsel %vm470_vm6, %v3645_v63, %v3646_v22 }
 0x2df   :  { %v3271_v31 = vpack.c.bf16 %v1466_v48, %v1406_v61  ;;  %v1515_v43 = vpop.permute.xlu0 %1514  ;;  %v3269_v11 = vpack.c.bf16 %v1467_v2, %v1407_v27 }
 0x2e0   :  { %v1525_v52 = vsel %vm531_vm7, %v1513_v29, %v1515_v43  ;;  %v1526_v13 = vsel %vm531_vm7, %v1515_v43, %v1517_v14 }
 0x2e1   :  { %1784 = vmatprep.subr.mxu0 %v1525_v52  ;;  %3270 = vmatprep.subr.bf16.mxu1 %v3269_v11 }
 0x2e2   :  { %1785 = vmatpush1.msra.mxu0 %v1524_v36  ;;  %3272 = vmatpush1.bf16.msra.mxu1 %v3271_v31 }
 0x2e3   :  { %v1519_v24 = vpop.permute.xlu0 %1518  ;;  %3123 = vmatmul.mubr.msk.f32.vlgmr.msra.gmra.mrb[6].mxu0 %vm635_vm8, %v4469_v45 }
 0x2e4   :  { %v1527_v5 = vsel %vm531_vm7, %v1517_v14, %v1519_v24  ;;  %2650 = vmatprep.mubr.f32.mxu0 %v4484_v57 }
 0x2e5   :  { %1855 = vmatprep.subr.mxu1 %v1527_v5 }
 0x2e6   :  { %1856 = vmatpush1.msra.mxu1 %v1526_v13 }
 0x2e7   :  { %3124 = vmatmul.mubr.msk.f32.vlgmr.msra.gmra.mrb[6].mxu1 %vm635_vm8, %v4469_v45 }
 0x2e8   :  { %2721 = vmatprep.mubr.f32.mxu1 %v4484_v57 }
 0x2ec   :  { %v1621_v33 = vpop.permute.xlu1 %1620 }
 0x39d   :  { %v1692_v10 = vpop.f32.mrb[4].mxu0 }
 0x39e   :  { %v1693_v51 = vadd.f32 %v1692_v10, %v1621_v33  ;;  %v1694_v17 = vpop.f32.mrb[5].mxu0 }
 0x39f   :  { %v1695_v25 = vadd.f32 %v1694_v17, %v1621_v33 }
 0x3a0   :  { %v1918_v46 = vmin.f32 %v1693_v51, 0.0  ;;  %vm1910_vm12 = vcmp.gt.f32.partialorder %v1693_v51, 0.0 }
 0x3a1   :  { %v1919_v38 = vmin.f32 %v1695_v25, 0.0  ;;  %vm1911_vm13 = vcmp.gt.f32.partialorder %v1695_v25, 0.0 }
 0x3a2   :  { %v1926_v40 = vmul.f32 1.442695, %v1918_v46  ;;  %v1763_v56 = vpop.f32.mrb[4].mxu1 }
 0x3a3   :  { %v1928_v47 = vmul.f32 1.442695, %v1919_v38  ;;  %v1764_v44 = vadd.f32 %v1763_v56, %v1621_v33  ;;  %v1765_v62 = vpop.f32.mrb[5].mxu1 }
 0x3a4   :  { %3804 = vpow2.f32 %v1926_v40  ;;  %v1766_v32 = vadd.f32 %v1765_v62, %v1621_v33 }
 0x3a5   :  { %3806 = vpow2.f32 %v1928_v47  ;;  %v1920_v28 = vmin.f32 %v1764_v44, 0.0  ;;  %vm1912_vm14 = vcmp.gt.f32.partialorder %v1764_v44, 0.0 }
 0x3a6   :  { %v1921_v1 = vmin.f32 %v1766_v32, 0.0  ;;  %vm1913_vm15 = vcmp.gt.f32.partialorder %v1766_v32, 0.0 }
 0x3a7   :  { %v1930_v45 = vmul.f32 1.442695, %v1920_v28 }
 0x3a8   :  { %v1932_v39 = vmul.f32 1.442695, %v1921_v1 }
 0x3a9   :  { %3808 = vpow2.f32 %v1930_v45 }
 0x3aa   :  { %3810 = vpow2.f32 %v1932_v39 }
 0x3ae   :  { %v3805_v0 = vpop.eup %3804 }
 0x3af   :  { %v3807_v35 = vpop.eup %3806  ;;  %v3125_v54 = vadd.f32 -1.0, %v3805_v0 }
 0x3b0   :  { %v3126_v4 = vadd.f32 -1.0, %v3807_v35 }
 0x3b1   :  { %v1950_v55 = vsel %vm1910_vm12, %v1693_v51, %v3125_v54 }
 0x3b2   :  { %v1958_v30 = vmul.f32 %v1950_v55, %v4207_v6  ;;  %v1951_v7 = vsel %vm1911_vm13, %v1695_v25, %v3126_v4 }
 0x3b3   :  { %v3809_v58 = vpop.eup %3808  ;;  %v1959_v60 = vmul.f32 %v1951_v7, %v4213_v16 }
 0x3b4   :  { %v3811_v50 = vpop.eup %3810  ;;  %v3127_v42 = vadd.f32 -1.0, %v3809_v58  ;;  %1966 = vrot.lane.b32.xlu0 %v1958_v30, %s3896_s1 }
 0x3b5   :  { %v3128_v20 = vadd.f32 -1.0, %v3811_v50  ;;  %1968 = vrot.lane.b32.xlu1 %v1959_v60, %s3896_s1 }
 0x3b6   :  { %v1952_v41 = vsel %vm1912_vm14, %v1764_v44, %v3127_v42  ;;  %v1834_v34 = vpop.f32.mrb[6].mxu0 }
 0x3b7   :  { %v1960_v12 = vmul.f32 %v1952_v41, %v4229_v23  ;;  %v1953_v37 = vsel %vm1913_vm15, %v1766_v32, %v3128_v20  ;;  %v1835_v59 = vadd.f32 %v1834_v34, %v1621_v33  ;;  %v1836_v8 = vpop.f32.mrb[7].mxu0  ;;  %vm2945_vm15 = vcmask 392448  }
 0x3b8   :  { %v1961_v22 = vmul.f32 %v1953_v37, %v4222_v19  ;;  %v1837_v63 = vadd.f32 %v1836_v8, %v1621_v33  ;;  %v2577_v37 = vld [vmem:[%s4955_s6] sm:$0xff] }
 0x3b9   :  { %v1922_v29 = vmin.f32 %v1835_v59, 0.0  ;;  %1970 = vrot.lane.b32.xlu0 %v1960_v12, %s3896_s1  ;;  %vm1914_vm9 = vcmp.gt.f32.partialorder %v1835_v59, 0.0 }
 0x3ba   :  { %v1923_v48 = vmin.f32 %v1837_v63, 0.0  ;;  %v1905_v61 = vpop.f32.mrb[6].mxu1  ;;  %1972 = vrot.lane.b32.xlu1 %v1961_v22, %s3896_s1  ;;  %vm1915_vm12 = vcmp.gt.f32.partialorder %v1837_v63, 0.0 }
 0x3bb   :  { %v1934_v27 = vmul.f32 1.442695, %v1922_v29  ;;  %v1906_v2 = vadd.f32 %v1905_v61, %v1621_v33  ;;  %v1907_v31 = vpop.f32.mrb[7].mxu1 }
 0x3bc   :  { %v1936_v43 = vmul.f32 1.442695, %v1923_v48  ;;  %v1908_v11 = vadd.f32 %v1907_v31, %v1621_v33 }
 0x3bd   :  { %3812 = vpow2.f32 %v1934_v27  ;;  %v1924_v52 = vmin.f32 %v1906_v2, 0.0  ;;  %vm1916_vm13 = vcmp.gt.f32.partialorder %v1906_v2, 0.0 }
 0x3be   :  { %3814 = vpow2.f32 %v1936_v43  ;;  %v1925_v36 = vmin.f32 %v1908_v11, 0.0  ;;  %vm1917_vm14 = vcmp.gt.f32.partialorder %v1908_v11, 0.0 }
 0x3bf   :  { %v1938_v24 = vmul.f32 1.442695, %v1924_v52 }
 0x3c0   :  { %v1940_v14 = vmul.f32 1.442695, %v1925_v36 }
 0x3c1   :  { %3816 = vpow2.f32 %v1938_v24 }
 0x3c2   :  { %3818 = vpow2.f32 %v1940_v14 }
 0x3c7   :  { %v3813_v5 = vpop.eup %3812 }
 0x3c8   :  { %v3815_v13 = vpop.eup %3814  ;;  %v3129_v10 = vadd.f32 -1.0, %v3813_v5 }
 0x3c9   :  { %v3130_v51 = vadd.f32 -1.0, %v3815_v13 }
 0x3ca   :  { %v1954_v17 = vsel %vm1914_vm9, %v1835_v59, %v3129_v10  ;;  %vm2977_vm9 = vcmask 23552  }
 0x3cb   :  { %v3817_v25 = vpop.eup %3816  ;;  %v1983_v46 = vmul.f32 %v1954_v17, %v4207_v6  ;;  %v1955_v38 = vsel %vm1915_vm12, %v1837_v63, %v3130_v51  ;;  %vm2950_vm12 = vcmask 523648  }
 0x3cc   :  { %v3819_v33 = vpop.eup %3818  ;;  %v1984_v40 = vmul.f32 %v1955_v38, %v4213_v16  ;;  %v3131_v56 = vadd.f32 -1.0, %v3817_v25 }
 0x3cd   :  { %v3132_v47 = vadd.f32 -1.0, %v3819_v33  ;;  %1991 = vrot.lane.b32.xlu0 %v1983_v46, %s3896_s1 }
 0x3ce   :  { %v1956_v44 = vsel %vm1916_vm13, %v1906_v2, %v3131_v56  ;;  %1993 = vrot.lane.b32.xlu1 %v1984_v40, %s3896_s1  ;;  %vm2955_vm13 = vcmask 654848  }
 0x3cf   :  { %v1985_v62 = vmul.f32 %v1956_v44, %v4229_v23  ;;  %v1957_v32 = vsel %vm1917_vm14, %v1908_v11, %v3132_v47  ;;  %vm2960_vm14 = vcmask 786048  }
 0x3d0   :  { %v1986_v28 = vmul.f32 %v1957_v32, %v4222_v19 }
 0x3d1   :  { %1995 = vrot.lane.b32.xlu0 %v1985_v62, %s3896_s1 }
 0x3d2   :  { %1997 = vrot.lane.b32.xlu1 %v1986_v28, %s3896_s1 }
 0x3d5   :  { %2350 = vrot.lane.b32.xlu0 %v4484_v57, %s3891_s21 }
 0x3d6   :  { %2462 = vrot.lane.b32.xlu1 %v4484_v57, %s3894_s23 }
 0x3d9   :  { %2410 = vrot.lane.b32.xlu0 %v4484_v57, %s3892_s22 }
 0x3da   :  { %2470 = vrot.lane.b32.xlu1 %v4484_v57, %s3894_s23 }
 0x3dd   :  { %2058 = vrot.lane.b32.xlu0 %v4484_v57, %s3886_s0 }
 0x3de   :  { %2178 = vrot.lane.b32.xlu1 %v4484_v57, %s3888_s18 }
 0x3e1   :  { %2118 = vrot.lane.b32.xlu0 %v4484_v57, %s3887_s17 }
 0x426   :  { %v1967_v6 = vpop.permute.xlu0 %1966 }
 0x427   :  { %v1969_v16 = vpop.permute.xlu1 %1968 }
 0x428   :  { %v4582_v19 = vsel %vm1012_vm10, %v1967_v6, %v1969_v16 }
 0x42b   :  { %v1971_v23 = vpop.permute.xlu0 %1970 }
 0x42c   :  { %v4585_v1 = vsel %vm1012_vm10, %v1969_v16, %v1971_v23  ;;  %v1973_v45 = vpop.permute.xlu1 %1972 }
 0x42d   :  { %v1976_v39 = vsel %vm1012_vm10, %v1971_v23, %v1973_v45  ;;  %v3648_v0 = vpack.i.bf16 %v4585_v1, %v4582_v19 }
 0x42e   :  { %1982 = vst.msk [vmem:[#allocation2 + $0x18] sm:$0xff] %vm1021_vm11, %v1976_v39 }
 0x42f   :  { %3649 = vrot.lane.b32.xlu0 %v3648_v0, %s3886_s0 }
 0x433   :  { %3664 = vrot.lane.b32.xlu0 %v3648_v0, %s3888_s18 }
 0x435   :  { %v4593_v35 = vld [vmem:[#allocation2 + $0x18] sm:$0xff] }
 0x436   :  { %v3653_v54 = vpack.i.bf16 %v4593_v35, %v4484_v57 }
 0x437   :  { %3684 = vrot.lane.b32.xlu0 %v3648_v0, %s3890_s20 }
 0x438   :  { %3654 = vrot.lane.b32.xlu1 %v3653_v54, %s3886_s0 }
 0x43b   :  { %3704 = vrot.lane.b32.xlu0 %v3648_v0, %s3892_s22 }
 0x43c   :  { %3659 = vrot.lane.b32.xlu1 %v3648_v0, %s3887_s17 }
 0x43f   :  { %v1992_v4 = vpop.permute.xlu0 %1991  ;;  %2464 = vrot.lane.b32.xlu0 %v4582_v19, %s3894_s23 }
 0x440   :  { %v1994_v55 = vpop.permute.xlu1 %1993  ;;  %3669 = vrot.lane.b32.xlu1 %v3653_v54, %s3887_s17 }
 0x441   :  { %v4605_v30 = vsel %vm1012_vm10, %v1992_v4, %v1994_v55 }
 0x442   :  { %v3718_v42 = vpack.i.bf16 %v4605_v30, %v4484_v57 }
 0x443   :  { %v1996_v7 = vpop.permute.xlu0 %1995  ;;  %2468 = vrot.lane.b32.xlu0 %v4593_v35, %s3894_s23 }
 0x444   :  { %v4610_v58 = vsel %vm1012_vm10, %v1994_v55, %v1996_v7  ;;  %v1998_v60 = vpop.permute.xlu1 %1997  ;;  %3674 = vrot.lane.b32.xlu1 %v3653_v54, %s3888_s18 }
 0x445   :  { %v2001_v50 = vsel %vm1012_vm10, %v1996_v7, %v1998_v60  ;;  %v3768_v34 = vpack.i.bf16 %v4610_v58, %v4605_v30  ;;  %vm2937_vm10 = vcmask 138240  }
 0x446   :  { %2007 = vst.msk [vmem:[#allocation2 + $0x38] sm:$0xff] %vm1021_vm11, %v2001_v50  ;;  %vm2940_vm11 = vcmask 261248  }
 0x447   :  { %3719 = vrot.lane.b32.xlu0 %v3718_v42, %s3886_s0  ;;  %v4662_v59 = vpop.permute.xlu0 %2350 }
 0x448   :  { %3679 = vrot.lane.b32.xlu1 %v3648_v0, %s3889_s19  ;;  %v4668_v63 = vpop.permute.xlu1 %2462 }
 0x44b   :  { %3724 = vrot.lane.b32.xlu0 %v3718_v42, %s3887_s17  ;;  %v4664_v8 = vpop.permute.xlu0 %2410 }
 0x44c   :  { %3689 = vrot.lane.b32.xlu1 %v3653_v54, %s3889_s19  ;;  %v4672_v48 = vpop.permute.xlu1 %2470 }
 0x44d   :  { %v4627_v20 = vld [vmem:[#allocation2 + $0x38] sm:$0xff] }
 0x44e   :  { %v3748_v41 = vpack.i.bf16 %v4627_v20, %v4610_v58  ;;  %v3778_v12 = vpack.i.bf16 %v4484_v57, %v4627_v20 }
 0x44f   :  { %3729 = vrot.lane.b32.xlu0 %v3718_v42, %s3888_s18  ;;  %v4666_v22 = vpop.permute.xlu0 %2058 }
 0x450   :  { %3694 = vrot.lane.b32.xlu1 %v3653_v54, %s3890_s20  ;;  %v4674_v31 = vpop.permute.xlu1 %2178 }
 0x453   :  { %3734 = vrot.lane.b32.xlu0 %v3718_v42, %s3889_s19  ;;  %v4670_v29 = vpop.permute.xlu0 %2118 }
 0x454   :  { %3699 = vrot.lane.b32.xlu1 %v3648_v0, %s3891_s21 }
 0x457   :  { %3739 = vrot.lane.b32.xlu0 %v3718_v42, %s3890_s20 }
 0x458   :  { %3709 = vrot.lane.b32.xlu1 %v3653_v54, %s3891_s21 }
 0x45b   :  { %2238 = vrot.lane.b32.xlu0 %v4484_v57, %s3889_s19 }
 0x45c   :  { %3714 = vrot.lane.b32.xlu1 %v3653_v54, %s3892_s22 }
 0x45f   :  { %3749 = vrot.lane.b32.xlu0 %v3748_v41, %s3887_s17  ;;  %s3904_s17 = smov 117  }
 0x460   :  { %2466 = vrot.lane.b32.xlu1 %v4585_v1, %s3894_s23 }
 0x463   :  { %3759 = vrot.lane.b32.xlu0 %v3748_v41, %s3889_s19  ;;  %s3906_s19 = smov 13  }
 0x464   :  { %2298 = vrot.lane.b32.xlu1 %v4484_v57, %s3890_s20 }
 0x467   :  { %3769 = vrot.lane.b32.xlu0 %v3768_v34, %s3891_s21 }
 0x468   :  { %3744 = vrot.lane.b32.xlu1 %v3748_v41, %s3886_s0 }
 0x46b   :  { %3779 = vrot.lane.b32.xlu0 %v3778_v12, %s3891_s21  ;;  %s3908_s21 = smov 9  }
 0x46c   :  { %3754 = vrot.lane.b32.xlu1 %v3748_v41, %s3888_s18  ;;  %s3905_s18 = smov 15  }
 0x46f   :  { %2472 = vrot.lane.b32.xlu0 %v4605_v30, %s3894_s23 }
 0x470   :  { %3764 = vrot.lane.b32.xlu1 %v3748_v41, %s3890_s20  ;;  %s3907_s20 = smov 11  }
 0x473   :  { %2476 = vrot.lane.b32.xlu0 %v4627_v20, %s3894_s23 }
 0x474   :  { %3774 = vrot.lane.b32.xlu1 %v3768_v34, %s3892_s22 }
 0x477   :  { %2580 = vperm.xlu0 %3506, %v2577_v37  }
 0x478   :  { %3784 = vrot.lane.b32.xlu1 %v3778_v12, %s3892_s22  ;;  %s3909_s22 = smov 7  }
 0x47c   :  { %2474 = vrot.lane.b32.xlu1 %v4610_v58, %s3894_s23 }
 0x480   :  { %2478 = vrot.lane.b32.xlu1 %v4484_v57, %s3894_s23  ;;  %s3911_s23 = smov [#allocation7]  }
 0x481   :  { %s3097_s24 = sshll.u32 %s3911_s23, 4  ;;  %s3098_s24 = int_to_ptr.vmem [resolvable:$true] %s3097_s24 }
 0x482   :  { %s3859_s25 = scalar_lea.vmem %s3098_s24, 512  ;;  %p3864_p9 = scmp.lt.s32.totalorder %s3098_s24, %s3098_s24 }
 0x483   :  { %p3860_p8 = scmp.ne.s32.totalorder %s3098_s24, %s3859_s25  ;;  %p3865_p10 = scmp.lt.s32.totalorder %s3859_s25, %s3859_s25 }
 0x485   :  { %p3866_p11 = por %p3865_p10, %p3864_p9 }
 0x487   :  { %p3867_p12 = pnand %p3866_p11, %p3860_p8 }
 0x4a1   :  { %v3650_v61 = vpop.permute.xlu0 %3649 }
 0x4a2   :  { %v3652_v27 = vunpack.i.h.bf16 %v3650_v61  ;;  %v3651_v2 = vunpack.i.l.bf16 %v3650_v61 }
 0x4a4   :  { %v2061_v43 = vsel %vm104_vm0, %v3651_v2, %v3652_v27 }
 0x4a5   :  { %v3665_v11 = vpop.permute.xlu0 %3664  ;;  %v3273_v52 = vpack.c.bf16 %v2061_v43, %v4582_v19 }
 0x4a6   :  { %v3667_v13 = vunpack.i.h.bf16 %v3665_v11  ;;  %v3666_v10 = vunpack.i.l.bf16 %v3665_v11 }
 0x4a7   :  { %3274 = vmatprep.subr.bf16.mxu0 %v3273_v52 }
 0x4a8   :  { %v2181_v40 = vsel %vm226_vm2, %v3666_v10, %v3667_v13 }
 0x4a9   :  { %v4678_v36 = vpop.permute.xlu0 %3684 }
 0x4aa   :  { %v3655_v24 = vpop.permute.xlu1 %3654  ;;  %v3687_v19 = vunpack.i.h.bf16 %v4678_v36  ;;  %v3686_v23 = vunpack.i.l.bf16 %v4678_v36 }
 0x4ab   :  { %v3656_v14 = vunpack.i.l.bf16 %v3655_v24  ;;  %v3657_v6 = vunpack.i.h.bf16 %v3655_v24 }
 0x4ac   :  { %v2301_v34 = vsel %vm348_vm4, %v3686_v23, %v3687_v19 }
 0x4ad   :  { %v2060_v5 = vsel %vm104_vm0, %v3656_v14, %v3651_v2  ;;  %v4681_v51 = vpop.permute.xlu0 %3704  ;;  %v2062_v7 = vsel %vm104_vm0, %v3652_v27, %v3657_v6 }
 0x4ae   :  { %v3275_v17 = vpack.c.bf16 %v2060_v5, %v4484_v57  ;;  %v3660_v25 = vpop.permute.xlu1 %3659  ;;  %v3291_v61 = vpack.c.bf16 %v2062_v7, %v4585_v1  ;;  %v3707_v1 = vunpack.i.h.bf16 %v4681_v51 }
 0x4af   :  { %v3662_v46 = vunpack.i.h.bf16 %v3660_v25  ;;  %v3661_v38 = vunpack.i.l.bf16 %v3660_v25 }
 0x4b0   :  { %3276 = vmatpush1.bf16.msra.mxu0 %v3275_v17  ;;  %v3706_v17 = vunpack.i.l.bf16 %v4681_v51 }
 0x4b1   :  { %v2121_v33 = vsel %vm165_vm1, %v3661_v38, %v3662_v46  ;;  %v4686_v56 = vpop.permute.xlu0 %2464 }
 0x4b2   :  { %v3670_v47 = vpop.permute.xlu1 %3669  ;;  %v3277_v44 = vpack.c.bf16 %v2181_v40, %v2121_v33 }
 0x4b3   :  { %v3671_v62 = vunpack.i.l.bf16 %v3670_v47  ;;  %v3672_v52 = vunpack.i.h.bf16 %v3670_v47 }
 0x4b4   :  { %3278 = vmatprep.subr.bf16.mxu0 %v3277_v44 }
 0x4b5   :  { %v4688_v32 = vpop.permute.xlu0 %2468  ;;  %v2120_v45 = vsel %vm165_vm1, %v3671_v62, %v3661_v38  ;;  %v2122_v33 = vsel %vm165_vm1, %v3662_v46, %v3672_v52 }
 0x4b6   :  { %v3675_v28 = vpop.permute.xlu1 %3674 }
 0x4b7   :  { %v3676_v16 = vunpack.i.l.bf16 %v3675_v28  ;;  %v3677_v27 = vunpack.i.h.bf16 %v3675_v28 }
 0x4b9   :  { %v2180_v39 = vsel %vm226_vm2, %v3676_v16, %v3666_v10  ;;  %v4694_v0 = vpop.permute.xlu0 %3719  ;;  %v2182_v10 = vsel %vm226_vm2, %v3667_v13, %v3677_v27 }
 0x4ba   :  { %v3279_v54 = vpack.c.bf16 %v2180_v39, %v2120_v45  ;;  %v3680_v4 = vpop.permute.xlu1 %3679  ;;  %v3721_v55 = vunpack.i.l.bf16 %v4694_v0  ;;  %v3295_v62 = vpack.c.bf16 %v2182_v10, %v2122_v33 }
 0x4bb   :  { %v3682_v60 = vunpack.i.h.bf16 %v3680_v4  ;;  %v3681_v50 = vunpack.i.l.bf16 %v3680_v4  ;;  %v2421_v4 = vsel %vm470_vm6, %v3706_v17, %v3707_v1 }
 0x4bc   :  { %3280 = vmatpush1.bf16.msra.mxu0 %v3279_v54  ;;  %v2063_v42 = vsel %vm104_vm0, %v3657_v6, %v3721_v55 }
 0x4bd   :  { %v2241_v41 = vsel %vm287_vm3, %v3681_v50, %v3682_v60  ;;  %v4703_v12 = vpop.permute.xlu0 %3724  ;;  %v3289_v37 = vpack.c.bf16 %v2063_v42, %v4593_v35 }
 0x4be   :  { %v3690_v2 = vpop.permute.xlu1 %3689  ;;  %v3281_v43 = vpack.c.bf16 %v2301_v34, %v2241_v41  ;;  %v3726_v11 = vunpack.i.l.bf16 %v4703_v12 }
 0x4bf   :  { %3290 = vmatprep.subr.bf16.mxu1 %v3289_v37  ;;  %v3691_v36 = vunpack.i.l.bf16 %v3690_v2  ;;  %v3692_v54 = vunpack.i.h.bf16 %v3690_v2 }
 0x4c0   :  { %3282 = vmatprep.subr.bf16.mxu0 %v3281_v43  ;;  %3292 = vmatpush1.bf16.msra.mxu1 %v3291_v61  ;;  %v2123_v25 = vsel %vm165_vm1, %v3672_v52, %v3726_v11 }
 0x4c1   :  { %v4708_v24 = vpop.permute.xlu0 %3729  ;;  %v2240_v40 = vsel %vm287_vm3, %v3691_v36, %v3681_v50  ;;  %v2242_v2 = vsel %vm287_vm3, %v3682_v60, %v3692_v54 }
 0x4c2   :  { %v3695_v14 = vpop.permute.xlu1 %3694  ;;  %v3731_v5 = vunpack.i.l.bf16 %v4708_v24 }
 0x4c3   :  { %v3696_v35 = vunpack.i.l.bf16 %v3695_v14  ;;  %v3697_v6 = vunpack.i.h.bf16 %v3695_v14 }
 0x4c4   :  { %v2183_v38 = vsel %vm226_vm2, %v3677_v27, %v3731_v5 }
 0x4c5   :  { %v2300_v47 = vsel %vm348_vm4, %v3696_v35, %v3686_v23  ;;  %v4723_v13 = vpop.permute.xlu0 %3734  ;;  %v3293_v44 = vpack.c.bf16 %v2183_v38, %v2123_v25  ;;  %v2302_v41 = vsel %vm348_vm4, %v3687_v19, %v3697_v6 }
 0x4c6   :  { %v3283_v28 = vpack.c.bf16 %v2300_v47, %v2240_v40  ;;  %v3700_v51 = vpop.permute.xlu1 %3699  ;;  %v3736_v39 = vunpack.i.l.bf16 %v4723_v13  ;;  %v3299_v52 = vpack.c.bf16 %v2302_v41, %v2242_v2 }
 0x4c7   :  { %v3702_v16 = vunpack.i.h.bf16 %v3700_v51  ;;  %v3701_v45 = vunpack.i.l.bf16 %v3700_v51  ;;  %3294 = vmatprep.subr.bf16.mxu1 %v3293_v44 }
 0x4c8   :  { %3284 = vmatpush1.bf16.msra.mxu0 %v3283_v28  ;;  %3296 = vmatpush1.bf16.msra.mxu1 %v3295_v62  ;;  %v2243_v37 = vsel %vm287_vm3, %v3692_v54, %v3736_v39  ;;  %v2483_v54 = vsel %vm531_vm7, %v4688_v32, %v4672_v48 }
 0x4c9   :  { %v2361_v46 = vsel %vm409_vm5, %v3701_v45, %v3702_v16  ;;  %v4728_v23 = vpop.permute.xlu0 %3739 }
 0x4ca   :  { %v3710_v7 = vpop.permute.xlu1 %3709  ;;  %v3285_v50 = vpack.c.bf16 %v2421_v4, %v2361_v46  ;;  %v3741_v42 = vunpack.i.l.bf16 %v4728_v23  ;;  %v2480_v46 = vsel %vm531_vm7, %v4668_v63, %v4686_v56  ;;  %v3727_v4 = vunpack.i.h.bf16 %v4703_v12 }
 0x4cb   :  { %v3711_v34 = vunpack.i.l.bf16 %v3710_v7  ;;  %v3712_v43 = vunpack.i.h.bf16 %v3710_v7 }
 0x4cc   :  { %3286 = vmatprep.subr.bf16.mxu0 %v3285_v50  ;;  %v2303_v61 = vsel %vm348_vm4, %v3697_v6, %v3741_v42 }
 0x4cd   :  { %v3297_v27 = vpack.c.bf16 %v2303_v61, %v2243_v37  ;;  %v4739_v14 = vpop.permute.xlu0 %2238  ;;  %v2360_v35 = vsel %vm409_vm5, %v3711_v34, %v3701_v45  ;;  %v2362_v25 = vsel %vm409_vm5, %v3702_v16, %v3712_v43  ;;  %v2363_v62 = vsel %vm409_vm5, %v3712_v43, %v4662_v59  ;;  %v4758_v45 = vld [vmem:[%s4952_s3] sm:$0xff]  ;;  %s3897_s3 = smov 17  }
 0x4ce   :  { %v3715_v36 = vpop.permute.xlu1 %3714  ;;  %v3722_v16 = vunpack.i.h.bf16 %v4694_v0 }
 0x4cf   :  { %v3717_v10 = vunpack.i.h.bf16 %v3715_v36  ;;  %v3716_v19 = vunpack.i.l.bf16 %v3715_v36  ;;  %3298 = vmatprep.subr.bf16.mxu1 %v3297_v27  ;;  %v3742_v27 = vunpack.i.h.bf16 %v4728_v23 }
 0x4d0   :  { %3300 = vmatpush1.bf16.msra.mxu1 %v3299_v52  ;;  %v2064_v7 = vsel %vm104_vm0, %v3721_v55, %v3722_v16 }
 0x4d1   :  { %v2420_v38 = vsel %vm470_vm6, %v3716_v19, %v3706_v17  ;;  %v2422_v33 = vsel %vm470_vm6, %v3707_v1, %v3717_v10  ;;  %v2423_v60 = vsel %vm470_vm6, %v3717_v10, %v4664_v8  ;;  %v3750_v6 = vpop.permute.xlu0 %3749  ;;  %v3732_v1 = vunpack.i.h.bf16 %v4708_v24 }
 0x4d2   :  { %v3287_v40 = vpack.c.bf16 %v2420_v38, %v2360_v35  ;;  %v3303_v47 = vpack.c.bf16 %v2422_v33, %v2362_v25  ;;  %v2467_v44 = vpop.permute.xlu1 %2466  ;;  %v3301_v51 = vpack.c.bf16 %v2423_v60, %v2363_v62  ;;  %v3307_v0 = vpack.c.bf16 %v2064_v7, %v4484_v57 }
 0x4d3   :  { %v2481_v28 = vsel %vm531_vm7, %v4686_v56, %v2467_v44  ;;  %v2482_v50 = vsel %vm531_vm7, %v2467_v44, %v4688_v32  ;;  %v2184_v41 = vsel %vm226_vm2, %v3731_v5, %v3732_v1  ;;  %v2124_v32 = vsel %vm165_vm1, %v3726_v11, %v3727_v4 }
 0x4d4   :  { %3288 = vmatpush1.bf16.msra.mxu0 %v3287_v40  ;;  %3302 = vmatprep.subr.bf16.mxu1 %v3301_v51  ;;  %v3752_v55 = vunpack.i.h.bf16 %v3750_v6  ;;  %v3751_v24 = vunpack.i.l.bf16 %v3750_v6  ;;  %v3311_v5 = vpack.c.bf16 %v2184_v41, %v2124_v32  ;;  %v3737_v60 = vunpack.i.h.bf16 %v4723_v13 }
 0x4d5   :  { %2602 = vmatprep.subr.mxu0 %v2481_v28  ;;  %3304 = vmatpush1.bf16.msra.mxu1 %v3303_v47  ;;  %v3760_v63 = vpop.permute.xlu0 %3759  ;;  %v2304_v28 = vsel %vm348_vm4, %v3741_v42, %v3742_v27 }
 0x4d6   :  { %v4753_v17 = vpop.permute.xlu1 %2298  ;;  %2673 = vmatprep.subr.mxu1 %v2483_v54  ;;  %v3762_v10 = vunpack.i.h.bf16 %v3760_v63  ;;  %v3761_v19 = vunpack.i.l.bf16 %v3760_v63  ;;  %v2126_v25 = vsel %vm165_vm1, %v3751_v24, %v3752_v55  ;;  %v2127_v33 = vsel %vm165_vm1, %v3752_v55, %v4670_v29 }
 0x4d8   :  { %2603 = vmatpush1.msra.mxu0 %v2480_v46  ;;  %v2246_v29 = vsel %vm287_vm3, %v3761_v19, %v3762_v10 }
 0x4d9   :  { %3133 = vmatmul.mubr.msk.f32.vlgmr.msra.gmra.mrb[8].mxu0 %vm635_vm8, %v4758_v45  ;;  %2674 = vmatpush1.msra.mxu1 %v2482_v50  ;;  %v3770_v38 = vpop.permute.xlu0 %3769 }
 0x4da   :  { %v3745_v34 = vpop.permute.xlu1 %3744  ;;  %2792 = vmatprep.mubr.f32.mxu0 %v4484_v57  ;;  %3134 = vmatmul.mubr.msk.f32.vlgmr.msra.gmra.mrb[8].mxu1 %vm635_vm8, %v4758_v45  ;;  %v3771_v54 = vunpack.i.l.bf16 %v3770_v38 }
 0x4db   :  { %v3747_v56 = vunpack.i.h.bf16 %v3745_v34  ;;  %v3746_v37 = vunpack.i.l.bf16 %v3745_v34  ;;  %2863 = vmatprep.mubr.f32.mxu1 %v4484_v57 }
 0x4dd   :  { %v2066_v61 = vsel %vm104_vm0, %v3746_v37, %v3747_v56  ;;  %v2065_v2 = vsel %vm104_vm0, %v3722_v16, %v3746_v37  ;;  %v2067_v43 = vsel %vm104_vm0, %v3747_v56, %v4666_v22  ;;  %v2125_v22 = vsel %vm165_vm1, %v3727_v4, %v3751_v24  ;;  %v3780_v50 = vpop.permute.xlu0 %3779 }
 0x4de   :  { %v3323_v52 = vpack.c.bf16 %v2066_v61, %v4610_v58  ;;  %v3755_v36 = vpop.permute.xlu1 %3754  ;;  %v3305_v12 = vpack.c.bf16 %v2065_v2, %v4605_v30  ;;  %v3321_v11 = vpack.c.bf16 %v2067_v43, %v4627_v20  ;;  %v3772_v16 = vunpack.i.h.bf16 %v3770_v38 }
 0x4df   :  { %v3757_v57 = vunpack.i.h.bf16 %v3755_v36  ;;  %v3756_v35 = vunpack.i.l.bf16 %v3755_v36  ;;  %v2244_v4 = vsel %vm287_vm3, %v3736_v39, %v3737_v60  ;;  %v3781_v55 = vunpack.i.l.bf16 %v3780_v50 }
 0x4e0   :  { %3306 = vmatprep.subr.bf16.mxu0 %v3305_v12  ;;  %3322 = vmatprep.subr.bf16.mxu1 %v3321_v11  ;;  %v3315_v56 = vpack.c.bf16 %v2304_v28, %v2244_v4  ;;  %v2365_v32 = vsel %vm409_vm5, %v3771_v54, %v3772_v16 }
 0x4e1   :  { %v2186_v58 = vsel %vm226_vm2, %v3756_v35, %v3757_v57  ;;  %3308 = vmatpush1.bf16.msra.mxu0 %v3307_v0  ;;  %3324 = vmatpush1.bf16.msra.mxu1 %v3323_v52  ;;  %v2185_v30 = vsel %vm226_vm2, %v3732_v1, %v3756_v35  ;;  %v2187_v20 = vsel %vm226_vm2, %v3757_v57, %v4674_v31 }
 0x4e2   :  { %v3327_v40 = vpack.c.bf16 %v2186_v58, %v2126_v25  ;;  %v3765_v47 = vpop.permute.xlu1 %3764  ;;  %v3309_v44 = vpack.c.bf16 %v2185_v30, %v2125_v22  ;;  %v3325_v62 = vpack.c.bf16 %v2187_v20, %v2127_v33  ;;  %v2245_v31 = vsel %vm287_vm3, %v3737_v60, %v3761_v19 }
 0x4e3   :  { %v3767_v51 = vunpack.i.h.bf16 %v3765_v47  ;;  %v3766_v6 = vunpack.i.l.bf16 %v3765_v47  ;;  %v2247_v1 = vsel %vm287_vm3, %v3762_v10, %v4739_v14  ;;  %v2364_v0 = vsel %vm409_vm5, %v4662_v59, %v3771_v54 }
 0x4e4   :  { %3310 = vmatprep.subr.bf16.mxu0 %v3309_v44  ;;  %3326 = vmatprep.subr.bf16.mxu1 %v3325_v62  ;;  %v2366_v59 = vsel %vm409_vm5, %v3772_v16, %v3781_v55 }
 0x4e5   :  { %v2306_v46 = vsel %vm348_vm4, %v3766_v6, %v3767_v51  ;;  %3312 = vmatpush1.bf16.msra.mxu0 %v3311_v5  ;;  %3328 = vmatpush1.bf16.msra.mxu1 %v3327_v40  ;;  %v2305_v23 = vsel %vm348_vm4, %v3742_v27, %v3766_v6  ;;  %v2307_v42 = vsel %vm348_vm4, %v3767_v51, %v4753_v17  ;;  %v3782_v17 = vunpack.i.h.bf16 %v3780_v50  ;;  %v2473_v27 = vpop.permute.xlu0 %2472 }
 0x4e6   :  { %v3331_v7 = vpack.c.bf16 %v2306_v46, %v2246_v29  ;;  %v3775_v41 = vpop.permute.xlu1 %3774  ;;  %v3313_v34 = vpack.c.bf16 %v2305_v23, %v2245_v31  ;;  %v3329_v63 = vpack.c.bf16 %v2307_v42, %v2247_v1  ;;  %v2484_v57 = vsel %vm531_vm7, %v4672_v48, %v2473_v27 }
 0x4e7   :  { %v3777_v14 = vunpack.i.h.bf16 %v3775_v41  ;;  %v3776_v37 = vunpack.i.l.bf16 %v3775_v41  ;;  %v2367_v36 = vsel %vm409_vm5, %v3781_v55, %v3782_v17 }
 0x4e8   :  { %3314 = vmatprep.subr.bf16.mxu0 %v3313_v34  ;;  %3330 = vmatprep.subr.bf16.mxu1 %v3329_v63 }
 0x4e9   :  { %v2424_v13 = vsel %vm470_vm6, %v4664_v8, %v3776_v37  ;;  %3316 = vmatpush1.bf16.msra.mxu0 %v3315_v56  ;;  %3332 = vmatpush1.bf16.msra.mxu1 %v3331_v7  ;;  %v2425_v39 = vsel %vm470_vm6, %v3776_v37, %v3777_v14  ;;  %v2477_v35 = vpop.permute.xlu0 %2476 }
 0x4ea   :  { %v3319_v24 = vpack.c.bf16 %v2424_v13, %v2364_v0  ;;  %v3785_v5 = vpop.permute.xlu1 %3784  ;;  %v3317_v61 = vpack.c.bf16 %v2425_v39, %v2365_v32 }
 0x4eb   :  { %v3787_v2 = vunpack.i.h.bf16 %v3785_v5  ;;  %v3786_v43 = vunpack.i.l.bf16 %v3785_v5 }
 0x4ec   :  { %3318 = vmatprep.subr.bf16.mxu0 %v3317_v61 }
 0x4ed   :  { %v2426_v52 = vsel %vm470_vm6, %v3777_v14, %v3786_v43  ;;  %3320 = vmatpush1.bf16.msra.mxu0 %v3319_v24  ;;  %v2427_v8 = vsel %vm470_vm6, %v3786_v43, %v3787_v2 }
 0x4ee   :  { %v3335_v12 = vpack.c.bf16 %v2426_v52, %v2366_v59  ;;  %v2475_v11 = vpop.permute.xlu1 %2474  ;;  %v3333_v10 = vpack.c.bf16 %v2427_v8, %v2367_v36 }
 0x4ef   :  { %v2485_v19 = vsel %vm531_vm7, %v2473_v27, %v2475_v11  ;;  %v2486_v22 = vsel %vm531_vm7, %v2475_v11, %v2477_v35 }
 0x4f0   :  { %2744 = vmatprep.subr.mxu0 %v2485_v19  ;;  %3334 = vmatprep.subr.bf16.mxu1 %v3333_v10 }
 0x4f1   :  { %2745 = vmatpush1.msra.mxu0 %v2484_v57  ;;  %3336 = vmatpush1.bf16.msra.mxu1 %v3335_v12 }
 0x4f2   :  { %v2479_v25 = vpop.permute.xlu1 %2478  ;;  %3135 = vmatmul.mubr.msk.f32.vlgmr.msra.gmra.mrb[10].mxu0 %vm635_vm8, %v4758_v45 }
 0x4f3   :  { %v2487_v38 = vsel %vm531_vm7, %v2477_v35, %v2479_v25 }
 0x4f4   :  { %2815 = vmatprep.subr.mxu1 %v2487_v38 }
 0x4f5   :  { %2816 = vmatpush1.msra.mxu1 %v2486_v22 }
 0x4f6   :  { %3136 = vmatmul.mubr.msk.f32.vlgmr.msra.gmra.mrb[10].mxu1 %vm635_vm8, %v4758_v45  ;;  %v4835_v33 = vpop.permute.xlu0 %2580  ;;  %vm2930_vm8 = vcmask 130048  }
 0x5ac   :  { %v2652_v48 = vpop.f32.mrb[8].mxu0 }
 0x5ad   :  { %v2653_v58 = vadd.f32 %v2652_v48, %v4835_v33  ;;  %v2654_v30 = vpop.f32.mrb[9].mxu0  ;;  %v2723_v20 = vpop.f32.mrb[8].mxu1 }
 0x5ae   :  { %v2724_v40 = vadd.f32 %v2723_v20, %v4835_v33  ;;  %v2725_v47 = vpop.f32.mrb[9].mxu1  ;;  %v2655_v45 = vadd.f32 %v2654_v30, %v4835_v33 }
 0x5af   :  { %v2870_v60 = vadd.f32 %v2653_v58, %v4209_v15  ;;  %v2726_v54 = vadd.f32 %v2725_v47, %v4835_v33 }
 0x5b0   :  { %v2872_v62 = vadd.f32 %v2724_v40, %v4225_v21  ;;  %v2871_v6 = vadd.f32 %v2655_v45, %v4217_v18 }
 0x5b1   :  { %v2886_v44 = vmin.f32 %v2870_v60, 0.0  ;;  %v2873_v23 = vadd.f32 %v2726_v54, %v4233_v26  ;;  %vm2878_vm0 = vcmp.gt.f32.partialorder %v2870_v60, 0.0 }
 0x5b2   :  { %v2888_v29 = vmin.f32 %v2872_v62, 0.0  ;;  %v2887_v16 = vmin.f32 %v2871_v6, 0.0  ;;  %vm2880_vm1 = vcmp.gt.f32.partialorder %v2872_v62, 0.0  ;;  %vm2879_vm2 = vcmp.gt.f32.partialorder %v2871_v6, 0.0 }
 0x5b3   :  { %v2894_v28 = vmul.f32 1.442695, %v2886_v44  ;;  %v2889_v18 = vmin.f32 %v2873_v23, 0.0  ;;  %vm2881_vm3 = vcmp.gt.f32.partialorder %v2873_v23, 0.0 }
 0x5b4   :  { %v2898_v51 = vmul.f32 1.442695, %v2888_v29  ;;  %v2896_v46 = vmul.f32 1.442695, %v2887_v16 }
 0x5b5   :  { %3820 = vpow2.f32 %v2894_v28  ;;  %v2900_v34 = vmul.f32 1.442695, %v2889_v18 }
 0x5b6   :  { %3822 = vpow2.f32 %v2898_v51 }
 0x5b7   :  { %3824 = vpow2.f32 %v2896_v46 }
 0x5b8   :  { %3826 = vpow2.f32 %v2900_v34 }
 0x5bf   :  { %v3821_v31 = vpop.eup %3820 }
 0x5c0   :  { %v3137_v15 = vadd.f32 -1.0, %v3821_v31  ;;  %v3823_v1 = vpop.eup %3822 }
 0x5c1   :  { %v3139_v21 = vadd.f32 -1.0, %v3823_v1  ;;  %v3825_v55 = vpop.eup %3824 }
 0x5c2   :  { %v2918_v42 = vsel %vm2878_vm0, %v2870_v60, %v3137_v15  ;;  %v3138_v13 = vadd.f32 -1.0, %v3825_v55  ;;  %v3827_v39 = vpop.eup %3826  ;;  %vm2965_vm0 = vcmask 917248  }
 0x5c3   :  { %2933 = vrot.lane.b32.xlu0 %v2918_v42, %s3897_s3  ;;  %2927 = vrot.lane.b32.xlu1 %v2918_v42, %s3896_s1  ;;  %v2920_v7 = vsel %vm2880_vm1, %v2872_v62, %v3139_v21  ;;  %v3140_v5 = vadd.f32 -1.0, %v3827_v39  ;;  %vm3010_vm1 = vcmask 957440  }
 0x5c5   :  { %v2794_v4 = vpop.f32.mrb[10].mxu0  ;;  %v2921_v43 = vsel %vm2881_vm3, %v2873_v23, %v3140_v5 }
 0x5c6   :  { %v2795_v50 = vadd.f32 %v2794_v4, %v4835_v33  ;;  %v2796_v41 = vpop.f32.mrb[11].mxu0 }
 0x5c7   :  { %2989 = vrot.lane.b32.xlu0 %v2920_v7, %s3898_s11  ;;  %2975 = vrot.lane.b32.xlu1 %v2920_v7, %s3899_s12  ;;  %v2797_v24 = vadd.f32 %v2796_v41, %v4835_v33 }
 0x5c8   :  { %v2874_v26 = vadd.f32 %v2795_v50, %v4239_v9 }
 0x5c9   :  { %v2865_v63 = vpop.f32.mrb[10].mxu1  ;;  %v2875_v2 = vadd.f32 %v2797_v24, %v4243_v49 }
 0x5ca   :  { %v2890_v56 = vmin.f32 %v2874_v26, 0.0  ;;  %v2866_v14 = vadd.f32 %v2865_v63, %v4835_v33  ;;  %v2867_v37 = vpop.f32.mrb[11].mxu1  ;;  %vm2882_vm4 = vcmp.gt.f32.partialorder %v2874_v26, 0.0 }
 0x5cb   :  { %2993 = vrot.lane.b32.xlu0 %v2920_v7, %s3900_s13  ;;  %2981 = vrot.lane.b32.xlu1 %v2920_v7, %s3901_s14  ;;  %v2891_v52 = vmin.f32 %v2875_v2, 0.0  ;;  %v2868_v12 = vadd.f32 %v2867_v37, %v4835_v33  ;;  %vm2883_vm6 = vcmp.gt.f32.partialorder %v2875_v2, 0.0 }
 0x5cc   :  { %v2876_v0 = vadd.f32 %v2866_v14, %v4249_v53  ;;  %v2902_v32 = vmul.f32 1.442695, %v2890_v56  ;;  %v4859_v53 = vsel %vm2879_vm2, %v2871_v6, %v3138_v13  ;;  %vm2970_vm2 = vcmask 1048448  }
 0x5cd   :  { %v2904_v49 = vmul.f32 1.442695, %v2891_v52  ;;  %v2877_v10 = vadd.f32 %v2868_v12, %v4253_v3 }
 0x5ce   :  { %v2892_v17 = vmin.f32 %v2876_v0, 0.0  ;;  %3828 = vpow2.f32 %v2902_v32  ;;  %vm2884_vm5 = vcmp.gt.f32.partialorder %v2876_v0, 0.0 }
 0x5cf   :  { %2997 = vrot.lane.b32.xlu0 %v2920_v7, %s3902_s15  ;;  %2985 = vrot.lane.b32.xlu1 %v2920_v7, %s3886_s0  ;;  %v2893_v19 = vmin.f32 %v2877_v10, 0.0  ;;  %vm2885_vm7 = vcmp.gt.f32.partialorder %v2877_v10, 0.0 }
 0x5d0   :  { %v2906_v9 = vmul.f32 1.442695, %v2892_v17 }
 0x5d1   :  { %v2908_v57 = vmul.f32 1.442695, %v2893_v19 }
 0x5d2   :  { %3830 = vpow2.f32 %v2906_v9 }
 0x5d3   :  { %3001 = vrot.lane.b32.xlu0 %v2920_v7, %s3903_s16  ;;  %3006 = vrot.lane.b32.xlu1 %v2920_v7, %s3904_s17  ;;  %3832 = vpow2.f32 %v2904_v49 }
 0x5d4   :  { %3834 = vpow2.f32 %v2908_v57 }
 0x5d7   :  { %2942 = vrot.lane.b32.xlu0 %v4859_v53, %s3905_s18  ;;  %2935 = vrot.lane.b32.xlu1 %v4859_v53, %s3897_s3 }
 0x5d8   :  { %v3829_v61 = vpop.eup %3828 }
 0x5d9   :  { %v3141_v27 = vadd.f32 -1.0, %v3829_v61 }
 0x5db   :  { %2973 = vrot.lane.b32.xlu0 %v4859_v53, %s3899_s12  ;;  %2947 = vrot.lane.b32.xlu1 %v4859_v53, %s3906_s19  ;;  %v2922_v8 = vsel %vm2882_vm4, %v2874_v26, %v3141_v27 }
 0x5dc   :  { %v3831_v59 = vpop.eup %3830 }
 0x5dd   :  { %v3143_v36 = vadd.f32 -1.0, %v3831_v59  ;;  %v3833_v35 = vpop.eup %3832 }
 0x5de   :  { %v3142_v25 = vadd.f32 -1.0, %v3833_v35  ;;  %v3835_v38 = vpop.eup %3834 }
 0x5df   :  { %3008 = vrot.lane.b32.xlu0 %v2921_v43, %s3904_s17  ;;  %2952 = vrot.lane.b32.xlu1 %v4859_v53, %s3907_s20  ;;  %v2924_v11 = vsel %vm2884_vm5, %v2876_v0, %v3143_v36  ;;  %v3144_v22 = vadd.f32 -1.0, %v3835_v38 }
 0x5e0   :  { %v2923_v3 = vsel %vm2883_vm6, %v2875_v2, %v3142_v25 }
 0x5e1   :  { %v2925_v33 = vsel %vm2885_vm7, %v2877_v10, %v3144_v22 }
 0x5e3   :  { %3015 = vrot.lane.b32.xlu0 %v2922_v8, %s3896_s1  ;;  %2957 = vrot.lane.b32.xlu1 %v4859_v53, %s3908_s21 }
 0x5e7   :  { %3060 = vrot.lane.b32.xlu0 %v2924_v11, %s3901_s14  ;;  %2962 = vrot.lane.b32.xlu1 %v4859_v53, %s3909_s22 }
 0x5eb   :  { %3068 = vrot.lane.b32.xlu0 %v2924_v11, %s3898_s11  ;;  %3055 = vrot.lane.b32.xlu1 %v2924_v11, %s3899_s12 }
 0x5ef   :  { %3072 = vrot.lane.b32.xlu0 %v2924_v11, %s3900_s13  ;;  %3021 = vrot.lane.b32.xlu1 %v2922_v8, %s3897_s3 }
 0x5f3   :  { %3076 = vrot.lane.b32.xlu0 %v2924_v11, %s3902_s15  ;;  %3064 = vrot.lane.b32.xlu1 %v2924_v11, %s3886_s0  ;;  %s3910_s0 = smov 5  }
 0x5f7   :  { %3080 = vrot.lane.b32.xlu0 %v2924_v11, %s3903_s16  ;;  %3085 = vrot.lane.b32.xlu1 %v2924_v11, %s3904_s17 }
 0x5fb   :  { %3053 = vrot.lane.b32.xlu0 %v2923_v3, %s3899_s12  ;;  %3032 = vrot.lane.b32.xlu1 %v2923_v3, %s3906_s19 }
 0x5ff   :  { %3023 = vrot.lane.b32.xlu0 %v2923_v3, %s3897_s3  ;;  %3036 = vrot.lane.b32.xlu1 %v2923_v3, %s3907_s20 }
 0x603   :  { %3028 = vrot.lane.b32.xlu0 %v2923_v3, %s3905_s18  ;;  %3040 = vrot.lane.b32.xlu1 %v2923_v3, %s3908_s21 }
 0x607   :  { %3087 = vrot.lane.b32.xlu0 %v2925_v33, %s3904_s17  ;;  %3044 = vrot.lane.b32.xlu1 %v2923_v3, %s3909_s22 }
 0x60b   :  { %3048 = vrot.lane.b32.xlu0 %v2923_v3, %s3910_s0  ;;  %2967 = vrot.lane.b32.xlu1 %v4859_v53, %s3910_s0 }
 0x635   :  { %v2934_v48 = vpop.permute.xlu0 %2933  ;;  %v2928_v58 = vpop.permute.xlu1 %2927 }
 0x636   :  { %2931 = vst.msk [vmem:[#allocation7] sm:$0xff] %vm2930_vm8, %v2928_v58 }
 0x639   :  { %v2990_v30 = vpop.permute.xlu0 %2989  ;;  %v2976_v20 = vpop.permute.xlu1 %2975 }
 0x63d   :  { %v2994_v60 = vpop.permute.xlu0 %2993  ;;  %v2982_v40 = vpop.permute.xlu1 %2981 }
 0x641   :  { %v2998_v47 = vpop.permute.xlu0 %2997  ;;  %v2986_v44 = vpop.permute.xlu1 %2985 }
 0x645   :  { %v3002_v62 = vpop.permute.xlu0 %3001  ;;  %v3007_v28 = vpop.permute.xlu1 %3006 }
 0x649   :  { %v2943_v29 = vpop.permute.xlu0 %2942  ;;  %v2936_v45 = vpop.permute.xlu1 %2935 }
 0x64a   :  { %v2938_v51 = vsel %vm2937_vm10, %v2934_v48, %v2936_v45 }
 0x64b   :  { %2941 = vst.msk [vmem:[#allocation7] sm:$0xff] %vm2940_vm11, %v2938_v51 }
 0x64c   :  { %2946 = vst.msk [vmem:[#allocation7] sm:$0xff] %vm2945_vm15, %v2943_v29 }
 0x64d   :  { %v2974_v6 = vpop.permute.xlu0 %2973  ;;  %v2948_v16 = vpop.permute.xlu1 %2947 }
 0x64e   :  { %v2978_v54 = vsel %vm2977_vm9, %v2974_v6, %v2976_v20  ;;  %2951 = vst.msk [vmem:[#allocation7] sm:$0xff] %vm2950_vm12, %v2948_v16 }
 0x64f   :  { %2980 = vst.msk [vmem:[#allocation7 + $0x8] sm:$0xff] %vm2930_vm8, %v2978_v54 }
 0x650   :  { %2984 = vst.msk [vmem:[#allocation7 + $0x8] sm:$0xff] %vm2940_vm11, %v2982_v40 }
 0x651   :  { %2988 = vst.msk [vmem:[#allocation7 + $0x8] sm:$0xff] %vm2945_vm15, %v2986_v44  ;;  %v3009_v31 = vpop.permute.xlu0 %3008  ;;  %v2953_v15 = vpop.permute.xlu1 %2952 }
 0x652   :  { %2992 = vst.msk [vmem:[#allocation7 + $0x8] sm:$0xff] %vm2950_vm12, %v2990_v30  ;;  %v3011_v1 = vsel %vm3010_vm1, %v3007_v28, %v3009_v31 }
 0x653   :  { %2956 = vst.msk [vmem:[#allocation7] sm:$0xff] %vm2955_vm13, %v2953_v15  ;;  %2996 = vst.msk [vmem:[#allocation7 + $0x8] sm:$0xff] %vm2955_vm13, %v2994_v60 }
 0x654   :  { %3000 = vst.msk [vmem:[#allocation7 + $0x8] sm:$0xff] %vm2960_vm14, %v2998_v47 }
 0x655   :  { %3004 = vst.msk [vmem:[#allocation7 + $0x8] sm:$0xff] %vm2965_vm0, %v3002_v62  ;;  %v3016_v46 = vpop.permute.xlu0 %3015  ;;  %v2958_v23 = vpop.permute.xlu1 %2957 }
 0x656   :  { %3013 = vst.msk [vmem:[#allocation7 + $0x8] sm:$0xff] %vm2970_vm2, %v3011_v1 }
 0x657   :  { %3019 = vst.msk [vmem:[#allocation7 + $0x10] sm:$0xff] %vm2930_vm8, %v3016_v46 }
 0x658   :  { %2961 = vst.msk [vmem:[#allocation7] sm:$0xff] %vm2960_vm14, %v2958_v23 }
 0x659   :  { %v3061_v21 = vpop.permute.xlu0 %3060  ;;  %v2963_v42 = vpop.permute.xlu1 %2962 }
 0x65a   :  { %2966 = vst.msk [vmem:[#allocation7] sm:$0xff] %vm2965_vm0, %v2963_v42 }
 0x65d   :  { %v3069_v18 = vpop.permute.xlu0 %3068  ;;  %v3056_v4 = vpop.permute.xlu1 %3055 }
 0x661   :  { %v3073_v7 = vpop.permute.xlu0 %3072  ;;  %v3022_v50 = vpop.permute.xlu1 %3021 }
 0x665   :  { %v3077_v41 = vpop.permute.xlu0 %3076  ;;  %v3065_v26 = vpop.permute.xlu1 %3064 }
 0x669   :  { %v3081_v34 = vpop.permute.xlu0 %3080  ;;  %v3086_v63 = vpop.permute.xlu1 %3085 }
 0x66d   :  { %v3054_v56 = vpop.permute.xlu0 %3053  ;;  %v3033_v14 = vpop.permute.xlu1 %3032 }
 0x66e   :  { %v3057_v37 = vsel %vm2977_vm9, %v3054_v56, %v3056_v4 }
 0x66f   :  { %3059 = vst.msk [vmem:[#allocation7 + $0x18] sm:$0xff] %vm2930_vm8, %v3057_v37 }
 0x670   :  { %3063 = vst.msk [vmem:[#allocation7 + $0x18] sm:$0xff] %vm2940_vm11, %v3061_v21 }
 0x671   :  { %3067 = vst.msk [vmem:[#allocation7 + $0x18] sm:$0xff] %vm2945_vm15, %v3065_v26  ;;  %v3024_v0 = vpop.permute.xlu0 %3023  ;;  %v3037_v32 = vpop.permute.xlu1 %3036 }
 0x672   :  { %3071 = vst.msk [vmem:[#allocation7 + $0x18] sm:$0xff] %vm2950_vm12, %v3069_v18  ;;  %v3025_v17 = vsel %vm2937_vm10, %v3022_v50, %v3024_v0 }
 0x673   :  { %3075 = vst.msk [vmem:[#allocation7 + $0x18] sm:$0xff] %vm2955_vm13, %v3073_v7 }
 0x674   :  { %3027 = vst.msk [vmem:[#allocation7 + $0x10] sm:$0xff] %vm2940_vm11, %v3025_v17 }
 0x675   :  { %3079 = vst.msk [vmem:[#allocation7 + $0x18] sm:$0xff] %vm2960_vm14, %v3077_v41  ;;  %v3029_v55 = vpop.permute.xlu0 %3028  ;;  %v3041_v9 = vpop.permute.xlu1 %3040 }
 0x676   :  { %3083 = vst.msk [vmem:[#allocation7 + $0x18] sm:$0xff] %vm2965_vm0, %v3081_v34 }
 0x677   :  { %3031 = vst.msk [vmem:[#allocation7 + $0x10] sm:$0xff] %vm2945_vm15, %v3029_v55 }
 0x678   :  { %3035 = vst.msk [vmem:[#allocation7 + $0x10] sm:$0xff] %vm2950_vm12, %v3033_v14 }
 0x679   :  { %3039 = vst.msk [vmem:[#allocation7 + $0x10] sm:$0xff] %vm2955_vm13, %v3037_v32  ;;  %v3088_v13 = vpop.permute.xlu0 %3087  ;;  %v3045_v53 = vpop.permute.xlu1 %3044 }
 0x67a   :  { %3043 = vst.msk [vmem:[#allocation7 + $0x10] sm:$0xff] %vm2960_vm14, %v3041_v9  ;;  %v3089_v39 = vsel %vm3010_vm1, %v3086_v63, %v3088_v13 }
 0x67b   :  { %3047 = vst.msk [vmem:[#allocation7 + $0x10] sm:$0xff] %vm2965_vm0, %v3045_v53 }
 0x67c   :  { %3091 = vst.msk [vmem:[#allocation7 + $0x18] sm:$0xff] %vm2970_vm2, %v3089_v39 }
 0x67d   :  { %v3049_v24 = vpop.permute.xlu0 %3048  ;;  %v2968_v5 = vpop.permute.xlu1 %2967 }
 0x67e   :  { %3051 = vst.msk [vmem:[#allocation7 + $0x10] sm:$0xff] %vm2970_vm2, %v3049_v24  ;;  %2971 = vst.msk [vmem:[#allocation7] sm:$0xff] %vm2970_vm2, %v2968_v5 }
 0x67f   :  { %3870 = shalt.err (!%p3867_p12)
}
 0x680   :  { %s3871_s4 = scalar_lea.hbm %s4957_s8, 512 }
 0x681   :  { %p3872_p13 = scmp.ne.s32.totalorder %s4957_s8, %s3871_s4  ;;  %p3875_p0 = scmp.lt.u32.totalorder %s3871_s4, %s4957_s8 }
 0x683   :  { %p3877_p1 = pnand %p3875_p0, %p3872_p13 }
 0x685   :  { %3880 = shalt.err (!%p3877_p1)
}
 0x686   :  { %s3912_s5 = smov 256   ;;  %s3913_s30 = smov 16  }
 0x687   :  { %3103 = dma.vmem_to_hbm [thread:$0]  %s3098_s24, 512, %s4957_s8, [#allocation6], %s3912_s5, %s3912_s5, %s3913_s30  }
 0x688   :  { %3883 = dma.done.wait [#allocation6], 512  }
 0x689   :  { %3884 = vsyncadd [#allocation6], 4294966784 }
 0x68a   :  { %3107 = vsyncpa [#allocation5], 1 }
 0x68b   :  { %3108 = vsyncpa [#allocation6], 1 }

</bundles_post_ra>
